<compile_context>
chip_gen: v5e
topology: v5e:2x2
jax: 0.10.0
libtpu: 0.0.40
codegen_flags: <defaults>
</compile_context>

<pallas_src>
import functools

import jax
import jax.numpy as jnp
from jax.experimental import pallas as pl
from jax.experimental.pallas import tpu as pltpu


# -----------------------------------------------------------------------------
# Pallas kernels
# -----------------------------------------------------------------------------
def _round_up(x, m):
    return (x + m - 1) // m * m


def pallas_matmul_fused(x, w, b, *, relu=False, residual=None,
                        out_dtype=jnp.bfloat16):
    """out = epilogue(x @ w + b [+ residual]) with f32 accumulation.

    x: (M, K) any float dtype (cast to bf16), w: (K, Np) bf16 (pre-padded),
    b: (1, Np) f32, residual: optional (M, Np) (added before ReLU).
    Returns (M, Np) in out_dtype.  Single K pass (full K per tile).
    """
    M, K = x.shape
    Kw, Np = w.shape
    assert K == Kw, (K, Kw)

    Mp = _round_up(M, 8)
    x = x.astype(jnp.bfloat16)
    if Mp != M:
        x = jnp.pad(x, ((0, Mp - M), (0, 0)))
    if residual is not None:
        residual = residual.astype(jnp.bfloat16)
        if residual.shape != (Mp, Np):
            residual = jnp.pad(
                residual,
                ((0, Mp - residual.shape[0]), (0, Np - residual.shape[1])))

    # --- tile selection -------------------------------------------------------
    tm = min(256, Mp)
    if Mp % tm:
        tm = Mp
    if tm == Mp and Mp >= 32 and (Mp // 2) % 8 == 0:
        tm = Mp // 2        # >= 2 M-blocks so both v7x TensorCores get work
    tn = min(256, Np)
    if Np % tn:
        tn = 128            # Np is always a multiple of 128
    grid = (Mp // tm, Np // tn)

    has_res = residual is not None

    def kernel(x_ref, w_ref, b_ref, *rest):
        if has_res:
            r_ref, o_ref = rest
        else:
            (o_ref,) = rest
        acc = jnp.dot(x_ref[...], w_ref[...],
                      preferred_element_type=jnp.float32)
        acc = acc + b_ref[...]
        if has_res:
            acc = acc + r_ref[...].astype(jnp.float32)
        if relu:
            acc = jnp.maximum(acc, 0.0)
        o_ref[...] = acc.astype(o_ref.dtype)

    in_specs = [
        pl.BlockSpec((tm, K), lambda i, j: (i, 0)),
        pl.BlockSpec((K, tn), lambda i, j: (0, j)),
        pl.BlockSpec((1, tn), lambda i, j: (0, j)),
    ]
    args = [x, w, b]
    if has_res:
        in_specs.append(pl.BlockSpec((tm, tn), lambda i, j: (i, j)))
        args.append(residual)

    out = pl.pallas_call(
        kernel,
        out_shape=jax.ShapeDtypeStruct((Mp, Np), out_dtype),
        grid=grid,
        in_specs=in_specs,
        out_specs=pl.BlockSpec((tm, tn), lambda i, j: (i, j)),
        compiler_params=pltpu.CompilerParams(
            dimension_semantics=("parallel", "parallel")),
    )(*args)
    if Mp != M:
        out = out[:M]
    return out


def pallas_max9(patches):
    """patches: (9, M, C) -> (M, C) max over the 9 window taps."""
    _, M, C = patches.shape
    mb = min(M, 1024)
    if M % mb:
        mb = M

    def kernel(p_ref, o_ref):
        r = p_ref[0]
        for t in range(1, 9):
            r = jnp.maximum(r, p_ref[t])
        o_ref[...] = r

    return pl.pallas_call(
        kernel,
        out_shape=jax.ShapeDtypeStruct((M, C), patches.dtype),
        grid=(M // mb,),
        in_specs=[pl.BlockSpec((9, mb, C), lambda i: (0, i, 0))],
        out_specs=pl.BlockSpec((mb, C), lambda i: (i, 0)),
        compiler_params=pltpu.CompilerParams(
            dimension_semantics=("parallel",)),
    )(patches)


# -----------------------------------------------------------------------------
# Conv / pool / upsample wrappers (im2col glue in plain JAX, matmul in Pallas)
# -----------------------------------------------------------------------------
def conv2d(x, p, *, k, stride, pad, cout, relu, residual=None,
           out_dtype=jnp.bfloat16):
    """x: NHWC bf16; p['w']:(Kp, Np) bf16 tap-major [ky,kx,cin]; p['b']:(1,Np)."""
    N, H, W, C = x.shape
    Ho = (H + 2 * pad - k) // stride + 1
    Wo = (W + 2 * pad - k) // stride + 1
    if k == 1 and stride == 1 and pad == 0:
        pm = x.reshape(N * H * W, C)
    else:
        xp = jnp.pad(x, ((0, 0), (pad, pad), (pad, pad), (0, 0)))
        taps = []
        for dy in range(k):
            for dx in range(k):
                taps.append(xp[:, dy:dy + stride * (Ho - 1) + 1:stride,
                               dx:dx + stride * (Wo - 1) + 1:stride, :])
        pm = jnp.stack(taps, axis=3).reshape(N * Ho * Wo, k * k * C)

    Kw, Np = p['w'].shape
    if pm.shape[1] != Kw:                       # only the 3-ch input convs pad K
        pm = jnp.pad(pm, ((0, 0), (0, Kw - pm.shape[1])))

    res2d = None
    if residual is not None:
        res2d = residual.reshape(N * Ho * Wo, residual.shape[-1])
        if res2d.shape[1] != Np:
            res2d = jnp.pad(res2d, ((0, 0), (0, Np - res2d.shape[1])))

    y = pallas_matmul_fused(pm, p['w'], p['b'], relu=relu, residual=res2d,
                            out_dtype=out_dtype)
    if y.shape[1] != cout:
        y = y[:, :cout]
    return y.reshape(N, Ho, Wo, cout)


def conv_transpose_2x2(x, p, cout):
    """ConvTranspose2d(kernel=2, stride=2). p['w']:(Cin, 4*Cout) bf16."""
    N, H, W, Cin = x.shape
    x2d = x.reshape(N * H * W, Cin)
    if x2d.shape[1] != p['w'].shape[0]:
        x2d = jnp.pad(x2d, ((0, 0), (0, p['w'].shape[0] - x2d.shape[1])))
    y = pallas_matmul_fused(x2d, p['w'], p['b'], relu=False)
    if y.shape[1] != 4 * cout:
        y = y[:, :4 * cout]
    y = y.reshape(N, H, W, 2, 2, cout)
    y = jnp.transpose(y, (0, 1, 3, 2, 4, 5)).reshape(N, 2 * H, 2 * W, cout)
    return y


def maxpool_3x3_s2_p1(x):
    N, H, W, C = x.shape
    Ho = (H + 2 - 3) // 2 + 1
    Wo = (W + 2 - 3) // 2 + 1
    # Input follows a ReLU so the pad value never wins, but keep MaxPool semantics.
    pad_val = float(jnp.finfo(x.dtype).min)
    xp = jnp.pad(x, ((0, 0), (1, 1), (1, 1), (0, 0)), constant_values=pad_val)
    taps = []
    for dy in range(3):
        for dx in range(3):
            taps.append(xp[:, dy:dy + 2 * (Ho - 1) + 1:2,
                           dx:dx + 2 * (Wo - 1) + 1:2, :].reshape(N * Ho * Wo, C))
    out = pallas_max9(jnp.stack(taps, axis=0))
    return out.reshape(N, Ho, Wo, C)


# -----------------------------------------------------------------------------
# Parameter construction (deterministic, BN folded, pre-padded, bf16 weights)
# -----------------------------------------------------------------------------
def _nrm(key, shape, scale=0.1):
    return scale * jax.random.normal(key, shape, dtype=jnp.float32)


def _pack(w_t, b_vec, k, cin, cout):
    """w_t: (cout,cin,k,k) f32 torch layout -> padded bf16 (Kp,Np) + f32 (1,Np)."""
    w_mat = jnp.transpose(w_t, (2, 3, 1, 0)).reshape(k * k * cin, cout)
    K = k * k * cin
    Kp = _round_up(K, 8)
    Np = _round_up(cout, 128)
    w_pad = jnp.pad(w_mat, ((0, Kp - K), (0, Np - cout))).astype(jnp.bfloat16)
    b_pad = jnp.pad(b_vec, (0, Np - cout)).astype(jnp.float32).reshape(1, Np)
    return {'w': w_pad, 'b': b_pad}


def init_conv_bn(key, cin, cout, k):
    k1, k2, k3, k4, k5 = jax.random.split(key, 5)
    w = _nrm(k1, (cout, cin, k, k))
    gamma = 1.0 + _nrm(k2, (cout,))
    beta = _nrm(k3, (cout,))
    mean = _nrm(k4, (cout,))
    var = 1.0 + jnp.abs(_nrm(k5, (cout,)))
    scale = gamma / jnp.sqrt(var + 1e-5)
    wf = w * scale[:, None, None, None]
    bf = beta - mean * scale
    return _pack(wf, bf, k, cin, cout)


def init_conv_bias(key, cin, cout, k):
    k1, k2 = jax.random.split(key)
    return _pack(_nrm(k1, (cout, cin, k, k)), _nrm(k2, (cout,)), k, cin, cout)


def init_conv_transpose(key, cin, cout):
    k1, k2 = jax.random.split(key)
    w = _nrm(k1, (cin, cout, 2, 2))                      # torch ConvTranspose layout
    b = _nrm(k2, (cout,))
    w_mat = jnp.transpose(w, (0, 2, 3, 1)).reshape(cin, 4 * cout)
    Kp = _round_up(cin, 8)
    Np = _round_up(4 * cout, 128)
    w_pad = jnp.pad(w_mat, ((0, Kp - cin), (0, Np - 4 * cout))).astype(jnp.bfloat16)
    b_pad = jnp.pad(jnp.tile(b, 4), (0, Np - 4 * cout)).astype(jnp.float32)
    return {'w': w_pad, 'b': b_pad.reshape(1, Np)}


def init_basic_block(key, cin, cout, downsample):
    k1, k2, k3 = jax.random.split(key, 3)
    d = {'c1': init_conv_bn(k1, cin, cout, 3), 'c2': init_conv_bn(k2, cout, cout, 3)}
    if downsample:
        d['ds'] = init_conv_bn(k3, cin, cout, 1)
    return d


def init_up(key, ct_in, ct_out, dc_in, dc_out):
    k1, k2, k3 = jax.random.split(key, 3)
    return {'ct': init_conv_transpose(k1, ct_in, ct_out),
            'c1': init_conv_bn(k2, dc_in, dc_out, 3),
            'c2': init_conv_bn(k3, dc_out, dc_out, 3)}


def init_params(key, in_channels, out_channels):
    ks = iter(jax.random.split(key, 24))
    p = {}
    p['inc_c1'] = init_conv_bn(next(ks), in_channels, 64, 3)   # inc = DoubleConv
    p['inc_c2'] = init_conv_bn(next(ks), 64, 64, 3)
    p['conv1'] = init_conv_bn(next(ks), in_channels, 64, 7)    # block1
    p['l1b1'] = init_basic_block(next(ks), 64, 64, False)      # block2 (after pool)
    p['l1b2'] = init_basic_block(next(ks), 64, 64, False)
    p['l2b1'] = init_basic_block(next(ks), 64, 128, True)      # block3
    p['l2b2'] = init_basic_block(next(ks), 128, 128, False)
    p['l3b1'] = init_basic_block(next(ks), 128, 256, True)     # block4
    p['l3b2'] = init_basic_block(next(ks), 256, 256, False)
    # up1/up2/up3 params omitted: their outputs are dead in the reference forward.
    p['up4'] = init_up(next(ks), 64, 64, 128, 64)              # UpResNet(64, 64, 64)
    p['outc'] = init_conv_bias(next(ks), 64, out_channels, 1)
    return p


# -----------------------------------------------------------------------------
# Model forward
# -----------------------------------------------------------------------------
def double_conv(x, c1, c2, cmid, cout):
    h = conv2d(x, c1, k=3, stride=1, pad=1, cout=cmid, relu=True)
    return conv2d(h, c2, k=3, stride=1, pad=1, cout=cout, relu=True)


def basic_block(x, p, *, stride, cout):
    h = conv2d(x, p['c1'], k=3, stride=stride, pad=1, cout=cout, relu=True)
    if 'ds' in p:
        identity = conv2d(x, p['ds'], k=1, stride=stride, pad=0, cout=cout, relu=False)
    else:
        identity = x
    # relu(bn(conv(h)) + identity) fused into the matmul epilogue.
    return conv2d(h, p['c2'], k=3, stride=1, pad=1, cout=cout, relu=True,
                  residual=identity)


def up_block(x_low, x_skip, p, *, ct_cout, dc_cout):
    up = conv_transpose_2x2(x_low, p['ct'], ct_cout)
    cat = jnp.concatenate([x_skip, up], axis=-1)        # torch.cat([skip, up], dim=1)
    return double_conv(cat, p['c1'], p['c2'], dc_cout, dc_cout)


@functools.partial(jax.jit, static_argnames=("out_channels",))
def resnet_unet_forward(params, x_nchw, *, out_channels):
    x = jnp.transpose(x_nchw, (0, 2, 3, 1)).astype(jnp.bfloat16)   # NCHW -> NHWC

    x0 = double_conv(x, params['inc_c1'], params['inc_c2'], 64, 64)   # self.inc(x)
    x1 = conv2d(x, params['conv1'], k=7, stride=2, pad=3, cout=64, relu=True)
    x2 = maxpool_3x3_s2_p1(x1)                                        # self.block2
    x2 = basic_block(x2, params['l1b1'], stride=1, cout=64)
    x2 = basic_block(x2, params['l1b2'], stride=1, cout=64)
    x3 = basic_block(x2, params['l2b1'], stride=2, cout=128)          # self.block3
    x3 = basic_block(x3, params['l2b2'], stride=1, cout=128)
    x4 = basic_block(x3, params['l3b1'], stride=2, cout=256)          # self.block4
    x4 = basic_block(x4, params['l3b2'], stride=1, cout=256)
    del x4  # y1/y2/y3 (up1(x4,x3), up2(x3,x2), up3(x2,x1)) never reach the logits
            # in the reference forward; removed per performance review.

    y4 = up_block(x1, x0, params['up4'], ct_cout=64, dc_cout=64)      # self.up4
    logits = conv2d(y4, params['outc'], k=1, stride=1, pad=0,
                    cout=out_channels, relu=False, out_dtype=jnp.float32)
    return jnp.transpose(logits, (0, 3, 1, 2))                        # NHWC -> NCHW


# -----------------------------------------------------------------------------
if __name__ == "__main__":
    in_channels, out_channels = 3, 2      # resnet backbone requires 3 input channels
    batch, spatial = 2, 32

    params = init_params(jax.random.PRNGKey(1), in_channels, out_channels)
    x = jax.random.normal(jax.random.PRNGKey(0),
                          (batch, in_channels, spatial, spatial), dtype=jnp.float32)

    logits = resnet_unet_forward(params, x, out_channels=out_channels)
    logits = jax.block_until_ready(logits)
    assert logits.shape == (batch, out_channels, spatial, spatial), logits.shape
    assert bool(jnp.all(jnp.isfinite(logits)))
    print("KERNEL_OK")
</pallas_src>

<mosaic_0001>
module attributes {stable_mosaic.version = 11 : i64} {
  func.func @kernel(%arg0: i32, %arg1: i32, %arg2: memref<256x32xbf16, #tpu.memory_space<vmem>>, %arg3: memref<32x128xbf16, #tpu.memory_space<vmem>>, %arg4: memref<1x128xf32, #tpu.memory_space<vmem>>, %arg5: memref<256x128xbf16, #tpu.memory_space<vmem>>) attributes {dimension_semantics = [#tpu.dimension_semantics<parallel>, #tpu.dimension_semantics<parallel>], iteration_bounds = array<i64: 8, 1>, scalar_prefetch = 0 : i64, scratch_operands = 0 : i64, tpu.core_type = #tpu.core_type<tc>, window_params = [{transform_indices = @transform_0, window_bounds = array<i64: 256, 32>}, {transform_indices = @transform_1, window_bounds = array<i64: 32, 128>}, {transform_indices = @transform_2, window_bounds = array<i64: 1, 128>}, {transform_indices = @transform_3, window_bounds = array<i64: 256, 128>}]} {
    %c0 = arith.constant 0 : index
    %c0_0 = arith.constant 0 : index
    %0 = vector.load %arg2[%c0, %c0_0] : memref<256x32xbf16, #tpu.memory_space<vmem>>, vector<256x32xbf16>
    %c0_1 = arith.constant 0 : index
    %c0_2 = arith.constant 0 : index
    %1 = vector.load %arg3[%c0_1, %c0_2] : memref<32x128xbf16, #tpu.memory_space<vmem>>, vector<32x128xbf16>
    %cst = arith.constant dense<0.000000e+00> : vector<256x128xf32>
    %2 = tpu.matmul %0, %1, %cst {dimension_numbers = #tpu.dot_dimension_numbers<[1], [0], [0], [1], [0, 0, 1, 1], [], []>} : vector<256x32xbf16>, vector<32x128xbf16>, vector<256x128xf32> -> vector<256x128xf32>
    %c0_3 = arith.constant 0 : index
    %c0_4 = arith.constant 0 : index
    %3 = vector.load %arg4[%c0_3, %c0_4] : memref<1x128xf32, #tpu.memory_space<vmem>>, vector<1x128xf32>
    %4 = vector.broadcast %3 : vector<1x128xf32> to vector<256x128xf32>
    %5 = arith.addf %2, %4 : vector<256x128xf32>
    %cst_5 = arith.constant 0.000000e+00 : f32
    %6 = vector.broadcast %cst_5 : f32 to vector<256x128xf32>
    %7 = arith.maximumf %5, %6 : vector<256x128xf32>
    %8 = arith.truncf %7 : vector<256x128xf32> to vector<256x128xbf16>
    %c0_6 = arith.constant 0 : index
    %c0_7 = arith.constant 0 : index
    %9 = vector.load %arg5[%c0_6, %c0_7] : memref<256x128xbf16, #tpu.memory_space<vmem>>, vector<256x128xbf16>
    tpu.vector_store %arg5[%c0_6, %c0_7], %8 {strides = array<i32>} : memref<256x128xbf16, #tpu.memory_space<vmem>>, vector<256x128xbf16>,
    return
  }
  func.func @transform_0(%arg0: i32, %arg1: i32) -> (i32, i32) {
    %c0_i32 = arith.constant 0 : i32
    %c0_i32_0 = arith.constant 0 : i32
    return %arg0, %c0_i32 : i32, i32
  }
  func.func @transform_1(%arg0: i32, %arg1: i32) -> (i32, i32) {
    %c0_i32 = arith.constant 0 : i32
    %c0_i32_0 = arith.constant 0 : i32
    return %c0_i32, %arg1 : i32, i32
  }
  func.func @transform_2(%arg0: i32, %arg1: i32) -> (i32, i32) {
    %c0_i32 = arith.constant 0 : i32
    %c0_i32_0 = arith.constant 0 : i32
    return %c0_i32, %arg1 : i32, i32
  }
  func.func @transform_3(%arg0: i32, %arg1: i32) -> (i32, i32) {
    %c0_i32 = arith.constant 0 : i32
    return %arg0, %arg1 : i32, i32
  }
}

module attributes {stable_mosaic.version = 11 : i64} {
  func.func @kernel(%arg0: i32, %arg1: i32, %arg2: memref<256x576xbf16, #tpu.memory_space<vmem>>, %arg3: memref<576x128xbf16, #tpu.memory_space<vmem>>, %arg4: memref<1x128xf32, #tpu.memory_space<vmem>>, %arg5: memref<256x128xbf16, #tpu.memory_space<vmem>>) attributes {dimension_semantics = [#tpu.dimension_semantics<parallel>, #tpu.dimension_semantics<parallel>], iteration_bounds = array<i64: 8, 1>, scalar_prefetch = 0 : i64, scratch_operands = 0 : i64, tpu.core_type = #tpu.core_type<tc>, window_params = [{transform_indices = @transform_0, window_bounds = array<i64: 256, 576>}, {transform_indices = @transform_1, window_bounds = array<i64: 576, 128>}, {transform_indices = @transform_2, window_bounds = array<i64: 1, 128>}, {transform_indices = @transform_3, window_bounds = array<i64: 256, 128>}]} {
    %c0 = arith.constant 0 : index
    %c0_0 = arith.constant 0 : index
    %0 = vector.load %arg2[%c0, %c0_0] : memref<256x576xbf16, #tpu.memory_space<vmem>>, vector<256x576xbf16>
    %c0_1 = arith.constant 0 : index
    %c0_2 = arith.constant 0 : index
    %1 = vector.load %arg3[%c0_1, %c0_2] : memref<576x128xbf16, #tpu.memory_space<vmem>>, vector<576x128xbf16>
    %cst = arith.constant dense<0.000000e+00> : vector<256x128xf32>
    %2 = tpu.matmul %0, %1, %cst {dimension_numbers = #tpu.dot_dimension_numbers<[1], [0], [0], [1], [0, 0, 1, 1], [], []>} : vector<256x576xbf16>, vector<576x128xbf16>, vector<256x128xf32> -> vector<256x128xf32>
    %c0_3 = arith.constant 0 : index
    %c0_4 = arith.constant 0 : index
    %3 = vector.load %arg4[%c0_3, %c0_4] : memref<1x128xf32, #tpu.memory_space<vmem>>, vector<1x128xf32>
    %4 = vector.broadcast %3 : vector<1x128xf32> to vector<256x128xf32>
    %5 = arith.addf %2, %4 : vector<256x128xf32>
    %cst_5 = arith.constant 0.000000e+00 : f32
    %6 = vector.broadcast %cst_5 : f32 to vector<256x128xf32>
    %7 = arith.maximumf %5, %6 : vector<256x128xf32>
    %8 = arith.truncf %7 : vector<256x128xf32> to vector<256x128xbf16>
    %c0_6 = arith.constant 0 : index
    %c0_7 = arith.constant 0 : index
    %9 = vector.load %arg5[%c0_6, %c0_7] : memref<256x128xbf16, #tpu.memory_space<vmem>>, vector<256x128xbf16>
    tpu.vector_store %arg5[%c0_6, %c0_7], %8 {strides = array<i32>} : memref<256x128xbf16, #tpu.memory_space<vmem>>, vector<256x128xbf16>,
    return
  }
  func.func @transform_0(%arg0: i32, %arg1: i32) -> (i32, i32) {
    %c0_i32 = arith.constant 0 : i32
    %c0_i32_0 = arith.constant 0 : i32
    return %arg0, %c0_i32 : i32, i32
  }
  func.func @transform_1(%arg0: i32, %arg1: i32) -> (i32, i32) {
    %c0_i32 = arith.constant 0 : i32
    %c0_i32_0 = arith.constant 0 : i32
    return %c0_i32, %arg1 : i32, i32
  }
  func.func @transform_2(%arg0: i32, %arg1: i32) -> (i32, i32) {
    %c0_i32 = arith.constant 0 : i32
    %c0_i32_0 = arith.constant 0 : i32
    return %c0_i32, %arg1 : i32, i32
  }
  func.func @transform_3(%arg0: i32, %arg1: i32) -> (i32, i32) {
    %c0_i32 = arith.constant 0 : i32
    return %arg0, %arg1 : i32, i32
  }
}

module attributes {stable_mosaic.version = 11 : i64} {
  func.func @kernel(%arg0: i32, %arg1: i32, %arg2: memref<256x152xbf16, #tpu.memory_space<vmem>>, %arg3: memref<152x128xbf16, #tpu.memory_space<vmem>>, %arg4: memref<1x128xf32, #tpu.memory_space<vmem>>, %arg5: memref<256x128xbf16, #tpu.memory_space<vmem>>) attributes {dimension_semantics = [#tpu.dimension_semantics<parallel>, #tpu.dimension_semantics<parallel>], iteration_bounds = array<i64: 2, 1>, scalar_prefetch = 0 : i64, scratch_operands = 0 : i64, tpu.core_type = #tpu.core_type<tc>, window_params = [{transform_indices = @transform_0, window_bounds = array<i64: 256, 152>}, {transform_indices = @transform_1, window_bounds = array<i64: 152, 128>}, {transform_indices = @transform_2, window_bounds = array<i64: 1, 128>}, {transform_indices = @transform_3, window_bounds = array<i64: 256, 128>}]} {
    %c0 = arith.constant 0 : index
    %c0_0 = arith.constant 0 : index
    %0 = vector.load %arg2[%c0, %c0_0] : memref<256x152xbf16, #tpu.memory_space<vmem>>, vector<256x152xbf16>
    %c0_1 = arith.constant 0 : index
    %c0_2 = arith.constant 0 : index
    %1 = vector.load %arg3[%c0_1, %c0_2] : memref<152x128xbf16, #tpu.memory_space<vmem>>, vector<152x128xbf16>
    %cst = arith.constant dense<0.000000e+00> : vector<256x128xf32>
    %2 = tpu.matmul %0, %1, %cst {dimension_numbers = #tpu.dot_dimension_numbers<[1], [0], [0], [1], [0, 0, 1, 1], [], []>} : vector<256x152xbf16>, vector<152x128xbf16>, vector<256x128xf32> -> vector<256x128xf32>
    %c0_3 = arith.constant 0 : index
    %c0_4 = arith.constant 0 : index
    %3 = vector.load %arg4[%c0_3, %c0_4] : memref<1x128xf32, #tpu.memory_space<vmem>>, vector<1x128xf32>
    %4 = vector.broadcast %3 : vector<1x128xf32> to vector<256x128xf32>
    %5 = arith.addf %2, %4 : vector<256x128xf32>
    %cst_5 = arith.constant 0.000000e+00 : f32
    %6 = vector.broadcast %cst_5 : f32 to vector<256x128xf32>
    %7 = arith.maximumf %5, %6 : vector<256x128xf32>
    %8 = arith.truncf %7 : vector<256x128xf32> to vector<256x128xbf16>
    %c0_6 = arith.constant 0 : index
    %c0_7 = arith.constant 0 : index
    %9 = vector.load %arg5[%c0_6, %c0_7] : memref<256x128xbf16, #tpu.memory_space<vmem>>, vector<256x128xbf16>
    tpu.vector_store %arg5[%c0_6, %c0_7], %8 {strides = array<i32>} : memref<256x128xbf16, #tpu.memory_space<vmem>>, vector<256x128xbf16>,
    return
  }
  func.func @transform_0(%arg0: i32, %arg1: i32) -> (i32, i32) {
    %c0_i32 = arith.constant 0 : i32
    %c0_i32_0 = arith.constant 0 : i32
    return %arg0, %c0_i32 : i32, i32
  }
  func.func @transform_1(%arg0: i32, %arg1: i32) -> (i32, i32) {
    %c0_i32 = arith.constant 0 : i32
    %c0_i32_0 = arith.constant 0 : i32
    return %c0_i32, %arg1 : i32, i32
  }
  func.func @transform_2(%arg0: i32, %arg1: i32) -> (i32, i32) {
    %c0_i32 = arith.constant 0 : i32
    %c0_i32_0 = arith.constant 0 : i32
    return %c0_i32, %arg1 : i32, i32
  }
  func.func @transform_3(%arg0: i32, %arg1: i32) -> (i32, i32) {
    %c0_i32 = arith.constant 0 : i32
    return %arg0, %arg1 : i32, i32
  }
}

module attributes {stable_mosaic.version = 11 : i64} {
  func.func @kernel(%arg0: i32, %arg1: i32, %arg2: memref<256x64xbf16, #tpu.memory_space<vmem>>, %arg3: memref<64x256xbf16, #tpu.memory_space<vmem>>, %arg4: memref<1x256xf32, #tpu.memory_space<vmem>>, %arg5: memref<256x256xbf16, #tpu.memory_space<vmem>>) attributes {dimension_semantics = [#tpu.dimension_semantics<parallel>, #tpu.dimension_semantics<parallel>], iteration_bounds = array<i64: 2, 1>, scalar_prefetch = 0 : i64, scratch_operands = 0 : i64, tpu.core_type = #tpu.core_type<tc>, window_params = [{transform_indices = @transform_0, window_bounds = array<i64: 256, 64>}, {transform_indices = @transform_1, window_bounds = array<i64: 64, 256>}, {transform_indices = @transform_2, window_bounds = array<i64: 1, 256>}, {transform_indices = @transform_3, window_bounds = array<i64: 256, 256>}]} {
    %c0 = arith.constant 0 : index
    %c0_0 = arith.constant 0 : index
    %0 = vector.load %arg2[%c0, %c0_0] : memref<256x64xbf16, #tpu.memory_space<vmem>>, vector<256x64xbf16>
    %c0_1 = arith.constant 0 : index
    %c0_2 = arith.constant 0 : index
    %1 = vector.load %arg3[%c0_1, %c0_2] : memref<64x256xbf16, #tpu.memory_space<vmem>>, vector<64x256xbf16>
    %cst = arith.constant dense<0.000000e+00> : vector<256x256xf32>
    %2 = tpu.matmul %0, %1, %cst {dimension_numbers = #tpu.dot_dimension_numbers<[1], [0], [0], [1], [0, 0, 1, 1], [], []>} : vector<256x64xbf16>, vector<64x256xbf16>, vector<256x256xf32> -> vector<256x256xf32>
    %c0_3 = arith.constant 0 : index
    %c0_4 = arith.constant 0 : index
    %3 = vector.load %arg4[%c0_3, %c0_4] : memref<1x256xf32, #tpu.memory_space<vmem>>, vector<1x256xf32>
    %4 = vector.broadcast %3 : vector<1x256xf32> to vector<256x256xf32>
    %5 = arith.addf %2, %4 : vector<256x256xf32>
    %6 = arith.truncf %5 : vector<256x256xf32> to vector<256x256xbf16>
    %c0_5 = arith.constant 0 : index
    %c0_6 = arith.constant 0 : index
    %7 = vector.load %arg5[%c0_5, %c0_6] : memref<256x256xbf16, #tpu.memory_space<vmem>>, vector<256x256xbf16>
    tpu.vector_store %arg5[%c0_5, %c0_6], %6 {strides = array<i32>} : memref<256x256xbf16, #tpu.memory_space<vmem>>, vector<256x256xbf16>,
    return
  }
  func.func @transform_0(%arg0: i32, %arg1: i32) -> (i32, i32) {
    %c0_i32 = arith.constant 0 : i32
    %c0_i32_0 = arith.constant 0 : i32
    return %arg0, %c0_i32 : i32, i32
  }
  func.func @transform_1(%arg0: i32, %arg1: i32) -> (i32, i32) {
    %c0_i32 = arith.constant 0 : i32
    %c0_i32_0 = arith.constant 0 : i32
    return %c0_i32, %arg1 : i32, i32
  }
  func.func @transform_2(%arg0: i32, %arg1: i32) -> (i32, i32) {
    %c0_i32 = arith.constant 0 : i32
    %c0_i32_0 = arith.constant 0 : i32
    return %c0_i32, %arg1 : i32, i32
  }
  func.func @transform_3(%arg0: i32, %arg1: i32) -> (i32, i32) {
    %c0_i32 = arith.constant 0 : i32
    return %arg0, %arg1 : i32, i32
  }
}

module attributes {stable_mosaic.version = 11 : i64} {
  func.func @kernel(%arg0: i32, %arg1: i32, %arg2: memref<256x1152xbf16, #tpu.memory_space<vmem>>, %arg3: memref<1152x128xbf16, #tpu.memory_space<vmem>>, %arg4: memref<1x128xf32, #tpu.memory_space<vmem>>, %arg5: memref<256x128xbf16, #tpu.memory_space<vmem>>) attributes {dimension_semantics = [#tpu.dimension_semantics<parallel>, #tpu.dimension_semantics<parallel>], iteration_bounds = array<i64: 8, 1>, scalar_prefetch = 0 : i64, scratch_operands = 0 : i64, tpu.core_type = #tpu.core_type<tc>, window_params = [{transform_indices = @transform_0, window_bounds = array<i64: 256, 1152>}, {transform_indices = @transform_1, window_bounds = array<i64: 1152, 128>}, {transform_indices = @transform_2, window_bounds = array<i64: 1, 128>}, {transform_indices = @transform_3, window_bounds = array<i64: 256, 128>}]} {
    %c0 = arith.constant 0 : index
    %c0_0 = arith.constant 0 : index
    %0 = vector.load %arg2[%c0, %c0_0] : memref<256x1152xbf16, #tpu.memory_space<vmem>>, vector<256x1152xbf16>
    %c0_1 = arith.constant 0 : index
    %c0_2 = arith.constant 0 : index
    %1 = vector.load %arg3[%c0_1, %c0_2] : memref<1152x128xbf16, #tpu.memory_space<vmem>>, vector<1152x128xbf16>
    %cst = arith.constant dense<0.000000e+00> : vector<256x128xf32>
    %2 = tpu.matmul %0, %1, %cst {dimension_numbers = #tpu.dot_dimension_numbers<[1], [0], [0], [1], [0, 0, 1, 1], [], []>} : vector<256x1152xbf16>, vector<1152x128xbf16>, vector<256x128xf32> -> vector<256x128xf32>
    %c0_3 = arith.constant 0 : index
    %c0_4 = arith.constant 0 : index
    %3 = vector.load %arg4[%c0_3, %c0_4] : memref<1x128xf32, #tpu.memory_space<vmem>>, vector<1x128xf32>
    %4 = vector.broadcast %3 : vector<1x128xf32> to vector<256x128xf32>
    %5 = arith.addf %2, %4 : vector<256x128xf32>
    %cst_5 = arith.constant 0.000000e+00 : f32
    %6 = vector.broadcast %cst_5 : f32 to vector<256x128xf32>
    %7 = arith.maximumf %5, %6 : vector<256x128xf32>
    %8 = arith.truncf %7 : vector<256x128xf32> to vector<256x128xbf16>
    %c0_6 = arith.constant 0 : index
    %c0_7 = arith.constant 0 : index
    %9 = vector.load %arg5[%c0_6, %c0_7] : memref<256x128xbf16, #tpu.memory_space<vmem>>, vector<256x128xbf16>
    tpu.vector_store %arg5[%c0_6, %c0_7], %8 {strides = array<i32>} : memref<256x128xbf16, #tpu.memory_space<vmem>>, vector<256x128xbf16>,
    return
  }
  func.func @transform_0(%arg0: i32, %arg1: i32) -> (i32, i32) {
    %c0_i32 = arith.constant 0 : i32
    %c0_i32_0 = arith.constant 0 : i32
    return %arg0, %c0_i32 : i32, i32
  }
  func.func @transform_1(%arg0: i32, %arg1: i32) -> (i32, i32) {
    %c0_i32 = arith.constant 0 : i32
    %c0_i32_0 = arith.constant 0 : i32
    return %c0_i32, %arg1 : i32, i32
  }
  func.func @transform_2(%arg0: i32, %arg1: i32) -> (i32, i32) {
    %c0_i32 = arith.constant 0 : i32
    %c0_i32_0 = arith.constant 0 : i32
    return %c0_i32, %arg1 : i32, i32
  }
  func.func @transform_3(%arg0: i32, %arg1: i32) -> (i32, i32) {
    %c0_i32 = arith.constant 0 : i32
    return %arg0, %arg1 : i32, i32
  }
}

module attributes {stable_mosaic.version = 11 : i64} {
  func.func @kernel(%arg0: i32, %arg1: i32, %arg2: memref<256x64xbf16, #tpu.memory_space<vmem>>, %arg3: memref<64x128xbf16, #tpu.memory_space<vmem>>, %arg4: memref<1x128xf32, #tpu.memory_space<vmem>>, %arg5: memref<256x128xf32, #tpu.memory_space<vmem>>) attributes {dimension_semantics = [#tpu.dimension_semantics<parallel>, #tpu.dimension_semantics<parallel>], iteration_bounds = array<i64: 8, 1>, scalar_prefetch = 0 : i64, scratch_operands = 0 : i64, tpu.core_type = #tpu.core_type<tc>, window_params = [{transform_indices = @transform_0, window_bounds = array<i64: 256, 64>}, {transform_indices = @transform_1, window_bounds = array<i64: 64, 128>}, {transform_indices = @transform_2, window_bounds = array<i64: 1, 128>}, {transform_indices = @transform_3, window_bounds = array<i64: 256, 128>}]} {
    %c0 = arith.constant 0 : index
    %c0_0 = arith.constant 0 : index
    %0 = vector.load %arg2[%c0, %c0_0] : memref<256x64xbf16, #tpu.memory_space<vmem>>, vector<256x64xbf16>
    %c0_1 = arith.constant 0 : index
    %c0_2 = arith.constant 0 : index
    %1 = vector.load %arg3[%c0_1, %c0_2] : memref<64x128xbf16, #tpu.memory_space<vmem>>, vector<64x128xbf16>
    %cst = arith.constant dense<0.000000e+00> : vector<256x128xf32>
    %2 = tpu.matmul %0, %1, %cst {dimension_numbers = #tpu.dot_dimension_numbers<[1], [0], [0], [1], [0, 0, 1, 1], [], []>} : vector<256x64xbf16>, vector<64x128xbf16>, vector<256x128xf32> -> vector<256x128xf32>
    %c0_3 = arith.constant 0 : index
    %c0_4 = arith.constant 0 : index
    %3 = vector.load %arg4[%c0_3, %c0_4] : memref<1x128xf32, #tpu.memory_space<vmem>>, vector<1x128xf32>
    %4 = vector.broadcast %3 : vector<1x128xf32> to vector<256x128xf32>
    %5 = arith.addf %2, %4 : vector<256x128xf32>
    %c0_5 = arith.constant 0 : index
    %c0_6 = arith.constant 0 : index
    %6 = vector.load %arg5[%c0_5, %c0_6] : memref<256x128xf32, #tpu.memory_space<vmem>>, vector<256x128xf32>
    tpu.vector_store %arg5[%c0_5, %c0_6], %5 {strides = array<i32>} : memref<256x128xf32, #tpu.memory_space<vmem>>, vector<256x128xf32>,
    return
  }
  func.func @transform_0(%arg0: i32, %arg1: i32) -> (i32, i32) {
    %c0_i32 = arith.constant 0 : i32
    %c0_i32_0 = arith.constant 0 : i32
    return %arg0, %c0_i32 : i32, i32
  }
  func.func @transform_1(%arg0: i32, %arg1: i32) -> (i32, i32) {
    %c0_i32 = arith.constant 0 : i32
    %c0_i32_0 = arith.constant 0 : i32
    return %c0_i32, %arg1 : i32, i32
  }
  func.func @transform_2(%arg0: i32, %arg1: i32) -> (i32, i32) {
    %c0_i32 = arith.constant 0 : i32
    %c0_i32_0 = arith.constant 0 : i32
    return %c0_i32, %arg1 : i32, i32
  }
  func.func @transform_3(%arg0: i32, %arg1: i32) -> (i32, i32) {
    %c0_i32 = arith.constant 0 : i32
    return %arg0, %arg1 : i32, i32
  }
}

</mosaic_0001>

<bundles_post_ra>
// kernel: resnet_unet_forward.7
= control target key start
LH: loop header
LB: loop body
LE: loop exit
PB: predicated region body
PF: predicated region fallthrough
CT: control target
= control target key end

     0   :  { %s983_s12 = smov 0   ;;  %s985_s13 = smov 0   ;;  %s1118_s0 = inlined_call_operand.vmem [shape: bf16[2048,32], index: 0, kind: input, shape index: {}]   ;;  %s1119_s1 = inlined_call_operand.vmem [shape: bf16[32,128], index: 1, kind: input, shape index: {}]   ;;  %s1120_s2 = inlined_call_operand.vmem [shape: f32[1,128], index: 2, kind: input, shape index: {}]   ;;  %s1121_s3 = inlined_call_operand.vmem [shape: bf16[2048,128], index: 3, kind: output, shape index: {}]  }
   0x1   :  { %s987_s14 = smov 0  }
   0x2 LB: > { %s25_s15 = sadd.s32 1, %s957_s13  ;;  %p700_p0 = scmp.ge.s32.totalorder %s961_s14, 1  ;;  %s961_s14 = sphi %s987_s14, %s13_s14   ;;  %s957_s13 = sphi %s985_s13, %s1123_s13   ;;  %s953_s12 = sphi %s983_s12, %s1122_s12  }
   0x3   : > { %p27_p1 = scmp.ge.s32.totalorder %s25_s15, 8  ;;  %p169_p2 = scmp.lt.s32.totalorder %s961_s14, 9 }
   0x5   : > { %s1125_s15 = smov (%p27_p1, %s25_s15), 0  ;;  %p170_p3 = pnand %p700_p0, %p169_p2 }
   0x6   : > { %s701_s18 = sshll.u32 (!%p170_p3), %s953_s12, 5 }
   0x7   : > { %173 = sbr.rel (%p170_p3) target bundleno = 217 (0xd9), region = 32  ;;  %p204_p4 = scmp.lt.s32.totalorder (!%p170_p3), %s701_s18, 255 }
   0xc   : > { %v812_v0 = vld [vmem:[%s1119_s1 + $0x8] sm:$0xff]  ;;  %v811_v1 = vld [vmem:[%s1119_s1] sm:$0xff]  ;;  %s1127_s18 = smov (!%p204_p4, %s701_s18), 255  ;;  %vm358_vm0 = vcmask 261120  }
   0xd   : > { %413 = vmatpush.bf16.msra.mxu0 %v812_v0  ;;  %908 = vmatpush.bf16.msra.mxu1 %v812_v0  ;;  %s702_s21 = sshll.u32 %s1127_s18, 2  ;;  %v1052_v20 = vld [vmem:[%s1120_s2] ss:$0 sm:$0xff] }
   0xe   : > { %909 = vmatpush.bf16.msra.mxu2 %v812_v0  ;;  %910 = vmatpush.bf16.msra.mxu3 %v812_v0  ;;  %s1015_s24 = scalar_lea.vmem %s1118_s0, %s702_s21  ;;  %s1063_s29 = scalar_lea.vmem %s1121_s3, %s702_s21 }
   0xf   : > { %v795_v2 = vld [vmem:[%s1015_s24] sm:$0xff]  ;;  %v796_v6 = vld [vmem:[%s1015_s24 + $0x8] sm:$0xff]  ;;  %v797_v10 = vld [vmem:[%s1015_s24 + $0x10] sm:$0xff] }
  0x10   : > { %v799_v3 = vld [vmem:[%s1015_s24 + $0x20] sm:$0xff]  ;;  %v800_v7 = vld [vmem:[%s1015_s24 + $0x28] sm:$0xff]  ;;  %v801_v11 = vld [vmem:[%s1015_s24 + $0x30] sm:$0xff] }
  0x11   : > { %414 = vmatpush.bf16.msra.mxu0 %v811_v1  ;;  %911 = vmatpush.bf16.msra.mxu1 %v811_v1  ;;  %v803_v4 = vld [vmem:[%s1015_s24 + $0x40] sm:$0xff]  ;;  %v804_v8 = vld [vmem:[%s1015_s24 + $0x48] sm:$0xff]  ;;  %v805_v12 = vld [vmem:[%s1015_s24 + $0x50] sm:$0xff] }
  0x12   : > { %912 = vmatpush.bf16.msra.mxu2 %v811_v1  ;;  %913 = vmatpush.bf16.msra.mxu3 %v811_v1  ;;  %v807_v5 = vld [vmem:[%s1015_s24 + $0x60] sm:$0xff]  ;;  %v808_v9 = vld [vmem:[%s1015_s24 + $0x68] sm:$0xff]  ;;  %v809_v13 = vld [vmem:[%s1015_s24 + $0x70] sm:$0xff] }
  0x13   : > { %v798_v14 = vld [vmem:[%s1015_s24 + $0x18] sm:$0xff] }
  0x14   : > { %777 = vmatmul.msk.bf16.vlgmr.msra.gmra.mxu0 %vm358_vm0, %v795_v2  ;;  %781 = vmatmul.msk.bf16.vlgmr.msra.gmra.mxu1 %vm358_vm0, %v799_v3  ;;  %v802_v15 = vld [vmem:[%s1015_s24 + $0x38] sm:$0xff] }
  0x15   : > { %785 = vmatmul.msk.bf16.vlgmr.msra.gmra.mxu2 %vm358_vm0, %v803_v4  ;;  %789 = vmatmul.msk.bf16.vlgmr.msra.gmra.mxu3 %vm358_vm0, %v807_v5  ;;  %v806_v16 = vld [vmem:[%s1015_s24 + $0x58] sm:$0xff] }
  0x16   : > { %v810_v17 = vld [vmem:[%s1015_s24 + $0x78] sm:$0xff] }
  0x24   : > { %778 = vmatmul.msk.bf16.gmra.mxu0 %vm358_vm0, %v796_v6  ;;  %782 = vmatmul.msk.bf16.gmra.mxu1 %vm358_vm0, %v800_v7 }
  0x25   : > { %786 = vmatmul.msk.bf16.gmra.mxu2 %vm358_vm0, %v804_v8  ;;  %790 = vmatmul.msk.bf16.gmra.mxu3 %vm358_vm0, %v808_v9 }
  0x34   : > { %779 = vmatmul.msk.bf16.gmra.mxu0 %vm358_vm0, %v797_v10  ;;  %783 = vmatmul.msk.bf16.gmra.mxu1 %vm358_vm0, %v801_v11 }
  0x35   : > { %787 = vmatmul.msk.bf16.gmra.mxu2 %vm358_vm0, %v805_v12  ;;  %791 = vmatmul.msk.bf16.gmra.mxu3 %vm358_vm0, %v809_v13 }
  0x44   : > { %780 = vmatmul.msk.bf16.gmra.mxu0 %vm358_vm0, %v798_v14  ;;  %784 = vmatmul.msk.bf16.gmra.mxu1 %vm358_vm0, %v802_v15 }
  0x45   : > { %788 = vmatmul.msk.bf16.gmra.mxu2 %vm358_vm0, %v806_v16  ;;  %792 = vmatmul.msk.bf16.gmra.mxu3 %vm358_vm0, %v810_v17 }
  0x91   : > { %v416_v18 = vpop.f32.mrf.mxu0  ;;  %v436_v19 = vpop.f32.mrf.mxu1 }
  0x92   : > { %v417_v21 = vadd.f32 %v1052_v20, %v416_v18  ;;  %v437_v22 = vadd.f32 %v1052_v20, %v436_v19 }
  0x94   : > { %v496_v29 = vmax.f32 %v417_v21, 0.0  ;;  %v504_v30 = vmax.f32 %v437_v22, 0.0 }
  0x98   : > { %v456_v23 = vpop.f32.mrf.mxu2  ;;  %v476_v24 = vpop.f32.mrf.mxu3 }
  0x99   : > { %v418_v25 = vpop.f32.mrf.mxu0  ;;  %v438_v26 = vpop.f32.mrf.mxu1  ;;  %v457_v35 = vadd.f32 %v1052_v20, %v456_v23  ;;  %v477_v36 = vadd.f32 %v1052_v20, %v476_v24 }
  0x9a   : > { %v419_v27 = vadd.f32 %v1052_v20, %v418_v25  ;;  %v439_v28 = vadd.f32 %v1052_v20, %v438_v26 }
  0x9b   : > { %v512_v43 = vmax.f32 %v457_v35, 0.0  ;;  %v520_v44 = vmax.f32 %v477_v36, 0.0 }
  0x9c   : > { %v497_v31 = vmax.f32 %v419_v27, 0.0  ;;  %v505_v32 = vmax.f32 %v439_v28, 0.0 }
  0x9e   : > { %v816_v33 = vpack.c.bf16 %v497_v31, %v496_v29  ;;  %v836_v34 = vpack.c.bf16 %v505_v32, %v504_v30 }
  0xa0   : > { %817 = vst [vmem:[%s1063_s29] sm:$0xff] %v816_v33   ;;  %v458_v37 = vpop.f32.mrf.mxu2  ;;  %v478_v38 = vpop.f32.mrf.mxu3 }
  0xa1   : > { %896 = vst [vmem:[%s1063_s29 + $0x20] sm:$0xff] %v836_v34   ;;  %v459_v39 = vadd.f32 %v1052_v20, %v458_v37  ;;  %v479_v40 = vadd.f32 %v1052_v20, %v478_v38  ;;  %v421_v41 = vpop.f32.mrf.mxu0  ;;  %v441_v42 = vpop.f32.mrf.mxu1 }
  0xa2   : > { %v422_v49 = vadd.f32 %v1052_v20, %v421_v41  ;;  %v442_v50 = vadd.f32 %v1052_v20, %v441_v42 }
  0xa3   : > { %v513_v45 = vmax.f32 %v459_v39, 0.0  ;;  %v521_v46 = vmax.f32 %v479_v40, 0.0 }
  0xa4   : > { %v498_v57 = vmax.f32 %v422_v49, 0.0  ;;  %v506_v58 = vmax.f32 %v442_v50, 0.0 }
  0xa5   : > { %v856_v47 = vpack.c.bf16 %v513_v45, %v512_v43  ;;  %v876_v48 = vpack.c.bf16 %v521_v46, %v520_v44 }
  0xa7   : > { %900 = vst [vmem:[%s1063_s29 + $0x40] sm:$0xff] %v856_v47  }
  0xa8   : > { %904 = vst [vmem:[%s1063_s29 + $0x60] sm:$0xff] %v876_v48   ;;  %v461_v51 = vpop.f32.mrf.mxu2  ;;  %v481_v52 = vpop.f32.mrf.mxu3 }
  0xa9   : > { %v423_v53 = vpop.f32.mrf.mxu0  ;;  %v443_v54 = vpop.f32.mrf.mxu1  ;;  %v462_v63 = vadd.f32 %v1052_v20, %v461_v51  ;;  %v482_v0 = vadd.f32 %v1052_v20, %v481_v52 }
  0xaa   : > { %v424_v55 = vadd.f32 %v1052_v20, %v423_v53  ;;  %v444_v56 = vadd.f32 %v1052_v20, %v443_v54 }
  0xab   : > { %v514_v7 = vmax.f32 %v462_v63, 0.0  ;;  %v522_v8 = vmax.f32 %v482_v0, 0.0 }
  0xac   : > { %v499_v59 = vmax.f32 %v424_v55, 0.0  ;;  %v507_v60 = vmax.f32 %v444_v56, 0.0 }
  0xae   : > { %v821_v61 = vpack.c.bf16 %v499_v59, %v498_v57  ;;  %v841_v62 = vpack.c.bf16 %v507_v60, %v506_v58 }
  0xb0   : > { %893 = vst [vmem:[%s1063_s29 + $0x8] sm:$0xff] %v821_v61   ;;  %v463_v1 = vpop.f32.mrf.mxu2  ;;  %v483_v2 = vpop.f32.mrf.mxu3 }
  0xb1   : > { %897 = vst [vmem:[%s1063_s29 + $0x28] sm:$0xff] %v841_v62   ;;  %v464_v3 = vadd.f32 %v1052_v20, %v463_v1  ;;  %v484_v4 = vadd.f32 %v1052_v20, %v483_v2  ;;  %v426_v5 = vpop.f32.mrf.mxu0  ;;  %v446_v6 = vpop.f32.mrf.mxu1 }
  0xb2   : > { %v427_v13 = vadd.f32 %v1052_v20, %v426_v5  ;;  %v447_v14 = vadd.f32 %v1052_v20, %v446_v6 }
  0xb3   : > { %v515_v9 = vmax.f32 %v464_v3, 0.0  ;;  %v523_v10 = vmax.f32 %v484_v4, 0.0 }
  0xb4   : > { %v500_v22 = vmax.f32 %v427_v13, 0.0  ;;  %v508_v23 = vmax.f32 %v447_v14, 0.0 }
  0xb5   : > { %v861_v11 = vpack.c.bf16 %v515_v9, %v514_v7  ;;  %v881_v12 = vpack.c.bf16 %v523_v10, %v522_v8 }
  0xb7   : > { %901 = vst [vmem:[%s1063_s29 + $0x48] sm:$0xff] %v861_v11  }
  0xb8   : > { %905 = vst [vmem:[%s1063_s29 + $0x68] sm:$0xff] %v881_v12   ;;  %v466_v15 = vpop.f32.mrf.mxu2  ;;  %v486_v16 = vpop.f32.mrf.mxu3 }
  0xb9   : > { %v428_v17 = vpop.f32.mrf.mxu0  ;;  %v448_v18 = vpop.f32.mrf.mxu1  ;;  %v467_v28 = vadd.f32 %v1052_v20, %v466_v15  ;;  %v487_v29 = vadd.f32 %v1052_v20, %v486_v16 }
  0xba   : > { %v429_v19 = vadd.f32 %v1052_v20, %v428_v17  ;;  %v449_v21 = vadd.f32 %v1052_v20, %v448_v18 }
  0xbb   : > { %v516_v36 = vmax.f32 %v467_v28, 0.0  ;;  %v524_v37 = vmax.f32 %v487_v29, 0.0 }
  0xbc   : > { %v501_v24 = vmax.f32 %v429_v19, 0.0  ;;  %v509_v25 = vmax.f32 %v449_v21, 0.0 }
  0xbe   : > { %v826_v26 = vpack.c.bf16 %v501_v24, %v500_v22  ;;  %v846_v27 = vpack.c.bf16 %v509_v25, %v508_v23 }
  0xc0   : > { %894 = vst [vmem:[%s1063_s29 + $0x10] sm:$0xff] %v826_v26   ;;  %v468_v30 = vpop.f32.mrf.mxu2  ;;  %v488_v31 = vpop.f32.mrf.mxu3 }
  0xc1   : > { %898 = vst [vmem:[%s1063_s29 + $0x30] sm:$0xff] %v846_v27   ;;  %v469_v32 = vadd.f32 %v1052_v20, %v468_v30  ;;  %v489_v33 = vadd.f32 %v1052_v20, %v488_v31  ;;  %v431_v34 = vpop.f32.mrf.mxu0  ;;  %v451_v35 = vpop.f32.mrf.mxu1 }
  0xc2   : > { %v432_v42 = vadd.f32 %v1052_v20, %v431_v34  ;;  %v452_v43 = vadd.f32 %v1052_v20, %v451_v35 }
  0xc3   : > { %v517_v38 = vmax.f32 %v469_v32, 0.0  ;;  %v525_v39 = vmax.f32 %v489_v33, 0.0 }
  0xc4   : > { %v502_v50 = vmax.f32 %v432_v42, 0.0  ;;  %v510_v51 = vmax.f32 %v452_v43, 0.0 }
  0xc5   : > { %v866_v40 = vpack.c.bf16 %v517_v38, %v516_v36  ;;  %v886_v41 = vpack.c.bf16 %v525_v39, %v524_v37 }
  0xc7   : > { %902 = vst [vmem:[%s1063_s29 + $0x50] sm:$0xff] %v866_v40  }
  0xc8   : > { %906 = vst [vmem:[%s1063_s29 + $0x70] sm:$0xff] %v886_v41   ;;  %v471_v44 = vpop.f32.mrf.mxu2  ;;  %v491_v45 = vpop.f32.mrf.mxu3 }
  0xc9   : > { %v433_v46 = vpop.f32.mrf.mxu0  ;;  %v453_v47 = vpop.f32.mrf.mxu1  ;;  %v472_v56 = vadd.f32 %v1052_v20, %v471_v44  ;;  %v492_v57 = vadd.f32 %v1052_v20, %v491_v45 }
  0xca   : > { %v434_v48 = vadd.f32 %v1052_v20, %v433_v46  ;;  %v454_v49 = vadd.f32 %v1052_v20, %v453_v47 }
  0xcb   : > { %v518_v62 = vmax.f32 %v472_v56, 0.0  ;;  %v526_v63 = vmax.f32 %v492_v57, 0.0 }
  0xcc   : > { %v503_v52 = vmax.f32 %v434_v48, 0.0  ;;  %v511_v53 = vmax.f32 %v454_v49, 0.0 }
  0xce   : > { %v831_v54 = vpack.c.bf16 %v503_v52, %v502_v50  ;;  %v851_v55 = vpack.c.bf16 %v511_v53, %v510_v51 }
  0xd0   : > { %895 = vst [vmem:[%s1063_s29 + $0x18] sm:$0xff] %v831_v54   ;;  %v473_v58 = vpop.f32.mrf.mxu2  ;;  %v493_v59 = vpop.f32.mrf.mxu3 }
  0xd1   : > { %899 = vst [vmem:[%s1063_s29 + $0x38] sm:$0xff] %v851_v55   ;;  %v474_v60 = vadd.f32 %v1052_v20, %v473_v58  ;;  %v494_v61 = vadd.f32 %v1052_v20, %v493_v59 }
  0xd3   : > { %v519_v0 = vmax.f32 %v474_v60, 0.0  ;;  %v527_v1 = vmax.f32 %v494_v61, 0.0 }
  0xd5   : > { %v871_v2 = vpack.c.bf16 %v519_v0, %v518_v62  ;;  %v891_v3 = vpack.c.bf16 %v527_v1, %v526_v63 }
  0xd7   : > { %903 = vst [vmem:[%s1063_s29 + $0x58] sm:$0xff] %v871_v2  }
  0xd8   : > { %907 = vst [vmem:[%s1063_s29 + $0x78] sm:$0xff] %v891_v3  }
  0xd9 PF: > { %s13_s14 = sadd.s32 1, %s961_s14   ;;  %s1122_s12 = smov %s957_s13 }
  0xda   : > { %p10_p5 = scmp.ge.s32.totalorder %s13_s14, 10   ;;  %s1123_s13 = smov %s1125_s15 }
  0xdc   :  { %12 = sbr.rel (!%p10_p5) target bundleno = 2 (0x2), region = 68 }

// kernel: resnet_unet_forward.8
= control target key start
LH: loop header
LB: loop body
LE: loop exit
PB: predicated region body
PF: predicated region fallthrough
CT: control target
= control target key end

     0   :  { %s2507_s12 = smov 0   ;;  %s2509_s13 = smov 0   ;;  %s2984_s0 = inlined_call_operand.vmem [shape: bf16[2048,576], index: 0, kind: input, shape index: {}]   ;;  %s2985_s1 = inlined_call_operand.vmem [shape: bf16[576,128], index: 1, kind: input, shape index: {}]   ;;  %s2986_s2 = inlined_call_operand.vmem [shape: f32[1,128], index: 2, kind: input, shape index: {}]   ;;  %s2987_s3 = inlined_call_operand.vmem [shape: bf16[2048,128], index: 3, kind: output, shape index: {}]  }
   0x1   :  { %s2511_s14 = smov 0  }
   0x2 LB: > { %s25_s15 = sadd.s32 1, %s2481_s13  ;;  %p1715_p0 = scmp.ge.s32.totalorder %s2485_s14, 1  ;;  %s2485_s14 = sphi %s2511_s14, %s13_s14   ;;  %s2481_s13 = sphi %s2509_s13, %s2989_s13   ;;  %s2477_s12 = sphi %s2507_s12, %s2988_s12  }
   0x3   : > { %p27_p1 = scmp.ge.s32.totalorder %s25_s15, 8  ;;  %p170_p2 = scmp.lt.s32.totalorder %s2485_s14, 9 }
   0x5   : > { %s2991_s15 = smov (%p27_p1, %s25_s15), 0  ;;  %p171_p3 = pnand %p1715_p0, %p170_p2 }
   0x6   : > { %s1716_s22 = sshll.u32 (!%p171_p3), %s2477_s12, 5 }
   0x7   : > { %174 = sbr.rel (%p171_p3) target bundleno = 499 (0x1f3), region = 32  ;;  %p206_p4 = scmp.lt.s32.totalorder (!%p171_p3), %s1716_s22, 255 }
   0xc   : > { %v2289_v0 = vld [vmem:[%s2985_s1 + $0x38] sm:$0xff]  ;;  %v2288_v1 = vld [vmem:[%s2985_s1 + $0x30] sm:$0xff]  ;;  %v2287_v2 = vld [vmem:[%s2985_s1 + $0x28] sm:$0xff]  ;;  %s2993_s22 = smov (!%p206_p4, %s1716_s22), 255  ;;  %vm1017_vm0 = vcmask 523264  }
   0xd   : > { %2413 = vmatpush.bf16.msra.mxu1 %v2289_v0  ;;  %2414 = vmatpush.bf16.msra.mxu2 %v2289_v0  ;;  %v2286_v3 = vld [vmem:[%s2985_s1 + $0x20] sm:$0xff]  ;;  %v2285_v4 = vld [vmem:[%s2985_s1 + $0x18] sm:$0xff]  ;;  %v2284_v5 = vld [vmem:[%s2985_s1 + $0x10] sm:$0xff]  ;;  %s2437_s29 = smul.u32 20, %s2993_s22  ;;  %s1719_s28 = sshll.u32 %s2993_s22, 2 }
   0xe   : > { %2415 = vmatpush.bf16.msra.mxu3 %v2289_v0  ;;  %1066 = vmatpush.bf16.msra.mxu0 %v2289_v0  ;;  %v2283_v6 = vld [vmem:[%s2985_s1 + $0x8] sm:$0xff]  ;;  %v2282_v7 = vld [vmem:[%s2985_s1] sm:$0xff]  ;;  %v2305_v16 = vld [vmem:[%s2985_s1 + $0xb8] sm:$0xff]  ;;  %s2869_s22 = scalar_lea.vmem %s2987_s3, %s1719_s28 }
   0xf   : > { %s2555_s7 = scalar_lea.vmem %s2984_s0, %s2437_s29  ;;  %v2313_v17 = vld [vmem:[%s2985_s1 + $0xf8] sm:$0xff]  ;;  %v2304_v24 = vld [vmem:[%s2985_s1 + $0xb0] sm:$0xff]  ;;  %v2303_v28 = vld [vmem:[%s2985_s1 + $0xa8] sm:$0xff] }
  0x10   : > { %v1802_v8 = vld [vmem:[%s2555_s7 + $0xa0] sm:$0xf]  ;;  %v2224_v9 = vld [vmem:[%s2555_s7 + $0xb0] sm:$0xf0]  ;;  %v2297_v22 = vld [vmem:[%s2985_s1 + $0x78] sm:$0xff] }
  0x11   : > { %2416 = vmatpush.bf16.msra.mxu1 %v2288_v1  ;;  %2417 = vmatpush.bf16.msra.mxu2 %v2288_v1  ;;  %v1882_v10 = vld [vmem:[%s2555_s7 + $0x140] sm:$0xf]  ;;  %v2244_v11 = vld [vmem:[%s2555_s7 + $0x150] sm:$0xf0]  ;;  %v1803_v18 = vor.u32 %v2224_v9, %v1802_v8  ;;  %v2317_v23 = vld [vmem:[%s2985_s1 + $0x118] sm:$0xff] }
  0x12   : > { %2418 = vmatpush.bf16.msra.mxu3 %v2288_v1  ;;  %1067 = vmatpush.bf16.msra.mxu0 %v2288_v1  ;;  %v1962_v12 = vld [vmem:[%s2555_s7 + $0x1e0] sm:$0xf]  ;;  %v2264_v13 = vld [vmem:[%s2555_s7 + $0x1f0] sm:$0xf0]  ;;  %v1883_v19 = vor.u32 %v2244_v11, %v1882_v10  ;;  %v2311_v29 = vld [vmem:[%s2985_s1 + $0xe8] sm:$0xff] }
  0x13   : > { %v1722_v14 = vld [vmem:[%s2555_s7] sm:$0xf]  ;;  %v2204_v15 = vld [vmem:[%s2555_s7 + $0x10] sm:$0xf0]  ;;  %v1963_v20 = vor.u32 %v2264_v13, %v1962_v12  ;;  %v2295_v30 = vld [vmem:[%s2985_s1 + $0x68] sm:$0xff] }
  0x14   : > { %v1723_v21 = vor.u32 %v2204_v15, %v1722_v14  ;;  %v2312_v25 = vld [vmem:[%s2985_s1 + $0xf0] sm:$0xff]  ;;  %v2315_v31 = vld [vmem:[%s2985_s1 + $0x108] sm:$0xff]  ;;  %v2302_v32 = vld [vmem:[%s2985_s1 + $0xa0] sm:$0xff] }
  0x15   : > { %2419 = vmatpush.bf16.msra.mxu1 %v2287_v2  ;;  %2420 = vmatpush.bf16.msra.mxu2 %v2287_v2  ;;  %v2296_v26 = vld [vmem:[%s2985_s1 + $0x70] sm:$0xff]  ;;  %v2310_v33 = vld [vmem:[%s2985_s1 + $0xe0] sm:$0xff]  ;;  %v1822_v34 = vld [vmem:[%s2555_s7 + $0xc8] sm:$0xf] }
  0x16   : > { %2421 = vmatpush.bf16.msra.mxu3 %v2287_v2  ;;  %1068 = vmatpush.bf16.msra.mxu0 %v2287_v2  ;;  %v2316_v27 = vld [vmem:[%s2985_s1 + $0x110] sm:$0xff]  ;;  %v2229_v35 = vld [vmem:[%s2555_s7 + $0xd8] sm:$0xf0]  ;;  %v1902_v36 = vld [vmem:[%s2555_s7 + $0x168] sm:$0xf] }
  0x17   : > { %v2249_v37 = vld [vmem:[%s2555_s7 + $0x178] sm:$0xf0]  ;;  %v1982_v38 = vld [vmem:[%s2555_s7 + $0x208] sm:$0xf]  ;;  %v2294_v42 = vld [vmem:[%s2985_s1 + $0x60] sm:$0xff]  ;;  %v1823_v45 = vor.u32 %v2229_v35, %v1822_v34 }
  0x18   : > { %v2269_v39 = vld [vmem:[%s2555_s7 + $0x218] sm:$0xf0]  ;;  %v1742_v40 = vld [vmem:[%s2555_s7 + $0x28] sm:$0xf]  ;;  %v1903_v46 = vor.u32 %v2249_v37, %v1902_v36  ;;  %v2300_v50 = vld [vmem:[%s2985_s1 + $0x90] sm:$0xff] }
  0x19   : > { %2422 = vmatpush.bf16.msra.mxu1 %v2286_v3  ;;  %2423 = vmatpush.bf16.msra.mxu2 %v2286_v3  ;;  %v2209_v41 = vld [vmem:[%s2555_s7 + $0x38] sm:$0xf0]  ;;  %v1983_v47 = vor.u32 %v2269_v39, %v1982_v38  ;;  %v2308_v51 = vld [vmem:[%s2985_s1 + $0xd0] sm:$0xff]  ;;  %v2314_v53 = vld [vmem:[%s2985_s1 + $0x100] sm:$0xff] }
  0x1a   : > { %2424 = vmatpush.bf16.msra.mxu3 %v2286_v3  ;;  %1069 = vmatpush.bf16.msra.mxu0 %v2286_v3  ;;  %v2301_v43 = vld [vmem:[%s2985_s1 + $0x98] sm:$0xff]  ;;  %v1743_v48 = vor.u32 %v2209_v41, %v1742_v40  ;;  %v2292_v52 = vld [vmem:[%s2985_s1 + $0x50] sm:$0xff]  ;;  %v2299_v54 = vld [vmem:[%s2985_s1 + $0x88] sm:$0xff] }
  0x1b   : > { %v2309_v44 = vld [vmem:[%s2985_s1 + $0xd8] sm:$0xff]  ;;  %v2307_v55 = vld [vmem:[%s2985_s1 + $0xc8] sm:$0xff]  ;;  %v2298_v57 = vld [vmem:[%s2985_s1 + $0x80] sm:$0xff] }
  0x1c   : > { %v2293_v49 = vld [vmem:[%s2985_s1 + $0x58] sm:$0xff]  ;;  %v2291_v56 = vld [vmem:[%s2985_s1 + $0x48] sm:$0xff]  ;;  %v2306_v58 = vld [vmem:[%s2985_s1 + $0xc0] sm:$0xff] }
  0x1d   : > { %2425 = vmatpush.bf16.msra.mxu1 %v2285_v4  ;;  %2426 = vmatpush.bf16.msra.mxu2 %v2285_v4  ;;  %v1842_v59 = vld [vmem:[%s2555_s7 + $0xf0] sm:$0xf]  ;;  %v2234_v60 = vld [vmem:[%s2555_s7 + $0x100] sm:$0xf0]  ;;  %v1862_v8 = vld [vmem:[%s2555_s7 + $0x118] sm:$0xf] }
  0x1e   : > { %2427 = vmatpush.bf16.msra.mxu3 %v2285_v4  ;;  %1070 = vmatpush.bf16.msra.mxu0 %v2285_v4  ;;  %v1922_v61 = vld [vmem:[%s2555_s7 + $0x190] sm:$0xf]  ;;  %v2254_v62 = vld [vmem:[%s2555_s7 + $0x1a0] sm:$0xf0]  ;;  %v1843_v4 = vor.u32 %v2234_v60, %v1842_v59  ;;  %v2239_v9 = vld [vmem:[%s2555_s7 + $0x128] sm:$0xf0] }
  0x1f   : > { %v2002_v63 = vld [vmem:[%s2555_s7 + $0x230] sm:$0xf]  ;;  %v2274_v0 = vld [vmem:[%s2555_s7 + $0x240] sm:$0xf0]  ;;  %v1942_v10 = vld [vmem:[%s2555_s7 + $0x1b8] sm:$0xf] }
  0x20   : > { %v1762_v1 = vld [vmem:[%s2555_s7 + $0x50] sm:$0xf]  ;;  %v2214_v2 = vld [vmem:[%s2555_s7 + $0x60] sm:$0xf0]  ;;  %v2259_v11 = vld [vmem:[%s2555_s7 + $0x1c8] sm:$0xf0] }
  0x21   : > { %2428 = vmatpush.bf16.msra.mxu1 %v2284_v5  ;;  %2429 = vmatpush.bf16.msra.mxu2 %v2284_v5  ;;  %v2290_v3 = vld [vmem:[%s2985_s1 + $0x40] sm:$0xff]  ;;  %v2022_v12 = vld [vmem:[%s2555_s7 + $0x258] sm:$0xf]  ;;  %v2279_v13 = vld [vmem:[%s2555_s7 + $0x268] sm:$0xf0] }
  0x22   : > { %2430 = vmatpush.bf16.msra.mxu3 %v2284_v5  ;;  %1071 = vmatpush.bf16.msra.mxu0 %v2284_v5  ;;  %v1923_v5 = vor.u32 %v2254_v62, %v1922_v61  ;;  %v1782_v14 = vld [vmem:[%s2555_s7 + $0x78] sm:$0xf]  ;;  %v2219_v15 = vld [vmem:[%s2555_s7 + $0x88] sm:$0xf0]  ;;  %v1750_v34 = vld [vmem:[%s2555_s7 + $0x30] sm:$0xf] }
  0x23   : > { %v2210_v35 = vld [vmem:[%s2555_s7 + $0x40] sm:$0xf0]  ;;  %v2208_v36 = vld [vmem:[%s2555_s7 + $0x34] sm:$0xf]  ;;  %v1752_v37 = vld [vmem:[%s2555_s7 + $0x44] sm:$0xf0] }
  0x24   : > { %v1758_v38 = vld [vmem:[%s2555_s7 + $0x38] sm:$0xf]  ;;  %v2211_v39 = vld [vmem:[%s2555_s7 + $0x48] sm:$0xf0]  ;;  %v1751_v41 = vor.u32 %v2210_v35, %v1750_v34  ;;  %v2220_v59 = vld [vmem:[%s2555_s7 + $0x90] sm:$0xf0] }
  0x25   : > { %2431 = vmatpush.bf16.msra.mxu1 %v2283_v6  ;;  %2432 = vmatpush.bf16.msra.mxu2 %v2283_v6  ;;  %v2218_v60 = vld [vmem:[%s2555_s7 + $0x84] sm:$0xf]  ;;  %v1792_v61 = vld [vmem:[%s2555_s7 + $0x94] sm:$0xf0]  ;;  %v1798_v62 = vld [vmem:[%s2555_s7 + $0x88] sm:$0xf] }
  0x26   : > { %2433 = vmatpush.bf16.msra.mxu3 %v2283_v6  ;;  %1072 = vmatpush.bf16.msra.mxu0 %v2283_v6  ;;  %v2003_v6 = vor.u32 %v2274_v0, %v2002_v63  ;;  %v2221_v63 = vld [vmem:[%s2555_s7 + $0x98] sm:$0xf0]  ;;  %v2231_v34 = vld [vmem:[%s2555_s7 + $0xe8] sm:$0xf0] }
  0x29   : > { %2434 = vmatpush.bf16.msra.mxu1 %v2282_v7  ;;  %2435 = vmatpush.bf16.msra.mxu2 %v2282_v7 }
  0x2a   : > { %2436 = vmatpush.bf16.msra.mxu3 %v2282_v7  ;;  %1073 = vmatpush.bf16.msra.mxu0 %v2282_v7  ;;  %v1763_v7 = vor.u32 %v2214_v2, %v1762_v1  ;;  %v1795_v2 = vor.u32 %v2218_v60, %v1792_v61  ;;  %v2236_v60 = vld [vmem:[%s2555_s7 + $0x110] sm:$0xf0] }
  0x2c   : > { %1094 = vmatmul.bf16.vlgmr.msra.gmra.mxu1 %v1803_v18  ;;  %1114 = vmatmul.bf16.vlgmr.msra.gmra.mxu2 %v1883_v19  ;;  %v2023_v18 = vor.u32 %v2279_v13, %v2022_v12  ;;  %v1783_v19 = vor.u32 %v2219_v15, %v1782_v14  ;;  %v2226_v12 = vld [vmem:[%s2555_s7 + $0xc0] sm:$0xf0] }
  0x2d   : > { %1244 = vmatpush.bf16.msrb.mxu2 %v2305_v16  ;;  %1134 = vmatmul.bf16.vlgmr.msra.gmra.mxu3 %v1963_v20  ;;  %v1863_v16 = vor.u32 %v2239_v9, %v1862_v8  ;;  %v2202_v20 = vld [vmem:[%s2555_s7 + $0x4] sm:$0xf]  ;;  %v2225_v8 = vld [vmem:[%s2555_s7 + $0xb8] sm:$0xf0]  ;;  %v2223_v9 = vld [vmem:[%s2555_s7 + $0xac] sm:$0xf] }
  0x2e   : > { %1333 = vmatpush.bf16.msrb.mxu3 %v2313_v17  ;;  %1074 = vmatmul.bf16.vlgmr.msra.gmra.mxu0 %v1723_v21  ;;  %v1943_v17 = vor.u32 %v2259_v11, %v1942_v10  ;;  %v1724_v21 = vld [vmem:[%s2555_s7 + $0x14] sm:$0xf0]  ;;  %v1812_v10 = vld [vmem:[%s2555_s7 + $0xbc] sm:$0xf0]  ;;  %v1818_v11 = vld [vmem:[%s2555_s7 + $0xb0] sm:$0xf] }
  0x2f   : > { %1155 = vmatpush.bf16.msrb.mxu1 %v2297_v22  ;;  %1426 = vmatpush.bf16.msrb.mxu0 %v2317_v23  ;;  %v1730_v22 = vld [vmem:[%s2555_s7 + $0x8] sm:$0xf]  ;;  %v2205_v23 = vld [vmem:[%s2555_s7 + $0x18] sm:$0xf0] }
  0x31   : > { %1245 = vmatpush.bf16.msrb.mxu2 %v2304_v24  ;;  %v2203_v24 = vld [vmem:[%s2555_s7 + $0xc] sm:$0xf] }
  0x32   : > { %1334 = vmatpush.bf16.msrb.mxu3 %v2312_v25  ;;  %v1732_v25 = vld [vmem:[%s2555_s7 + $0x1c] sm:$0xf0] }
  0x33   : > { %1156 = vmatpush.bf16.msrb.mxu1 %v2296_v26  ;;  %1427 = vmatpush.bf16.msrb.mxu0 %v2316_v27  ;;  %v1738_v26 = vld [vmem:[%s2555_s7 + $0x10] sm:$0xf]  ;;  %v2206_v27 = vld [vmem:[%s2555_s7 + $0x20] sm:$0xf0] }
  0x35   : > { %1246 = vmatpush.bf16.msrb.mxu2 %v2303_v28  ;;  %v1727_v28 = vor.u32 %v2202_v20, %v1724_v21 }
  0x36   : > { %1335 = vmatpush.bf16.msrb.mxu3 %v2311_v29  ;;  %v1731_v29 = vor.u32 %v2205_v23, %v1730_v22 }
  0x37   : > { %1157 = vmatpush.bf16.msrb.mxu1 %v2295_v30  ;;  %1428 = vmatpush.bf16.msrb.mxu0 %v2315_v31  ;;  %v1735_v30 = vor.u32 %v2203_v24, %v1732_v25  ;;  %v1739_v31 = vor.u32 %v2206_v27, %v1738_v26  ;;  %v2227_v27 = vld [vmem:[%s2555_s7 + $0xcc] sm:$0xf] }
  0x39   : > { %1247 = vmatpush.bf16.msrb.mxu2 %v2302_v32  ;;  %v2207_v32 = vld [vmem:[%s2555_s7 + $0x2c] sm:$0xf] }
  0x3a   : > { %1336 = vmatpush.bf16.msrb.mxu3 %v2310_v33  ;;  %v1744_v33 = vld [vmem:[%s2555_s7 + $0x3c] sm:$0xf0] }
  0x3b   : > { %1158 = vmatpush.bf16.msrb.mxu1 %v2294_v42  ;;  %1429 = vmatpush.bf16.msrb.mxu0 %v2314_v53  ;;  %v1747_v40 = vor.u32 %v2207_v32, %v1744_v33  ;;  %v1755_v42 = vor.u32 %v2208_v36, %v1752_v37  ;;  %v1832_v32 = vld [vmem:[%s2555_s7 + $0xe4] sm:$0xf0]  ;;  %v1838_v33 = vld [vmem:[%s2555_s7 + $0xd8] sm:$0xf] }
  0x3c   : > { %1099 = vmatmul.bf16.gmra.mxu1 %v1823_v45  ;;  %1119 = vmatmul.bf16.gmra.mxu2 %v1903_v46  ;;  %v1764_v45 = vld [vmem:[%s2555_s7 + $0x64] sm:$0xf0]  ;;  %v1770_v46 = vld [vmem:[%s2555_s7 + $0x58] sm:$0xf] }
  0x3d   : > { %1248 = vmatpush.bf16.msrb.mxu2 %v2301_v43  ;;  %1139 = vmatmul.bf16.gmra.mxu3 %v1983_v47  ;;  %v1759_v43 = vor.u32 %v2211_v39, %v1758_v38  ;;  %v2215_v47 = vld [vmem:[%s2555_s7 + $0x68] sm:$0xf0] }
  0x3e   : > { %1337 = vmatpush.bf16.msrb.mxu3 %v2309_v44  ;;  %1079 = vmatmul.bf16.gmra.mxu0 %v1743_v48  ;;  %v2212_v44 = vld [vmem:[%s2555_s7 + $0x54] sm:$0xf]  ;;  %v2213_v48 = vld [vmem:[%s2555_s7 + $0x5c] sm:$0xf]  ;;  %v1771_v53 = vor.u32 %v2215_v47, %v1770_v46 }
  0x3f   : > { %1159 = vmatpush.bf16.msrb.mxu1 %v2293_v49  ;;  %v1772_v49 = vld [vmem:[%s2555_s7 + $0x6c] sm:$0xf0] }
  0x41   : > { %1249 = vmatpush.bf16.msrb.mxu2 %v2300_v50  ;;  %v1778_v50 = vld [vmem:[%s2555_s7 + $0x60] sm:$0xf] }
  0x42   : > { %1338 = vmatpush.bf16.msrb.mxu3 %v2308_v51  ;;  %v2216_v51 = vld [vmem:[%s2555_s7 + $0x70] sm:$0xf0] }
  0x43   : > { %1160 = vmatpush.bf16.msrb.mxu1 %v2292_v52  ;;  %v1767_v52 = vor.u32 %v2212_v44, %v1764_v45 }
  0x45   : > { %1250 = vmatpush.bf16.msrb.mxu2 %v2299_v54  ;;  %v1775_v54 = vor.u32 %v2213_v48, %v1772_v49 }
  0x46   : > { %1339 = vmatpush.bf16.msrb.mxu3 %v2307_v55  ;;  %v1779_v55 = vor.u32 %v2216_v51, %v1778_v50 }
  0x47   : > { %1161 = vmatpush.bf16.msrb.mxu1 %v2291_v56  ;;  %v2217_v56 = vld [vmem:[%s2555_s7 + $0x7c] sm:$0xf] }
  0x49   : > { %1251 = vmatpush.bf16.msrb.mxu2 %v2298_v57  ;;  %v1784_v57 = vld [vmem:[%s2555_s7 + $0x8c] sm:$0xf0] }
  0x4a   : > { %1340 = vmatpush.bf16.msrb.mxu3 %v2306_v58  ;;  %v1790_v58 = vld [vmem:[%s2555_s7 + $0x80] sm:$0xf]  ;;  %v1787_v0 = vor.u32 %v2217_v56, %v1784_v57  ;;  %v2235_v56 = vld [vmem:[%s2555_s7 + $0x108] sm:$0xf0]  ;;  %v2233_v57 = vld [vmem:[%s2555_s7 + $0xfc] sm:$0xf] }
  0x4b   : > { %1162 = vmatpush.bf16.msrb.mxu1 %v2290_v3  ;;  %v1791_v1 = vor.u32 %v2220_v59, %v1790_v58  ;;  %v1799_v3 = vor.u32 %v2221_v63, %v1798_v62  ;;  %v1852_v58 = vld [vmem:[%s2555_s7 + $0x10c] sm:$0xf0]  ;;  %v1858_v59 = vld [vmem:[%s2555_s7 + $0x100] sm:$0xf] }
  0x4c   : > { %1104 = vmatmul.bf16.gmra.mxu1 %v1843_v4  ;;  %1124 = vmatmul.bf16.gmra.mxu2 %v1923_v5  ;;  %v2715_v4 = vld [vmem:[%s2986_s2] ss:$0 sm:$0xff]  ;;  %v2222_v5 = vld [vmem:[%s2555_s7 + $0xa4] sm:$0xf] }
  0x4d   : > { %1144 = vmatmul.bf16.gmra.mxu3 %v2003_v6  ;;  %v1804_v6 = vld [vmem:[%s2555_s7 + $0xb4] sm:$0xf0] }
  0x4e   : > { %1084 = vmatmul.bf16.gmra.mxu0 %v1763_v7  ;;  %v1810_v7 = vld [vmem:[%s2555_s7 + $0xa8] sm:$0xf]  ;;  %v1807_v13 = vor.u32 %v2222_v5, %v1804_v6  ;;  %v1855_v5 = vor.u32 %v2233_v57, %v1852_v58  ;;  %v1859_v6 = vor.u32 %v2236_v60, %v1858_v59  ;;  %v1884_v57 = vld [vmem:[%s2555_s7 + $0x154] sm:$0xf0]  ;;  %v2245_v59 = vld [vmem:[%s2555_s7 + $0x158] sm:$0xf0] }
  0x4f   : > { %v1811_v14 = vor.u32 %v2225_v8, %v1810_v7  ;;  %v1890_v58 = vld [vmem:[%s2555_s7 + $0x148] sm:$0xf]  ;;  %v2243_v60 = vld [vmem:[%s2555_s7 + $0x14c] sm:$0xf] }
  0x5c   : > { %1109 = vmatmul.bf16.gmra.mxu1 %v1863_v16  ;;  %1129 = vmatmul.bf16.gmra.mxu2 %v1943_v17  ;;  %v1815_v16 = vor.u32 %v2223_v9, %v1812_v10  ;;  %v1819_v17 = vor.u32 %v2226_v12, %v1818_v11 }
  0x5d   : > { %1149 = vmatmul.bf16.gmra.mxu3 %v2023_v18 }
  0x5e   : > { %1089 = vmatmul.bf16.gmra.mxu0 %v1783_v19 }
  0x6c   : > { %1163 = vmatmul.bf16.vlgmr.msrb.gmra.mxu1 %v1727_v28  ;;  %1252 = vmatmul.bf16.vlgmr.msrb.gmra.mxu2 %v1731_v29  ;;  %v1824_v28 = vld [vmem:[%s2555_s7 + $0xdc] sm:$0xf0]  ;;  %v1830_v29 = vld [vmem:[%s2555_s7 + $0xd0] sm:$0xf] }
  0x6d   : > { %1341 = vmatmul.bf16.vlgmr.msrb.gmra.mxu3 %v1735_v30  ;;  %v2230_v30 = vld [vmem:[%s2555_s7 + $0xe0] sm:$0xf0]  ;;  %v1827_v38 = vor.u32 %v2227_v27, %v1824_v28  ;;  %v1872_v27 = vld [vmem:[%s2555_s7 + $0x134] sm:$0xf0]  ;;  %v1878_v28 = vld [vmem:[%s2555_s7 + $0x128] sm:$0xf] }
  0x6e   : > { %2184 = vmatmul.msk.bf16.vlgmr.msrb.gmra.mxu0 %vm1017_vm0, %v1739_v31  ;;  %v2228_v31 = vld [vmem:[%s2555_s7 + $0xd4] sm:$0xf]  ;;  %v1831_v39 = vor.u32 %v2230_v30, %v1830_v29  ;;  %v2241_v29 = vld [vmem:[%s2555_s7 + $0x138] sm:$0xf0] }
  0x7c   : > { %1168 = vmatmul.bf16.gmra.mxu1 %v1747_v40  ;;  %1257 = vmatmul.bf16.gmra.mxu2 %v1751_v41 }
  0x7d   : > { %1346 = vmatmul.bf16.gmra.mxu3 %v1755_v42  ;;  %v1835_v42 = vor.u32 %v2228_v31, %v1832_v32 }
  0x7e   : > { %2185 = vmatmul.msk.bf16.gmra.mxu0 %vm1017_vm0, %v1759_v43  ;;  %v1839_v43 = vor.u32 %v2231_v34, %v1838_v33 }
  0x8c   : > { %1173 = vmatmul.bf16.gmra.mxu1 %v1767_v52  ;;  %1262 = vmatmul.bf16.gmra.mxu2 %v1771_v53  ;;  %v2232_v53 = vld [vmem:[%s2555_s7 + $0xf4] sm:$0xf] }
  0x8d   : > { %1351 = vmatmul.bf16.gmra.mxu3 %v1775_v54  ;;  %v1844_v54 = vld [vmem:[%s2555_s7 + $0x104] sm:$0xf0] }
  0x8e   : > { %2186 = vmatmul.msk.bf16.gmra.mxu0 %vm1017_vm0, %v1779_v55  ;;  %v1850_v55 = vld [vmem:[%s2555_s7 + $0xf8] sm:$0xf] }
  0x9c   : > { %1178 = vmatmul.bf16.gmra.mxu1 %v1787_v0  ;;  %1267 = vmatmul.bf16.gmra.mxu2 %v1791_v1  ;;  %v1847_v0 = vor.u32 %v2232_v53, %v1844_v54  ;;  %v1851_v1 = vor.u32 %v2235_v56, %v1850_v55  ;;  %v2242_v56 = vld [vmem:[%s2555_s7 + $0x144] sm:$0xf] }
  0x9d   : > { %1356 = vmatmul.bf16.gmra.mxu3 %v1795_v2 }
  0x9e   : > { %2187 = vmatmul.msk.bf16.gmra.mxu0 %vm1017_vm0, %v1799_v3 }
  0xa9   : > { %v1095_v15 = vpop.f32.mrf.mxu1 }
  0xaa   : > { %v2726_v18 = vadd.f32 %v2715_v4, %v1095_v15 }
  0xab   : > { %v2728_v19 = vpop.f32.mrf.mxu0 }
  0xac   : > { %1183 = vmatmul.bf16.gmra.mxu1 %v1807_v13  ;;  %1272 = vmatmul.bf16.gmra.mxu2 %v1811_v14 }
  0xad   : > { %1361 = vmatmul.bf16.gmra.mxu3 %v1815_v16  ;;  %v2237_v16 = vld [vmem:[%s2555_s7 + $0x11c] sm:$0xf] }
  0xae   : > { %2188 = vmatmul.msk.bf16.gmra.mxu0 %vm1017_vm0, %v1819_v17  ;;  %v1864_v17 = vld [vmem:[%s2555_s7 + $0x12c] sm:$0xf0] }
  0xaf   : > { %v1115_v20 = vpop.f32.mrf.mxu2  ;;  %v1867_v33 = vor.u32 %v2237_v16, %v1864_v17 }
  0xb0   : > { %v2732_v21 = vadd.f32 %v2715_v4, %v1115_v20  ;;  %v1135_v22 = vpop.f32.mrf.mxu3  ;;  %v1870_v20 = vld [vmem:[%s2555_s7 + $0x120] sm:$0xf] }
  0xb1   : > { %v2735_v23 = vadd.f32 %v2715_v4, %v1135_v22  ;;  %v1097_v24 = vpop.f32.mrf.mxu1  ;;  %v2240_v22 = vld [vmem:[%s2555_s7 + $0x130] sm:$0xf0] }
  0xb2   : > { %v2738_v25 = vadd.f32 %v2715_v4, %v1097_v24  ;;  %v2238_v24 = vld [vmem:[%s2555_s7 + $0x124] sm:$0xf]  ;;  %v1871_v34 = vor.u32 %v2240_v22, %v1870_v20  ;;  %v1076_v22 = vadd.f32 %v2715_v4, %v2728_v19  ;;  %v1912_v19 = vld [vmem:[%s2555_s7 + $0x184] sm:$0xf0] }
  0xb3   : > { %v2740_v26 = vpop.f32.mrf.mxu0 }
  0xb7   : > { %v1117_v35 = vpop.f32.mrf.mxu2 }
  0xb8   : > { %v2751_v36 = vadd.f32 %v2715_v4, %v1117_v35  ;;  %v1137_v37 = vpop.f32.mrf.mxu3 }
  0xb9   : > { %v2754_v40 = vadd.f32 %v2715_v4, %v1137_v37  ;;  %v1100_v41 = vpop.f32.mrf.mxu1 }
  0xba   : > { %v2757_v44 = vadd.f32 %v2715_v4, %v1100_v41 }
  0xbb   : > { %v2759_v45 = vpop.f32.mrf.mxu0 }
  0xbc   : > { %1188 = vmatmul.bf16.gmra.mxu1 %v1827_v38  ;;  %1277 = vmatmul.bf16.gmra.mxu2 %v1831_v39  ;;  %v1875_v38 = vor.u32 %v2238_v24, %v1872_v27  ;;  %v1879_v39 = vor.u32 %v2241_v29, %v1878_v28 }
  0xbd   : > { %1366 = vmatmul.bf16.gmra.mxu3 %v1835_v42 }
  0xbe   : > { %2189 = vmatmul.msk.bf16.gmra.mxu0 %vm1017_vm0, %v1839_v43 }
  0xbf   : > { %v1120_v46 = vpop.f32.mrf.mxu2 }
  0xc0   : > { %v2763_v47 = vadd.f32 %v2715_v4, %v1120_v46  ;;  %v1140_v48 = vpop.f32.mrf.mxu3 }
  0xc1   : > { %v2766_v49 = vadd.f32 %v2715_v4, %v1140_v48  ;;  %v1102_v50 = vpop.f32.mrf.mxu1 }
  0xc2   : > { %v2769_v51 = vadd.f32 %v2715_v4, %v1102_v50 }
  0xc3   : > { %v2771_v52 = vpop.f32.mrf.mxu0 }
  0xc7   : > { %v1122_v61 = vpop.f32.mrf.mxu2 }
  0xc8   : > { %v2782_v62 = vadd.f32 %v2715_v4, %v1122_v61  ;;  %v1142_v63 = vpop.f32.mrf.mxu3  ;;  %v1892_v61 = vld [vmem:[%s2555_s7 + $0x15c] sm:$0xf0] }
  0xc9   : > { %v2785_v2 = vadd.f32 %v2715_v4, %v1142_v63  ;;  %v1105_v3 = vpop.f32.mrf.mxu1  ;;  %v1898_v63 = vld [vmem:[%s2555_s7 + $0x150] sm:$0xf]  ;;  %v1895_v16 = vor.u32 %v2243_v60, %v1892_v61 }
  0xca   : > { %v2788_v7 = vadd.f32 %v2715_v4, %v1105_v3 }
  0xcb   : > { %v2790_v8 = vpop.f32.mrf.mxu0 }
  0xcc   : > { %1193 = vmatmul.bf16.gmra.mxu1 %v1847_v0  ;;  %1282 = vmatmul.bf16.gmra.mxu2 %v1851_v1  ;;  %v2246_v0 = vld [vmem:[%s2555_s7 + $0x160] sm:$0xf0] }
  0xcd   : > { %1371 = vmatmul.bf16.gmra.mxu3 %v1855_v5  ;;  %v1899_v17 = vor.u32 %v2246_v0, %v1898_v63 }
  0xce   : > { %2190 = vmatmul.msk.bf16.gmra.mxu0 %vm1017_vm0, %v1859_v6  ;;  %v1887_v6 = vor.u32 %v2242_v56, %v1884_v57  ;;  %v1918_v56 = vld [vmem:[%s2555_s7 + $0x178] sm:$0xf]  ;;  %v2251_v57 = vld [vmem:[%s2555_s7 + $0x188] sm:$0xf0] }
  0xcf   : > { %v1125_v9 = vpop.f32.mrf.mxu2 }
  0xd0   : > { %v2794_v10 = vadd.f32 %v2715_v4, %v1125_v9  ;;  %v1145_v11 = vpop.f32.mrf.mxu3  ;;  %v1891_v9 = vor.u32 %v2245_v59, %v1890_v58 }
  0xd1   : > { %v2797_v12 = vadd.f32 %v2715_v4, %v1145_v11  ;;  %v1107_v13 = vpop.f32.mrf.mxu1 }
  0xd2   : > { %v2800_v14 = vadd.f32 %v2715_v4, %v1107_v13 }
  0xd3   : > { %v2802_v15 = vpop.f32.mrf.mxu0 }
  0xd7   : > { %v1127_v30 = vpop.f32.mrf.mxu2 }
  0xd8   : > { %v2813_v31 = vadd.f32 %v2715_v4, %v1127_v30  ;;  %v1147_v32 = vpop.f32.mrf.mxu3 }
  0xd9   : > { %v2816_v35 = vadd.f32 %v2715_v4, %v1147_v32  ;;  %v1110_v37 = vpop.f32.mrf.mxu1 }
  0xda   : > { %v2819_v41 = vadd.f32 %v2715_v4, %v1110_v37  ;;  %v1904_v37 = vld [vmem:[%s2555_s7 + $0x17c] sm:$0xf0] }
  0xdb   : > { %v2821_v42 = vpop.f32.mrf.mxu0 }
  0xdc   : > { %1198 = vmatmul.bf16.gmra.mxu1 %v1867_v33  ;;  %1287 = vmatmul.bf16.gmra.mxu2 %v1871_v34  ;;  %v1078_v33 = vadd.f32 %v2715_v4, %v2740_v26  ;;  %v2247_v34 = vld [vmem:[%s2555_s7 + $0x16c] sm:$0xf] }
  0xdd   : > { %1376 = vmatmul.bf16.gmra.mxu3 %v1875_v38  ;;  %v1910_v38 = vld [vmem:[%s2555_s7 + $0x170] sm:$0xf]  ;;  %v1907_v61 = vor.u32 %v2247_v34, %v1904_v37  ;;  %v1924_v34 = vld [vmem:[%s2555_s7 + $0x1a4] sm:$0xf0]  ;;  %v1930_v37 = vld [vmem:[%s2555_s7 + $0x198] sm:$0xf] }
  0xde   : > { %2191 = vmatmul.msk.bf16.gmra.mxu0 %vm1017_vm0, %v1879_v39  ;;  %v2250_v39 = vld [vmem:[%s2555_s7 + $0x180] sm:$0xf0] }
  0xdf   : > { %v1130_v43 = vpop.f32.mrf.mxu2  ;;  %v1911_v63 = vor.u32 %v2250_v39, %v1910_v38  ;;  %v2255_v38 = vld [vmem:[%s2555_s7 + $0x1a8] sm:$0xf0]  ;;  %v2253_v39 = vld [vmem:[%s2555_s7 + $0x19c] sm:$0xf] }
  0xe0   : > { %v2825_v46 = vadd.f32 %v2715_v4, %v1130_v43  ;;  %v1150_v48 = vpop.f32.mrf.mxu3  ;;  %v2248_v43 = vld [vmem:[%s2555_s7 + $0x174] sm:$0xf] }
  0xe1   : > { %v2828_v50 = vadd.f32 %v2715_v4, %v1150_v48  ;;  %v1112_v53 = vpop.f32.mrf.mxu1 }
  0xe2   : > { %v2831_v54 = vadd.f32 %v2715_v4, %v1112_v53 }
  0xe3   : > { %v2833_v55 = vpop.f32.mrf.mxu0 }
  0xe7   : > { %v1132_v1 = vpop.f32.mrf.mxu2 }
  0xe8   : > { %v2844_v3 = vadd.f32 %v2715_v4, %v1132_v1  ;;  %v1152_v5 = vpop.f32.mrf.mxu3  ;;  %v1915_v1 = vor.u32 %v2248_v43, %v1912_v19  ;;  %v1938_v19 = vld [vmem:[%s2555_s7 + $0x1a0] sm:$0xf] }
  0xe9   : > { %v2847_v11 = vadd.f32 %v2715_v4, %v1152_v5  ;;  %v1164_v13 = vpop.f32.mrf.mxu1  ;;  %v1919_v5 = vor.u32 %v2251_v57, %v1918_v56  ;;  %v2256_v56 = vld [vmem:[%s2555_s7 + $0x1b0] sm:$0xf0] }
  0xea   : > { %v1165_v27 = vadd.f32 %v1164_v13, %v1076_v22 }
  0xeb   : > { %v1431_v20 = vpop.f32.mrf.mxu0 }
  0xec   : > { %1203 = vmatmul.bf16.gmra.mxu1 %v1887_v6  ;;  %1292 = vmatmul.bf16.gmra.mxu2 %v1891_v9 }
  0xed   : > { %1381 = vmatmul.bf16.gmra.mxu3 %v1895_v16  ;;  %v1081_v16 = vadd.f32 %v2715_v4, %v2759_v45 }
  0xee   : > { %2192 = vmatmul.msk.bf16.gmra.mxu0 %vm1017_vm0, %v1899_v17 }
  0xef   : > { %v1253_v24 = vpop.f32.mrf.mxu2 }
  0xf0   : > { %v1342_v28 = vpop.f32.mrf.mxu3  ;;  %v1254_v30 = vadd.f32 %v1253_v24, %v1165_v27 }
  0xf1   : > { %v1166_v29 = vpop.f32.mrf.mxu1 }
  0xf2   : > { %v1343_v48 = vadd.f32 %v1342_v28, %v1254_v30  ;;  %v1167_v53 = vadd.f32 %v1166_v29, %v1078_v33  ;;  %v2252_v33 = vld [vmem:[%s2555_s7 + $0x194] sm:$0xf] }
  0xf3   : > { %v1433_v32 = vpop.f32.mrf.mxu0 }
  0xf4   : > { %v1432_v26 = vadd.f32 %v1431_v20, %v1343_v48 }
  0xf6   : > { %v1511_v17 = vmax.f32 %v1432_v26, 0.0 }
  0xf7   : > { %v1255_v58 = vpop.f32.mrf.mxu2 }
  0xf8   : > { %v1256_v59 = vadd.f32 %v1255_v58, %v1167_v53  ;;  %v1344_v60 = vpop.f32.mrf.mxu3  ;;  %v1932_v53 = vld [vmem:[%s2555_s7 + $0x1ac] sm:$0xf0] }
  0xf9   : > { %v1169_v0 = vpop.f32.mrf.mxu1 }
  0xfa   : > { %v1345_v6 = vadd.f32 %v1344_v60, %v1256_v59  ;;  %v1170_v27 = vadd.f32 %v1169_v0, %v1081_v16  ;;  %v1927_v60 = vor.u32 %v2252_v33, %v1924_v34  ;;  %v1935_v0 = vor.u32 %v2253_v39, %v1932_v53  ;;  %v2260_v33 = vld [vmem:[%s2555_s7 + $0x1d0] sm:$0xf0]  ;;  %v2258_v34 = vld [vmem:[%s2555_s7 + $0x1c4] sm:$0xf]  ;;  %v1952_v39 = vld [vmem:[%s2555_s7 + $0x1d4] sm:$0xf0] }
  0xfb   : > { %v1436_v9 = vpop.f32.mrf.mxu0 }
  0xfc   : > { %v1434_v13 = vadd.f32 %v1433_v32, %v1345_v6  ;;  %1208 = vmatmul.bf16.gmra.mxu1 %v1907_v61  ;;  %1297 = vmatmul.bf16.gmra.mxu2 %v1911_v63  ;;  %v1083_v32 = vadd.f32 %v2715_v4, %v2771_v52  ;;  %v1931_v61 = vor.u32 %v2255_v38, %v1930_v37 }
  0xfd   : > { %1386 = vmatmul.bf16.gmra.mxu3 %v1915_v1  ;;  %v1939_v1 = vor.u32 %v2256_v56, %v1938_v19 }
  0xfe   : > { %2193 = vmatmul.msk.bf16.gmra.mxu0 %vm1017_vm0, %v1919_v5  ;;  %v1512_v22 = vmax.f32 %v1434_v13, 0.0  ;;  %v1086_v13 = vadd.f32 %v2715_v4, %v2790_v8  ;;  %v1950_v8 = vld [vmem:[%s2555_s7 + $0x1c0] sm:$0xf] }
  0xff   : > { %v1258_v20 = vpop.f32.mrf.mxu2 }
 0x100   : > { %v2321_v24 = vpack.c.bf16 %v1512_v22, %v1511_v17  ;;  %v1347_v28 = vpop.f32.mrf.mxu3  ;;  %v1259_v45 = vadd.f32 %v1258_v20, %v1170_v27 }
 0x101   : > { %v1171_v29 = vpop.f32.mrf.mxu1 }
 0x102   : > { %2322 = vst [vmem:[%s2869_s22] sm:$0xff] %v2321_v24   ;;  %v1348_v43 = vadd.f32 %v1347_v28, %v1259_v45  ;;  %v1172_v48 = vadd.f32 %v1171_v29, %v1083_v32  ;;  %v1088_v45 = vadd.f32 %v2715_v4, %v2802_v15  ;;  %v1944_v32 = vld [vmem:[%s2555_s7 + $0x1cc] sm:$0xf0] }
 0x103   : > { %v1438_v30 = vpop.f32.mrf.mxu0 }
 0x104   : > { %v1437_v5 = vadd.f32 %v1436_v9, %v1348_v43  ;;  %v1958_v43 = vld [vmem:[%s2555_s7 + $0x1c8] sm:$0xf] }
 0x106   : > { %v1513_v16 = vmax.f32 %v1437_v5, 0.0  ;;  %v1091_v5 = vadd.f32 %v2715_v4, %v2821_v42  ;;  %v1970_v42 = vld [vmem:[%s2555_s7 + $0x1e8] sm:$0xf] }
 0x107   : > { %v1260_v57 = vpop.f32.mrf.mxu2 }
 0x108   : > { %v1261_v58 = vadd.f32 %v1260_v57, %v1172_v48  ;;  %v1349_v59 = vpop.f32.mrf.mxu3  ;;  %v2261_v48 = vld [vmem:[%s2555_s7 + $0x1d8] sm:$0xf0] }
 0x109   : > { %v1174_v63 = vpop.f32.mrf.mxu1 }
 0x10a   : > { %v1350_v52 = vadd.f32 %v1349_v59, %v1261_v58  ;;  %v1175_v20 = vadd.f32 %v1174_v63, %v1086_v13  ;;  %v1951_v58 = vor.u32 %v2260_v33, %v1950_v8  ;;  %v1972_v8 = vld [vmem:[%s2555_s7 + $0x1fc] sm:$0xf0]  ;;  %v1978_v33 = vld [vmem:[%s2555_s7 + $0x1f0] sm:$0xf] }
 0x10b   : > { %v1441_v26 = vpop.f32.mrf.mxu0 }
 0x10c   : > { %v1439_v6 = vadd.f32 %v1438_v30, %v1350_v52  ;;  %1213 = vmatmul.bf16.gmra.mxu1 %v1927_v60  ;;  %1302 = vmatmul.bf16.gmra.mxu2 %v1931_v61  ;;  %v2257_v30 = vld [vmem:[%s2555_s7 + $0x1bc] sm:$0xf]  ;;  %v1955_v60 = vor.u32 %v2258_v34, %v1952_v39  ;;  %v1959_v61 = vor.u32 %v2261_v48, %v1958_v43  ;;  %v2266_v34 = vld [vmem:[%s2555_s7 + $0x200] sm:$0xf0] }
 0x10d   : > { %1391 = vmatmul.bf16.gmra.mxu3 %v1935_v0  ;;  %v1947_v57 = vor.u32 %v2257_v30, %v1944_v32 }
 0x10e   : > { %2194 = vmatmul.msk.bf16.gmra.mxu0 %vm1017_vm0, %v1939_v1  ;;  %v1514_v17 = vmax.f32 %v1439_v6, 0.0 }
 0x10f   : > { %v1263_v9 = vpop.f32.mrf.mxu2 }
 0x110   : > { %v2326_v22 = vpack.c.bf16 %v1514_v17, %v1513_v16  ;;  %v1352_v24 = vpop.f32.mrf.mxu3  ;;  %v1264_v28 = vadd.f32 %v1263_v9, %v1175_v20 }
 0x111   : > { %v1176_v27 = vpop.f32.mrf.mxu1 }
 0x112   : > { %2398 = vst [vmem:[%s2869_s22 + $0x8] sm:$0xff] %v2326_v22   ;;  %v1353_v37 = vadd.f32 %v1352_v24, %v1264_v28  ;;  %v1177_v38 = vadd.f32 %v1176_v27, %v1088_v45  ;;  %v1093_v24 = vadd.f32 %v2715_v4, %v2833_v55  ;;  %v2262_v27 = vld [vmem:[%s2555_s7 + $0x1e4] sm:$0xf]  ;;  %v1964_v28 = vld [vmem:[%s2555_s7 + $0x1f4] sm:$0xf0] }
 0x113   : > { %v1443_v29 = vpop.f32.mrf.mxu0  ;;  %v2263_v45 = vld [vmem:[%s2555_s7 + $0x1ec] sm:$0xf]  ;;  %v1967_v43 = vor.u32 %v2262_v27, %v1964_v28 }
 0x114   : > { %v1442_v63 = vadd.f32 %v1441_v26, %v1353_v37  ;;  %v2271_v27 = vld [vmem:[%s2555_s7 + $0x228] sm:$0xf0] }
 0x116   : > { %v1515_v52 = vmax.f32 %v1442_v63, 0.0 }
 0x117   : > { %v1265_v53 = vpop.f32.mrf.mxu2 }
 0x118   : > { %v1266_v19 = vadd.f32 %v1265_v53, %v1177_v38  ;;  %v1354_v56 = vpop.f32.mrf.mxu3 }
 0x119   : > { %v1179_v59 = vpop.f32.mrf.mxu1 }
 0x11a   : > { %v1355_v15 = vadd.f32 %v1354_v56, %v1266_v19  ;;  %v1180_v16 = vadd.f32 %v1179_v59, %v1091_v5  ;;  %v1975_v19 = vor.u32 %v2263_v45, %v1972_v8  ;;  %v1979_v56 = vor.u32 %v2266_v34, %v1978_v33 }
 0x11b   : > { %v1446_v0 = vpop.f32.mrf.mxu0 }
 0x11c   : > { %v1444_v1 = vadd.f32 %v1443_v29, %v1355_v15  ;;  %1218 = vmatmul.bf16.gmra.mxu1 %v1947_v57  ;;  %1307 = vmatmul.bf16.gmra.mxu2 %v1951_v58  ;;  %v2265_v29 = vld [vmem:[%s2555_s7 + $0x1f8] sm:$0xf0] }
 0x11d   : > { %1396 = vmatmul.bf16.gmra.mxu3 %v1955_v60  ;;  %v1971_v48 = vor.u32 %v2265_v29, %v1970_v42 }
 0x11e   : > { %2195 = vmatmul.msk.bf16.gmra.mxu0 %vm1017_vm0, %v1959_v61  ;;  %v1516_v6 = vmax.f32 %v1444_v1, 0.0 }
 0x11f   : > { %v1268_v26 = vpop.f32.mrf.mxu2 }
 0x120   : > { %v2331_v13 = vpack.c.bf16 %v1516_v6, %v1515_v52  ;;  %v1357_v17 = vpop.f32.mrf.mxu3  ;;  %v1269_v22 = vadd.f32 %v1268_v26, %v1180_v16  ;;  %v2267_v6 = vld [vmem:[%s2555_s7 + $0x20c] sm:$0xf]  ;;  %v1984_v26 = vld [vmem:[%s2555_s7 + $0x21c] sm:$0xf0]  ;;  %v2270_v16 = vld [vmem:[%s2555_s7 + $0x220] sm:$0xf0] }
 0x121   : > { %v1181_v9 = vpop.f32.mrf.mxu1 }
 0x122   : > { %2399 = vst [vmem:[%s2869_s22 + $0x10] sm:$0xff] %v2331_v13   ;;  %v1358_v30 = vadd.f32 %v1357_v17, %v1269_v22  ;;  %v1182_v32 = vadd.f32 %v1181_v9, %v1093_v24  ;;  %v1990_v13 = vld [vmem:[%s2555_s7 + $0x210] sm:$0xf]  ;;  %v2268_v17 = vld [vmem:[%s2555_s7 + $0x214] sm:$0xf] }
 0x123   : > { %v1448_v20 = vpop.f32.mrf.mxu0  ;;  %v1998_v24 = vld [vmem:[%s2555_s7 + $0x218] sm:$0xf]  ;;  %v1991_v45 = vor.u32 %v2270_v16, %v1990_v13 }
 0x124   : > { %v1447_v4 = vadd.f32 %v1446_v0, %v1358_v30  ;;  %v1999_v8 = vor.u32 %v2271_v27, %v1998_v24 }
 0x126   : > { %v1517_v59 = vmax.f32 %v1447_v4, 0.0 }
 0x127   : > { %v1270_v37 = vpop.f32.mrf.mxu2 }
 0x128   : > { %v1271_v38 = vadd.f32 %v1270_v37, %v1182_v32  ;;  %v1359_v39 = vpop.f32.mrf.mxu3 }
 0x129   : > { %v1184_v53 = vpop.f32.mrf.mxu1 }
 0x12a   : > { %v1360_v55 = vadd.f32 %v1359_v39, %v1271_v38  ;;  %v1185_v15 = vadd.f32 %v1184_v53, %v2726_v18  ;;  %v1987_v18 = vor.u32 %v2267_v6, %v1984_v26 }
 0x12b   : > { %v1451_v57 = vpop.f32.mrf.mxu0 }
 0x12c   : > { %v1449_v58 = vadd.f32 %v1448_v20, %v1360_v55  ;;  %1223 = vmatmul.bf16.gmra.mxu1 %v1967_v43  ;;  %1312 = vmatmul.bf16.gmra.mxu2 %v1971_v48  ;;  %v1992_v20 = vld [vmem:[%s2555_s7 + $0x224] sm:$0xf0] }
 0x12d   : > { %1401 = vmatmul.bf16.gmra.mxu3 %v1975_v19  ;;  %v1995_v32 = vor.u32 %v2268_v17, %v1992_v20 }
 0x12e   : > { %2196 = vmatmul.msk.bf16.gmra.mxu0 %vm1017_vm0, %v1979_v56  ;;  %v1518_v60 = vmax.f32 %v1449_v58, 0.0  ;;  %v2004_v58 = vld [vmem:[%s2555_s7 + $0x244] sm:$0xf0] }
 0x12f   : > { %v1273_v61 = vpop.f32.mrf.mxu2 }
 0x130   : > { %v2336_v63 = vpack.c.bf16 %v1518_v60, %v1517_v59  ;;  %v1362_v0 = vpop.f32.mrf.mxu3  ;;  %v1274_v5 = vadd.f32 %v1273_v61, %v1185_v15  ;;  %v2010_v59 = vld [vmem:[%s2555_s7 + $0x238] sm:$0xf]  ;;  %v2275_v60 = vld [vmem:[%s2555_s7 + $0x248] sm:$0xf0]  ;;  %v2273_v61 = vld [vmem:[%s2555_s7 + $0x23c] sm:$0xf] }
 0x131   : > { %v1186_v1 = vpop.f32.mrf.mxu1  ;;  %v2011_v13 = vor.u32 %v2275_v60, %v2010_v59 }
 0x132   : > { %2400 = vst [vmem:[%s2869_s22 + $0x18] sm:$0xff] %v2336_v63   ;;  %v1363_v9 = vadd.f32 %v1362_v0, %v1274_v5  ;;  %v1187_v22 = vadd.f32 %v1186_v1, %v2738_v25  ;;  %v2012_v0 = vld [vmem:[%s2555_s7 + $0x24c] sm:$0xf0]  ;;  %v2018_v1 = vld [vmem:[%s2555_s7 + $0x240] sm:$0xf] }
 0x133   : > { %v1453_v52 = vpop.f32.mrf.mxu0  ;;  %v2276_v5 = vld [vmem:[%s2555_s7 + $0x250] sm:$0xf0]  ;;  %v2015_v17 = vor.u32 %v2273_v61, %v2012_v0 }
 0x134   : > { %v1452_v33 = vadd.f32 %v1451_v57, %v1363_v9  ;;  %v2272_v57 = vld [vmem:[%s2555_s7 + $0x234] sm:$0xf]  ;;  %v2019_v9 = vor.u32 %v2276_v5, %v2018_v1 }
 0x136   : > { %v1519_v25 = vmax.f32 %v1452_v33, 0.0  ;;  %v2277_v33 = vld [vmem:[%s2555_s7 + $0x25c] sm:$0xf] }
 0x137   : > { %v1275_v28 = vpop.f32.mrf.mxu2 }
 0x138   : > { %v1276_v42 = vadd.f32 %v1275_v28, %v1187_v22  ;;  %v1364_v29 = vpop.f32.mrf.mxu3 }
 0x139   : > { %v1189_v30 = vpop.f32.mrf.mxu1 }
 0x13a   : > { %v1365_v34 = vadd.f32 %v1364_v29, %v1276_v42  ;;  %v1190_v53 = vadd.f32 %v1189_v30, %v2757_v44  ;;  %v2007_v44 = vor.u32 %v2272_v57, %v2004_v58 }
 0x13b   : > { %v1456_v37 = vpop.f32.mrf.mxu0 }
 0x13c   : > { %v1454_v38 = vadd.f32 %v1453_v52, %v1365_v34  ;;  %1228 = vmatmul.bf16.gmra.mxu1 %v1987_v18  ;;  %1317 = vmatmul.bf16.gmra.mxu2 %v1991_v45  ;;  %v2024_v34 = vld [vmem:[%s2555_s7 + $0x26c] sm:$0xf0] }
 0x13d   : > { %1406 = vmatmul.bf16.gmra.mxu3 %v1995_v32 }
 0x13e   : > { %2197 = vmatmul.msk.bf16.gmra.mxu0 %vm1017_vm0, %v1999_v8  ;;  %v1520_v39 = vmax.f32 %v1454_v38, 0.0  ;;  %v2280_v38 = vld [vmem:[%s2555_s7 + $0x270] sm:$0xf0] }
 0x13f   : > { %v1278_v43 = vpop.f32.mrf.mxu2 }
 0x140   : > { %v2341_v48 = vpack.c.bf16 %v1520_v39, %v1519_v25  ;;  %v1367_v19 = vpop.f32.mrf.mxu3  ;;  %v1279_v4 = vadd.f32 %v1278_v43, %v1190_v53  ;;  %v2278_v25 = vld [vmem:[%s2555_s7 + $0x264] sm:$0xf]  ;;  %v2038_v53 = vld [vmem:[%s2555_s7 + $0x268] sm:$0xf] }
 0x141   : > { %v1191_v56 = vpop.f32.mrf.mxu1 }
 0x142   : > { %2401 = vst [vmem:[%s2869_s22 + $0x20] sm:$0xff] %v2341_v48   ;;  %v1368_v63 = vadd.f32 %v1367_v19, %v1279_v4  ;;  %v1192_v15 = vadd.f32 %v1191_v56, %v2769_v51  ;;  %v2032_v48 = vld [vmem:[%s2555_s7 + $0x274] sm:$0xf0]  ;;  %v2281_v19 = vld [vmem:[%s2555_s7 + $0x278] sm:$0xf0] }
 0x143   : > { %v1458_v55 = vpop.f32.mrf.mxu0  ;;  %v2035_v59 = vor.u32 %v2278_v25, %v2032_v48  ;;  %v2039_v60 = vor.u32 %v2281_v19, %v2038_v53 }
 0x144   : > { %v1457_v22 = vadd.f32 %v1456_v37, %v1368_v63  ;;  %v2030_v37 = vld [vmem:[%s2555_s7 + $0x260] sm:$0xf] }
 0x145   : > { %v2031_v57 = vor.u32 %v2280_v38, %v2030_v37 }
 0x146   : > { %v1521_v51 = vmax.f32 %v1457_v22, 0.0 }
 0x147   : > { %v1280_v52 = vpop.f32.mrf.mxu2 }
 0x148   : > { %v1281_v6 = vadd.f32 %v1280_v52, %v1192_v15  ;;  %v1369_v26 = vpop.f32.mrf.mxu3 }
 0x149   : > { %v1194_v16 = vpop.f32.mrf.mxu1 }
 0x14a   : > { %v1370_v20 = vadd.f32 %v1369_v26, %v1281_v6  ;;  %v1195_v18 = vadd.f32 %v1194_v16, %v2788_v7  ;;  %v2027_v7 = vor.u32 %v2277_v33, %v2024_v34 }
 0x14b   : > { %v1461_v24 = vpop.f32.mrf.mxu0 }
 0x14c   : > { %v1459_v27 = vadd.f32 %v1458_v55, %v1370_v20  ;;  %1233 = vmatmul.bf16.gmra.mxu1 %v2007_v44  ;;  %1322 = vmatmul.bf16.gmra.mxu2 %v2011_v13 }
 0x14d   : > { %1411 = vmatmul.bf16.gmra.mxu3 %v2015_v17 }
 0x14e   : > { %2198 = vmatmul.msk.bf16.gmra.mxu0 %vm1017_vm0, %v2019_v9  ;;  %v1522_v28 = vmax.f32 %v1459_v27, 0.0 }
 0x14f   : > { %v1283_v42 = vpop.f32.mrf.mxu2 }
 0x150   : > { %v2346_v29 = vpack.c.bf16 %v1522_v28, %v1521_v51  ;;  %v1372_v45 = vpop.f32.mrf.mxu3  ;;  %v1284_v32 = vadd.f32 %v1283_v42, %v1195_v18 }
 0x151   : > { %v1196_v30 = vpop.f32.mrf.mxu1 }
 0x152   : > { %2402 = vst [vmem:[%s2869_s22 + $0x28] sm:$0xff] %v2346_v29   ;;  %v1373_v39 = vadd.f32 %v1372_v45, %v1284_v32  ;;  %v1197_v43 = vadd.f32 %v1196_v30, %v2800_v14 }
 0x153   : > { %v1463_v8 = vpop.f32.mrf.mxu0 }
 0x154   : > { %v1462_v61 = vadd.f32 %v1461_v24, %v1373_v39 }
 0x156   : > { %v1523_v14 = vmax.f32 %v1462_v61, 0.0 }
 0x157   : > { %v1285_v56 = vpop.f32.mrf.mxu2 }
 0x158   : > { %v1286_v4 = vadd.f32 %v1285_v56, %v1197_v43  ;;  %v1374_v55 = vpop.f32.mrf.mxu3 }
 0x159   : > { %v1199_v58 = vpop.f32.mrf.mxu1 }
 0x15a   : > { %v1375_v63 = vadd.f32 %v1374_v55, %v1286_v4  ;;  %v1200_v6 = vadd.f32 %v1199_v58, %v2819_v41 }
 0x15b   : > { %v1466_v15 = vpop.f32.mrf.mxu0 }
 0x15c   : > { %v1464_v0 = vadd.f32 %v1463_v8, %v1375_v63  ;;  %1238 = vmatmul.bf16.gmra.mxu1 %v2027_v7  ;;  %1327 = vmatmul.bf16.gmra.mxu2 %v2031_v57 }
 0x15d   : > { %1416 = vmatmul.bf16.gmra.mxu3 %v2035_v59 }
 0x15e   : > { %2199 = vmatmul.msk.bf16.gmra.mxu0 %vm1017_vm0, %v2039_v60  ;;  %v1524_v1 = vmax.f32 %v1464_v0, 0.0 }
 0x15f   : > { %v1288_v5 = vpop.f32.mrf.mxu2 }
 0x160   : > { %v2351_v52 = vpack.c.bf16 %v1524_v1, %v1523_v14  ;;  %v1377_v26 = vpop.f32.mrf.mxu3  ;;  %v1289_v13 = vadd.f32 %v1288_v5, %v1200_v6 }
 0x161   : > { %v1201_v44 = vpop.f32.mrf.mxu1 }
 0x162   : > { %2403 = vst [vmem:[%s2869_s22 + $0x30] sm:$0xff] %v2351_v52   ;;  %v1378_v17 = vadd.f32 %v1377_v26, %v1289_v13  ;;  %v1202_v9 = vadd.f32 %v1201_v44, %v2831_v54 }
 0x163   : > { %v1468_v16 = vpop.f32.mrf.mxu0 }
 0x164   : > { %v1467_v51 = vadd.f32 %v1466_v15, %v1378_v17 }
 0x166   : > { %v1525_v18 = vmax.f32 %v1467_v51, 0.0 }
 0x167   : > { %v1290_v22 = vpop.f32.mrf.mxu2 }
 0x168   : > { %v1291_v20 = vadd.f32 %v1290_v22, %v1202_v9  ;;  %v1379_v24 = vpop.f32.mrf.mxu3 }
 0x169   : > { %v1204_v27 = vpop.f32.mrf.mxu1 }
 0x16a   : > { %v1380_v28 = vadd.f32 %v1379_v24, %v1291_v20  ;;  %v1205_v32 = vadd.f32 %v1204_v27, %v2732_v21 }
 0x16b   : > { %v1471_v42 = vpop.f32.mrf.mxu0 }
 0x16c   : > { %v1469_v29 = vadd.f32 %v1468_v16, %v1380_v28 }
 0x16e   : > { %v1526_v45 = vmax.f32 %v1469_v29, 0.0 }
 0x16f   : > { %v1293_v41 = vpop.f32.mrf.mxu2 }
 0x170   : > { %v2356_v30 = vpack.c.bf16 %v1526_v45, %v1525_v18  ;;  %v1382_v8 = vpop.f32.mrf.mxu3  ;;  %v1294_v34 = vadd.f32 %v1293_v41, %v1205_v32 }
 0x171   : > { %v1206_v33 = vpop.f32.mrf.mxu1 }
 0x172   : > { %2404 = vst [vmem:[%s2869_s22 + $0x38] sm:$0xff] %v2356_v30   ;;  %v1383_v37 = vadd.f32 %v1382_v8, %v1294_v34  ;;  %v1207_v38 = vadd.f32 %v1206_v33, %v2751_v36 }
 0x173   : > { %v1473_v54 = vpop.f32.mrf.mxu0 }
 0x174   : > { %v1472_v53 = vadd.f32 %v1471_v42, %v1383_v37 }
 0x176   : > { %v1527_v55 = vmax.f32 %v1472_v53, 0.0 }
 0x177   : > { %v1295_v25 = vpop.f32.mrf.mxu2 }
 0x178   : > { %v1296_v39 = vadd.f32 %v1295_v25, %v1207_v38  ;;  %v1384_v43 = vpop.f32.mrf.mxu3 }
 0x179   : > { %v1209_v48 = vpop.f32.mrf.mxu1 }
 0x17a   : > { %v1385_v19 = vadd.f32 %v1384_v43, %v1296_v39  ;;  %v1210_v58 = vadd.f32 %v1209_v48, %v2763_v47 }
 0x17b   : > { %v1476_v56 = vpop.f32.mrf.mxu0 }
 0x17c   : > { %v1474_v4 = vadd.f32 %v1473_v54, %v1385_v19 }
 0x17e   : > { %v1528_v7 = vmax.f32 %v1474_v4, 0.0 }
 0x17f   : > { %v1298_v21 = vpop.f32.mrf.mxu2 }
 0x180   : > { %v2361_v57 = vpack.c.bf16 %v1528_v7, %v1527_v55  ;;  %v1387_v59 = vpop.f32.mrf.mxu3  ;;  %v1299_v61 = vadd.f32 %v1298_v21, %v1210_v58 }
 0x181   : > { %v1211_v60 = vpop.f32.mrf.mxu1 }
 0x182   : > { %2405 = vst [vmem:[%s2869_s22 + $0x40] sm:$0xff] %v2361_v57   ;;  %v1388_v63 = vadd.f32 %v1387_v59, %v1299_v61  ;;  %v1212_v15 = vadd.f32 %v1211_v60, %v2782_v62 }
 0x183   : > { %v1478_v36 = vpop.f32.mrf.mxu0 }
 0x184   : > { %v1477_v52 = vadd.f32 %v1476_v56, %v1388_v63 }
 0x186   : > { %v1529_v13 = vmax.f32 %v1477_v52, 0.0 }
 0x187   : > { %v1300_v0 = vpop.f32.mrf.mxu2 }
 0x188   : > { %v1301_v14 = vadd.f32 %v1300_v0, %v1212_v15  ;;  %v1389_v1 = vpop.f32.mrf.mxu3 }
 0x189   : > { %v1214_v5 = vpop.f32.mrf.mxu1 }
 0x18a   : > { %v1390_v6 = vadd.f32 %v1389_v1, %v1301_v14  ;;  %v1215_v9 = vadd.f32 %v1214_v5, %v2794_v10 }
 0x18b   : > { %v1481_v26 = vpop.f32.mrf.mxu0 }
 0x18c   : > { %v1479_v44 = vadd.f32 %v1478_v36, %v1390_v6 }
 0x18e   : > { %v1530_v16 = vmax.f32 %v1479_v44, 0.0 }
 0x18f   : > { %v1303_v47 = vpop.f32.mrf.mxu2 }
 0x190   : > { %v2366_v17 = vpack.c.bf16 %v1530_v16, %v1529_v13  ;;  %v1392_v22 = vpop.f32.mrf.mxu3  ;;  %v1304_v24 = vadd.f32 %v1303_v47, %v1215_v9 }
 0x191   : > { %v1216_v20 = vpop.f32.mrf.mxu1 }
 0x192   : > { %2406 = vst [vmem:[%s2869_s22 + $0x48] sm:$0xff] %v2366_v17   ;;  %v1393_v27 = vadd.f32 %v1392_v22, %v1304_v24  ;;  %v1217_v51 = vadd.f32 %v1216_v20, %v2813_v31 }
 0x193   : > { %v1483_v62 = vpop.f32.mrf.mxu0 }
 0x194   : > { %v1482_v45 = vadd.f32 %v1481_v26, %v1393_v27 }
 0x196   : > { %v1531_v8 = vmax.f32 %v1482_v45, 0.0 }
 0x197   : > { %v1305_v28 = vpop.f32.mrf.mxu2 }
 0x198   : > { %v1306_v42 = vadd.f32 %v1305_v28, %v1217_v51  ;;  %v1394_v29 = vpop.f32.mrf.mxu3 }
 0x199   : > { %v1219_v18 = vpop.f32.mrf.mxu1 }
 0x19a   : > { %v1395_v41 = vadd.f32 %v1394_v29, %v1306_v42  ;;  %v1220_v54 = vadd.f32 %v1219_v18, %v2825_v46 }
 0x19b   : > { %v1486_v30 = vpop.f32.mrf.mxu0 }
 0x19c   : > { %v1484_v32 = vadd.f32 %v1483_v62, %v1395_v41 }
 0x19e   : > { %v1532_v33 = vmax.f32 %v1484_v32, 0.0 }
 0x19f   : > { %v1308_v10 = vpop.f32.mrf.mxu2 }
 0x1a0   : > { %v2371_v34 = vpack.c.bf16 %v1532_v33, %v1531_v8  ;;  %v1397_v37 = vpop.f32.mrf.mxu3  ;;  %v1309_v25 = vadd.f32 %v1308_v10, %v1220_v54 }
 0x1a1   : > { %v1221_v38 = vpop.f32.mrf.mxu1 }
 0x1a2   : > { %2407 = vst [vmem:[%s2869_s22 + $0x50] sm:$0xff] %v2371_v34   ;;  %v1398_v39 = vadd.f32 %v1397_v37, %v1309_v25  ;;  %v1222_v43 = vadd.f32 %v1221_v38, %v2844_v3 }
 0x1a3   : > { %v1488_v31 = vpop.f32.mrf.mxu0 }
 0x1a4   : > { %v1487_v4 = vadd.f32 %v1486_v30, %v1398_v39 }
 0x1a6   : > { %v1533_v57 = vmax.f32 %v1487_v4, 0.0 }
 0x1a7   : > { %v1310_v48 = vpop.f32.mrf.mxu2 }
 0x1a8   : > { %v1311_v53 = vadd.f32 %v1310_v48, %v1222_v43  ;;  %v1399_v19 = vpop.f32.mrf.mxu3 }
 0x1a9   : > { %v1224_v56 = vpop.f32.mrf.mxu1 }
 0x1aa   : > { %v1400_v55 = vadd.f32 %v1399_v19, %v1311_v53  ;;  %v1225_v60 = vadd.f32 %v1224_v56, %v2735_v23 }
 0x1ab   : > { %v1491_v7 = vpop.f32.mrf.mxu0 }
 0x1ac   : > { %v1489_v21 = vadd.f32 %v1488_v31, %v1400_v55 }
 0x1ae   : > { %v1534_v58 = vmax.f32 %v1489_v21, 0.0 }
 0x1af   : > { %v1313_v46 = vpop.f32.mrf.mxu2 }
 0x1b0   : > { %v2376_v59 = vpack.c.bf16 %v1534_v58, %v1533_v57  ;;  %v1402_v61 = vpop.f32.mrf.mxu3  ;;  %v1314_v63 = vadd.f32 %v1313_v46, %v1225_v60 }
 0x1b1   : > { %v1226_v36 = vpop.f32.mrf.mxu1 }
 0x1b2   : > { %2408 = vst [vmem:[%s2869_s22 + $0x58] sm:$0xff] %v2376_v59   ;;  %v1403_v15 = vadd.f32 %v1402_v61, %v1314_v63  ;;  %v1227_v0 = vadd.f32 %v1226_v36, %v2754_v40 }
 0x1b3   : > { %v1493_v3 = vpop.f32.mrf.mxu0 }
 0x1b4   : > { %v1492_v6 = vadd.f32 %v1491_v7, %v1403_v15 }
 0x1b6   : > { %v1535_v16 = vmax.f32 %v1492_v6, 0.0 }
 0x1b7   : > { %v1315_v14 = vpop.f32.mrf.mxu2 }
 0x1b8   : > { %v1316_v1 = vadd.f32 %v1315_v14, %v1227_v0  ;;  %v1404_v5 = vpop.f32.mrf.mxu3 }
 0x1b9   : > { %v1229_v52 = vpop.f32.mrf.mxu1 }
 0x1ba   : > { %v1405_v26 = vadd.f32 %v1404_v5, %v1316_v1  ;;  %v1230_v9 = vadd.f32 %v1229_v52, %v2766_v49 }
 0x1bb   : > { %v1496_v44 = vpop.f32.mrf.mxu0 }
 0x1bc   : > { %v1494_v13 = vadd.f32 %v1493_v3, %v1405_v26 }
 0x1be   : > { %v1536_v47 = vmax.f32 %v1494_v13, 0.0 }
 0x1bf   : > { %v1318_v23 = vpop.f32.mrf.mxu2 }
 0x1c0   : > { %v2381_v17 = vpack.c.bf16 %v1536_v47, %v1535_v16  ;;  %v1407_v22 = vpop.f32.mrf.mxu3  ;;  %v1319_v24 = vadd.f32 %v1318_v23, %v1230_v9 }
 0x1c1   : > { %v1231_v20 = vpop.f32.mrf.mxu1 }
 0x1c2   : > { %2409 = vst [vmem:[%s2869_s22 + $0x60] sm:$0xff] %v2381_v17   ;;  %v1408_v62 = vadd.f32 %v1407_v22, %v1319_v24  ;;  %v1232_v27 = vadd.f32 %v1231_v20, %v2785_v2 }
 0x1c3   : > { %v1498_v40 = vpop.f32.mrf.mxu0 }
 0x1c4   : > { %v1497_v18 = vadd.f32 %v1496_v44, %v1408_v62 }
 0x1c6   : > { %v1537_v32 = vmax.f32 %v1497_v18, 0.0 }
 0x1c7   : > { %v1320_v51 = vpop.f32.mrf.mxu2 }
 0x1c8   : > { %v1321_v28 = vadd.f32 %v1320_v51, %v1232_v27  ;;  %v1409_v42 = vpop.f32.mrf.mxu3 }
 0x1c9   : > { %v1234_v29 = vpop.f32.mrf.mxu1 }
 0x1ca   : > { %v1410_v45 = vadd.f32 %v1409_v42, %v1321_v28  ;;  %v1235_v10 = vadd.f32 %v1234_v29, %v2797_v12 }
 0x1cb   : > { %v1501_v30 = vpop.f32.mrf.mxu0 }
 0x1cc   : > { %v1499_v41 = vadd.f32 %v1498_v40, %v1410_v45 }
 0x1ce   : > { %v1538_v8 = vmax.f32 %v1499_v41, 0.0 }
 0x1cf   : > { %v1323_v49 = vpop.f32.mrf.mxu2 }
 0x1d0   : > { %v2386_v33 = vpack.c.bf16 %v1538_v8, %v1537_v32  ;;  %v1412_v34 = vpop.f32.mrf.mxu3  ;;  %v1324_v37 = vadd.f32 %v1323_v49, %v1235_v10 }
 0x1d1   : > { %v1236_v54 = vpop.f32.mrf.mxu1 }
 0x1d2   : > { %2410 = vst [vmem:[%s2869_s22 + $0x68] sm:$0xff] %v2386_v33   ;;  %v1413_v2 = vadd.f32 %v1412_v34, %v1324_v37  ;;  %v1237_v38 = vadd.f32 %v1236_v54, %v2816_v35 }
 0x1d3   : > { %v1503_v25 = vpop.f32.mrf.mxu0 }
 0x1d4   : > { %v1502_v53 = vadd.f32 %v1501_v30, %v1413_v2 }
 0x1d6   : > { %v1539_v4 = vmax.f32 %v1502_v53, 0.0 }
 0x1d7   : > { %v1325_v31 = vpop.f32.mrf.mxu2 }
 0x1d8   : > { %v1326_v39 = vadd.f32 %v1325_v31, %v1237_v38  ;;  %v1414_v43 = vpop.f32.mrf.mxu3 }
 0x1d9   : > { %v1239_v48 = vpop.f32.mrf.mxu1 }
 0x1da   : > { %v1415_v19 = vadd.f32 %v1414_v43, %v1326_v39  ;;  %v1240_v21 = vadd.f32 %v1239_v48, %v2828_v50 }
 0x1db   : > { %v1506_v58 = vpop.f32.mrf.mxu0 }
 0x1dc   : > { %v1504_v56 = vadd.f32 %v1503_v25, %v1415_v19 }
 0x1de   : > { %v1540_v55 = vmax.f32 %v1504_v56, 0.0 }
 0x1df   : > { %v1328_v7 = vpop.f32.mrf.mxu2 }
 0x1e0   : > { %v2391_v12 = vpack.c.bf16 %v1540_v55, %v1539_v4  ;;  %v1417_v57 = vpop.f32.mrf.mxu3  ;;  %v1329_v35 = vadd.f32 %v1328_v7, %v1240_v21 }
 0x1e1   : > { %v1241_v46 = vpop.f32.mrf.mxu1 }
 0x1e2   : > { %2411 = vst [vmem:[%s2869_s22 + $0x70] sm:$0xff] %v2391_v12   ;;  %v1418_v59 = vadd.f32 %v1417_v57, %v1329_v35  ;;  %v1242_v60 = vadd.f32 %v1241_v46, %v2847_v11 }
 0x1e3   : > { %v1508_v0 = vpop.f32.mrf.mxu0 }
 0x1e4   : > { %v1507_v3 = vadd.f32 %v1506_v58, %v1418_v59 }
 0x1e6   : > { %v1541_v1 = vmax.f32 %v1507_v3, 0.0 }
 0x1e7   : > { %v1330_v61 = vpop.f32.mrf.mxu2 }
 0x1e8   : > { %v1331_v36 = vadd.f32 %v1330_v61, %v1242_v60  ;;  %v1419_v63 = vpop.f32.mrf.mxu3 }
 0x1ea   : > { %v1420_v15 = vadd.f32 %v1419_v63, %v1331_v36 }
 0x1ec   : > { %v1509_v14 = vadd.f32 %v1508_v0, %v1420_v15 }
 0x1ee   : > { %v1542_v5 = vmax.f32 %v1509_v14, 0.0 }
 0x1f0   : > { %v2396_v52 = vpack.c.bf16 %v1542_v5, %v1541_v1 }
 0x1f2   : > { %2412 = vst [vmem:[%s2869_s22 + $0x78] sm:$0xff] %v2396_v52  }
 0x1f3 PF: > { %s13_s14 = sadd.s32 1, %s2485_s14   ;;  %s2988_s12 = smov %s2481_s13 }
 0x1f4   : > { %p10_p5 = scmp.ge.s32.totalorder %s13_s14, 10   ;;  %s2989_s13 = smov %s2991_s15 }
 0x1f6   :  { %12 = sbr.rel (!%p10_p5) target bundleno = 2 (0x2), region = 68 }

// kernel: resnet_unet_forward.10
= control target key start
LH: loop header
LB: loop body
LE: loop exit
PB: predicated region body
PF: predicated region fallthrough
CT: control target
= control target key end

     0   :  { %s1052_s12 = smov 0   ;;  %s1054_s13 = smov 0   ;;  %s1295_s0 = inlined_call_operand.vmem [shape: bf16[512,64], index: 0, kind: input, shape index: {}]   ;;  %s1296_s1 = inlined_call_operand.vmem [shape: bf16[64,256], index: 1, kind: input, shape index: {}]   ;;  %s1297_s2 = inlined_call_operand.vmem [shape: f32[1,256], index: 2, kind: input, shape index: {}]   ;;  %s1298_s3 = inlined_call_operand.vmem [shape: bf16[512,256], index: 3, kind: output, shape index: {}]  }
   0x1   :  { %s1056_s14 = smov 0  }
   0x2 LB: > { %s25_s15 = sadd.s32 1, %s1026_s13  ;;  %p815_p0 = scmp.ge.s32.totalorder %s1030_s14, 1  ;;  %s1030_s14 = sphi %s1056_s14, %s13_s14   ;;  %s1026_s13 = sphi %s1054_s13, %s1300_s13   ;;  %s1022_s12 = sphi %s1052_s12, %s1299_s12  }
   0x3   : > { %p27_p1 = scmp.ge.s32.totalorder %s25_s15, 2  ;;  %p173_p2 = scmp.lt.s32.totalorder %s1030_s14, 3 }
   0x5   : > { %s1302_s15 = smov (%p27_p1, %s25_s15), 0  ;;  %p174_p3 = pnand %p815_p0, %p173_p2 }
   0x6   : > { %s816_s17 = sshll.u32 (!%p174_p3), %s1022_s12, 5 }
   0x7   : > { %177 = sbr.rel (%p174_p3) target bundleno = 288 (0x120), region = 32  ;;  %p212_p4 = scmp.lt.s32.totalorder (!%p174_p3), %s816_s17, 63 }
   0xc   : > { %v911_v0 = vld [vmem:[%s1296_s1 + $0x30] sm:$0xf]  ;;  %v975_v1 = vld [vmem:[%s1296_s1 + $0x34] sm:$0xf0]  ;;  %v974_v2 = vld [vmem:[%s1296_s1 + $0x34] sm:$0xf] }
   0xd   : > { %v912_v3 = vor.u32 %v975_v1, %v911_v0  ;;  %v913_v4 = vld [vmem:[%s1296_s1 + $0x38] sm:$0xf0]  ;;  %v903_v5 = vld [vmem:[%s1296_s1 + $0x20] sm:$0xf]  ;;  %v973_v6 = vld [vmem:[%s1296_s1 + $0x24] sm:$0xf0] }
   0xe   : > { %v916_v7 = vor.u32 %v974_v2, %v913_v4  ;;  %v972_v8 = vld [vmem:[%s1296_s1 + $0x24] sm:$0xf]  ;;  %v905_v9 = vld [vmem:[%s1296_s1 + $0x28] sm:$0xf0]  ;;  %v904_v10 = vor.u32 %v973_v6, %v903_v5  ;;  %v895_v12 = vld [vmem:[%s1296_s1 + $0x10] sm:$0xf] }
   0xf   : > { %460 = vmatpush.bf16.msra.mxu0 %v912_v3  ;;  %976 = vmatpush.bf16.msra.mxu2 %v912_v3  ;;  %v908_v11 = vor.u32 %v972_v8, %v905_v9  ;;  %v971_v13 = vld [vmem:[%s1296_s1 + $0x14] sm:$0xf0]  ;;  %v970_v14 = vld [vmem:[%s1296_s1 + $0x14] sm:$0xf]  ;;  %v897_v15 = vld [vmem:[%s1296_s1 + $0x18] sm:$0xf0] }
  0x10   : > { %549 = vmatpush.bf16.msra.mxu1 %v916_v7  ;;  %980 = vmatpush.bf16.msra.mxu3 %v916_v7  ;;  %v896_v16 = vor.u32 %v971_v13, %v895_v12  ;;  %v900_v17 = vor.u32 %v970_v14, %v897_v15  ;;  %v887_v18 = vld [vmem:[%s1296_s1] sm:$0xf]  ;;  %v969_v19 = vld [vmem:[%s1296_s1 + $0x4] sm:$0xf0]  ;;  %s1304_s17 = smov (!%p212_p4, %s816_s17), 63  ;;  %vm407_vm0 = vcmask 523264  }
  0x11   : > { %v968_v20 = vld [vmem:[%s1296_s1 + $0x4] sm:$0xf]  ;;  %v889_v21 = vld [vmem:[%s1296_s1 + $0x8] sm:$0xf0]  ;;  %s817_s25 = sshll.u32 %s1304_s17, 2  ;;  %v888_v22 = vor.u32 %v969_v19, %v887_v18  ;;  %s951_s4 = sshll.u32 %s1304_s17, 3 }
  0x12   : > { %s1127_s28 = scalar_lea.vmem %s1295_s0, %s817_s25  ;;  %v892_v23 = vor.u32 %v968_v20, %v889_v21  ;;  %v281_v40 = vld [vmem:[%s1297_s2] sm:$0x3]  ;;  %s1190_s7 = scalar_lea.vmem %s1298_s3, %s951_s4 }
  0x13   : > { %461 = vmatpush.bf16.msra.mxu0 %v904_v10  ;;  %977 = vmatpush.bf16.msra.mxu2 %v904_v10  ;;  %v952_v24 = vld [vmem:[%s1127_s28] sm:$0xff]  ;;  %v953_v26 = vld [vmem:[%s1127_s28 + $0x8] sm:$0xff]  ;;  %v954_v28 = vld [vmem:[%s1127_s28 + $0x10] sm:$0xff]  ;;  %v1180_v41 = vperm.slane %v281_v40, 0  ;;  %v1182_v42 = vperm.slane %v281_v40, 1 }
  0x14   : > { %550 = vmatpush.bf16.msra.mxu1 %v908_v11  ;;  %981 = vmatpush.bf16.msra.mxu3 %v908_v11  ;;  %v960_v25 = vld [vmem:[%s1127_s28 + $0x40] sm:$0xff]  ;;  %v961_v27 = vld [vmem:[%s1127_s28 + $0x48] sm:$0xff]  ;;  %v962_v29 = vld [vmem:[%s1127_s28 + $0x50] sm:$0xff] }
  0x15   : > { %v955_v30 = vld [vmem:[%s1127_s28 + $0x18] sm:$0xff]  ;;  %v956_v32 = vld [vmem:[%s1127_s28 + $0x20] sm:$0xff]  ;;  %v957_v34 = vld [vmem:[%s1127_s28 + $0x28] sm:$0xff] }
  0x16   : > { %v963_v31 = vld [vmem:[%s1127_s28 + $0x58] sm:$0xff]  ;;  %v964_v33 = vld [vmem:[%s1127_s28 + $0x60] sm:$0xff]  ;;  %v965_v35 = vld [vmem:[%s1127_s28 + $0x68] sm:$0xff] }
  0x17   : > { %462 = vmatpush.bf16.msra.mxu0 %v896_v16  ;;  %978 = vmatpush.bf16.msra.mxu2 %v896_v16  ;;  %v958_v36 = vld [vmem:[%s1127_s28 + $0x30] sm:$0xff]  ;;  %v959_v38 = vld [vmem:[%s1127_s28 + $0x38] sm:$0xff] }
  0x18   : > { %551 = vmatpush.bf16.msra.mxu1 %v900_v17  ;;  %982 = vmatpush.bf16.msra.mxu3 %v900_v17  ;;  %v966_v37 = vld [vmem:[%s1127_s28 + $0x70] sm:$0xff]  ;;  %v967_v39 = vld [vmem:[%s1127_s28 + $0x78] sm:$0xff] }
  0x1b   : > { %463 = vmatpush.bf16.msra.mxu0 %v888_v22  ;;  %979 = vmatpush.bf16.msra.mxu2 %v888_v22 }
  0x1c   : > { %552 = vmatpush.bf16.msra.mxu1 %v892_v23  ;;  %983 = vmatpush.bf16.msra.mxu3 %v892_v23 }
  0x1e   : > { %917 = vmatmul.msk.bf16.vlgmr.msra.gmra.mxu0 %vm407_vm0, %v952_v24  ;;  %925 = vmatmul.msk.bf16.vlgmr.msra.gmra.mxu2 %vm407_vm0, %v960_v25 }
  0x1f   : > { %933 = vmatmul.msk.bf16.vlgmr.msra.gmra.mxu1 %vm407_vm0, %v952_v24  ;;  %941 = vmatmul.msk.bf16.vlgmr.msra.gmra.mxu3 %vm407_vm0, %v960_v25 }
  0x2e   : > { %918 = vmatmul.msk.bf16.gmra.mxu0 %vm407_vm0, %v953_v26  ;;  %926 = vmatmul.msk.bf16.gmra.mxu2 %vm407_vm0, %v961_v27 }
  0x2f   : > { %934 = vmatmul.msk.bf16.gmra.mxu1 %vm407_vm0, %v953_v26  ;;  %942 = vmatmul.msk.bf16.gmra.mxu3 %vm407_vm0, %v961_v27 }
  0x3e   : > { %919 = vmatmul.msk.bf16.gmra.mxu0 %vm407_vm0, %v954_v28  ;;  %927 = vmatmul.msk.bf16.gmra.mxu2 %vm407_vm0, %v962_v29 }
  0x3f   : > { %935 = vmatmul.msk.bf16.gmra.mxu1 %vm407_vm0, %v954_v28  ;;  %943 = vmatmul.msk.bf16.gmra.mxu3 %vm407_vm0, %v962_v29 }
  0x4e   : > { %920 = vmatmul.msk.bf16.gmra.mxu0 %vm407_vm0, %v955_v30  ;;  %928 = vmatmul.msk.bf16.gmra.mxu2 %vm407_vm0, %v963_v31 }
  0x4f   : > { %936 = vmatmul.msk.bf16.gmra.mxu1 %vm407_vm0, %v955_v30  ;;  %944 = vmatmul.msk.bf16.gmra.mxu3 %vm407_vm0, %v963_v31 }
  0x5e   : > { %921 = vmatmul.msk.bf16.gmra.mxu0 %vm407_vm0, %v956_v32  ;;  %929 = vmatmul.msk.bf16.gmra.mxu2 %vm407_vm0, %v964_v33 }
  0x5f   : > { %937 = vmatmul.msk.bf16.gmra.mxu1 %vm407_vm0, %v956_v32  ;;  %945 = vmatmul.msk.bf16.gmra.mxu3 %vm407_vm0, %v964_v33 }
  0x6e   : > { %922 = vmatmul.msk.bf16.gmra.mxu0 %vm407_vm0, %v957_v34  ;;  %930 = vmatmul.msk.bf16.gmra.mxu2 %vm407_vm0, %v965_v35 }
  0x6f   : > { %938 = vmatmul.msk.bf16.gmra.mxu1 %vm407_vm0, %v957_v34  ;;  %946 = vmatmul.msk.bf16.gmra.mxu3 %vm407_vm0, %v965_v35 }
  0x7e   : > { %923 = vmatmul.msk.bf16.gmra.mxu0 %vm407_vm0, %v958_v36  ;;  %931 = vmatmul.msk.bf16.gmra.mxu2 %vm407_vm0, %v966_v37 }
  0x7f   : > { %939 = vmatmul.msk.bf16.gmra.mxu1 %vm407_vm0, %v958_v36  ;;  %947 = vmatmul.msk.bf16.gmra.mxu3 %vm407_vm0, %v966_v37 }
  0x8e   : > { %924 = vmatmul.msk.bf16.gmra.mxu0 %vm407_vm0, %v959_v38  ;;  %932 = vmatmul.msk.bf16.gmra.mxu2 %vm407_vm0, %v967_v39 }
  0x8f   : > { %940 = vmatmul.msk.bf16.gmra.mxu1 %vm407_vm0, %v959_v38  ;;  %948 = vmatmul.msk.bf16.gmra.mxu3 %vm407_vm0, %v967_v39 }
  0x9b   : > { %v465_v43 = vpop.f32.mrf.mxu0 }
  0x9c   : > { %v466_v44 = vadd.f32 %v465_v43, %v1180_v41  ;;  %v554_v45 = vpop.f32.mrf.mxu1 }
  0x9d   : > { %v555_v46 = vadd.f32 %v554_v45, %v1182_v42 }
  0x9f   : > { %v634_v47 = vpack.c.bf16 %v555_v46, %v466_v44 }
  0xa1   : > { %666 = vst [vmem:[%s1190_s7] sm:$0xff] %v634_v47  ;;  %v505_v48 = vpop.f32.mrf.mxu2 }
  0xa2   : > { %v506_v49 = vadd.f32 %v505_v48, %v1180_v41  ;;  %v594_v50 = vpop.f32.mrf.mxu3 }
  0xa3   : > { %v595_v51 = vadd.f32 %v594_v50, %v1182_v42  ;;  %v467_v52 = vpop.f32.mrf.mxu0 }
  0xa4   : > { %v468_v53 = vadd.f32 %v467_v52, %v1180_v41  ;;  %v556_v54 = vpop.f32.mrf.mxu1 }
  0xa5   : > { %v650_v55 = vpack.c.bf16 %v595_v51, %v506_v49  ;;  %v557_v56 = vadd.f32 %v556_v54, %v1182_v42 }
  0xa7   : > { %682 = vst [vmem:[%s1190_s7 + $0x80] sm:$0xff] %v650_v55  ;;  %v635_v57 = vpack.c.bf16 %v557_v56, %v468_v53 }
  0xa9   : > { %667 = vst [vmem:[%s1190_s7 + $0x8] sm:$0xff] %v635_v57  ;;  %v507_v58 = vpop.f32.mrf.mxu2 }
  0xaa   : > { %v508_v59 = vadd.f32 %v507_v58, %v1180_v41  ;;  %v596_v60 = vpop.f32.mrf.mxu3 }
  0xab   : > { %v597_v61 = vadd.f32 %v596_v60, %v1182_v42  ;;  %v470_v62 = vpop.f32.mrf.mxu0 }
  0xac   : > { %v471_v63 = vadd.f32 %v470_v62, %v1180_v41  ;;  %v559_v0 = vpop.f32.mrf.mxu1 }
  0xad   : > { %v651_v1 = vpack.c.bf16 %v597_v61, %v508_v59  ;;  %v560_v2 = vadd.f32 %v559_v0, %v1182_v42 }
  0xaf   : > { %683 = vst [vmem:[%s1190_s7 + $0x88] sm:$0xff] %v651_v1  ;;  %v636_v3 = vpack.c.bf16 %v560_v2, %v471_v63 }
  0xb1   : > { %668 = vst [vmem:[%s1190_s7 + $0x10] sm:$0xff] %v636_v3  ;;  %v510_v4 = vpop.f32.mrf.mxu2 }
  0xb2   : > { %v511_v5 = vadd.f32 %v510_v4, %v1180_v41  ;;  %v599_v6 = vpop.f32.mrf.mxu3 }
  0xb3   : > { %v600_v7 = vadd.f32 %v599_v6, %v1182_v42  ;;  %v472_v8 = vpop.f32.mrf.mxu0 }
  0xb4   : > { %v473_v9 = vadd.f32 %v472_v8, %v1180_v41  ;;  %v561_v10 = vpop.f32.mrf.mxu1 }
  0xb5   : > { %v652_v11 = vpack.c.bf16 %v600_v7, %v511_v5  ;;  %v562_v12 = vadd.f32 %v561_v10, %v1182_v42 }
  0xb7   : > { %684 = vst [vmem:[%s1190_s7 + $0x90] sm:$0xff] %v652_v11  ;;  %v637_v13 = vpack.c.bf16 %v562_v12, %v473_v9 }
  0xb9   : > { %669 = vst [vmem:[%s1190_s7 + $0x18] sm:$0xff] %v637_v13  ;;  %v512_v14 = vpop.f32.mrf.mxu2 }
  0xba   : > { %v513_v15 = vadd.f32 %v512_v14, %v1180_v41  ;;  %v601_v16 = vpop.f32.mrf.mxu3 }
  0xbb   : > { %v602_v17 = vadd.f32 %v601_v16, %v1182_v42  ;;  %v475_v18 = vpop.f32.mrf.mxu0 }
  0xbc   : > { %v476_v19 = vadd.f32 %v475_v18, %v1180_v41  ;;  %v564_v20 = vpop.f32.mrf.mxu1 }
  0xbd   : > { %v653_v21 = vpack.c.bf16 %v602_v17, %v513_v15  ;;  %v565_v22 = vadd.f32 %v564_v20, %v1182_v42 }
  0xbf   : > { %685 = vst [vmem:[%s1190_s7 + $0x98] sm:$0xff] %v653_v21  ;;  %v638_v23 = vpack.c.bf16 %v565_v22, %v476_v19 }
  0xc1   : > { %670 = vst [vmem:[%s1190_s7 + $0x20] sm:$0xff] %v638_v23  ;;  %v515_v24 = vpop.f32.mrf.mxu2 }
  0xc2   : > { %v516_v25 = vadd.f32 %v515_v24, %v1180_v41  ;;  %v604_v26 = vpop.f32.mrf.mxu3 }
  0xc3   : > { %v605_v27 = vadd.f32 %v604_v26, %v1182_v42  ;;  %v477_v28 = vpop.f32.mrf.mxu0 }
  0xc4   : > { %v478_v29 = vadd.f32 %v477_v28, %v1180_v41  ;;  %v566_v30 = vpop.f32.mrf.mxu1 }
  0xc5   : > { %v654_v31 = vpack.c.bf16 %v605_v27, %v516_v25  ;;  %v567_v32 = vadd.f32 %v566_v30, %v1182_v42 }
  0xc7   : > { %686 = vst [vmem:[%s1190_s7 + $0xa0] sm:$0xff] %v654_v31  ;;  %v639_v33 = vpack.c.bf16 %v567_v32, %v478_v29 }
  0xc9   : > { %671 = vst [vmem:[%s1190_s7 + $0x28] sm:$0xff] %v639_v33  ;;  %v517_v34 = vpop.f32.mrf.mxu2 }
  0xca   : > { %v518_v35 = vadd.f32 %v517_v34, %v1180_v41  ;;  %v606_v36 = vpop.f32.mrf.mxu3 }
  0xcb   : > { %v607_v37 = vadd.f32 %v606_v36, %v1182_v42  ;;  %v480_v38 = vpop.f32.mrf.mxu0 }
  0xcc   : > { %v481_v39 = vadd.f32 %v480_v38, %v1180_v41  ;;  %v569_v40 = vpop.f32.mrf.mxu1 }
  0xcd   : > { %v655_v43 = vpack.c.bf16 %v607_v37, %v518_v35  ;;  %v570_v44 = vadd.f32 %v569_v40, %v1182_v42 }
  0xcf   : > { %687 = vst [vmem:[%s1190_s7 + $0xa8] sm:$0xff] %v655_v43  ;;  %v640_v45 = vpack.c.bf16 %v570_v44, %v481_v39 }
  0xd1   : > { %672 = vst [vmem:[%s1190_s7 + $0x30] sm:$0xff] %v640_v45  ;;  %v520_v46 = vpop.f32.mrf.mxu2 }
  0xd2   : > { %v521_v47 = vadd.f32 %v520_v46, %v1180_v41  ;;  %v609_v48 = vpop.f32.mrf.mxu3 }
  0xd3   : > { %v610_v49 = vadd.f32 %v609_v48, %v1182_v42  ;;  %v482_v50 = vpop.f32.mrf.mxu0 }
  0xd4   : > { %v483_v51 = vadd.f32 %v482_v50, %v1180_v41  ;;  %v571_v52 = vpop.f32.mrf.mxu1 }
  0xd5   : > { %v656_v53 = vpack.c.bf16 %v610_v49, %v521_v47  ;;  %v572_v54 = vadd.f32 %v571_v52, %v1182_v42 }
  0xd7   : > { %688 = vst [vmem:[%s1190_s7 + $0xb0] sm:$0xff] %v656_v53  ;;  %v641_v55 = vpack.c.bf16 %v572_v54, %v483_v51 }
  0xd9   : > { %673 = vst [vmem:[%s1190_s7 + $0x38] sm:$0xff] %v641_v55  ;;  %v522_v56 = vpop.f32.mrf.mxu2 }
  0xda   : > { %v523_v57 = vadd.f32 %v522_v56, %v1180_v41  ;;  %v611_v58 = vpop.f32.mrf.mxu3 }
  0xdb   : > { %v612_v59 = vadd.f32 %v611_v58, %v1182_v42  ;;  %v485_v60 = vpop.f32.mrf.mxu0 }
  0xdc   : > { %v486_v61 = vadd.f32 %v485_v60, %v1180_v41  ;;  %v574_v62 = vpop.f32.mrf.mxu1 }
  0xdd   : > { %v657_v63 = vpack.c.bf16 %v612_v59, %v523_v57  ;;  %v575_v0 = vadd.f32 %v574_v62, %v1182_v42 }
  0xdf   : > { %689 = vst [vmem:[%s1190_s7 + $0xb8] sm:$0xff] %v657_v63  ;;  %v642_v1 = vpack.c.bf16 %v575_v0, %v486_v61 }
  0xe1   : > { %674 = vst [vmem:[%s1190_s7 + $0x40] sm:$0xff] %v642_v1  ;;  %v525_v2 = vpop.f32.mrf.mxu2 }
  0xe2   : > { %v526_v3 = vadd.f32 %v525_v2, %v1180_v41  ;;  %v614_v4 = vpop.f32.mrf.mxu3 }
  0xe3   : > { %v615_v5 = vadd.f32 %v614_v4, %v1182_v42  ;;  %v487_v6 = vpop.f32.mrf.mxu0 }
  0xe4   : > { %v488_v7 = vadd.f32 %v487_v6, %v1180_v41  ;;  %v576_v8 = vpop.f32.mrf.mxu1 }
  0xe5   : > { %v658_v9 = vpack.c.bf16 %v615_v5, %v526_v3  ;;  %v577_v10 = vadd.f32 %v576_v8, %v1182_v42 }
  0xe7   : > { %690 = vst [vmem:[%s1190_s7 + $0xc0] sm:$0xff] %v658_v9  ;;  %v643_v11 = vpack.c.bf16 %v577_v10, %v488_v7 }
  0xe9   : > { %675 = vst [vmem:[%s1190_s7 + $0x48] sm:$0xff] %v643_v11  ;;  %v527_v12 = vpop.f32.mrf.mxu2 }
  0xea   : > { %v528_v13 = vadd.f32 %v527_v12, %v1180_v41  ;;  %v616_v14 = vpop.f32.mrf.mxu3 }
  0xeb   : > { %v617_v15 = vadd.f32 %v616_v14, %v1182_v42  ;;  %v490_v16 = vpop.f32.mrf.mxu0 }
  0xec   : > { %v491_v17 = vadd.f32 %v490_v16, %v1180_v41  ;;  %v579_v18 = vpop.f32.mrf.mxu1 }
  0xed   : > { %v659_v19 = vpack.c.bf16 %v617_v15, %v528_v13  ;;  %v580_v20 = vadd.f32 %v579_v18, %v1182_v42 }
  0xef   : > { %691 = vst [vmem:[%s1190_s7 + $0xc8] sm:$0xff] %v659_v19  ;;  %v644_v21 = vpack.c.bf16 %v580_v20, %v491_v17 }
  0xf1   : > { %676 = vst [vmem:[%s1190_s7 + $0x50] sm:$0xff] %v644_v21  ;;  %v530_v22 = vpop.f32.mrf.mxu2 }
  0xf2   : > { %v531_v23 = vadd.f32 %v530_v22, %v1180_v41  ;;  %v619_v24 = vpop.f32.mrf.mxu3 }
  0xf3   : > { %v620_v25 = vadd.f32 %v619_v24, %v1182_v42  ;;  %v492_v26 = vpop.f32.mrf.mxu0 }
  0xf4   : > { %v493_v27 = vadd.f32 %v492_v26, %v1180_v41  ;;  %v581_v28 = vpop.f32.mrf.mxu1 }
  0xf5   : > { %v660_v29 = vpack.c.bf16 %v620_v25, %v531_v23  ;;  %v582_v30 = vadd.f32 %v581_v28, %v1182_v42 }
  0xf7   : > { %692 = vst [vmem:[%s1190_s7 + $0xd0] sm:$0xff] %v660_v29  ;;  %v645_v31 = vpack.c.bf16 %v582_v30, %v493_v27 }
  0xf9   : > { %677 = vst [vmem:[%s1190_s7 + $0x58] sm:$0xff] %v645_v31  ;;  %v532_v32 = vpop.f32.mrf.mxu2 }
  0xfa   : > { %v533_v33 = vadd.f32 %v532_v32, %v1180_v41  ;;  %v621_v34 = vpop.f32.mrf.mxu3 }
  0xfb   : > { %v622_v35 = vadd.f32 %v621_v34, %v1182_v42  ;;  %v495_v36 = vpop.f32.mrf.mxu0 }
  0xfc   : > { %v496_v37 = vadd.f32 %v495_v36, %v1180_v41  ;;  %v584_v38 = vpop.f32.mrf.mxu1 }
  0xfd   : > { %v661_v39 = vpack.c.bf16 %v622_v35, %v533_v33  ;;  %v585_v40 = vadd.f32 %v584_v38, %v1182_v42 }
  0xff   : > { %693 = vst [vmem:[%s1190_s7 + $0xd8] sm:$0xff] %v661_v39  ;;  %v646_v43 = vpack.c.bf16 %v585_v40, %v496_v37 }
 0x101   : > { %678 = vst [vmem:[%s1190_s7 + $0x60] sm:$0xff] %v646_v43  ;;  %v535_v44 = vpop.f32.mrf.mxu2 }
 0x102   : > { %v536_v45 = vadd.f32 %v535_v44, %v1180_v41  ;;  %v624_v46 = vpop.f32.mrf.mxu3 }
 0x103   : > { %v625_v47 = vadd.f32 %v624_v46, %v1182_v42  ;;  %v497_v48 = vpop.f32.mrf.mxu0 }
 0x104   : > { %v498_v49 = vadd.f32 %v497_v48, %v1180_v41  ;;  %v586_v50 = vpop.f32.mrf.mxu1 }
 0x105   : > { %v662_v51 = vpack.c.bf16 %v625_v47, %v536_v45  ;;  %v587_v52 = vadd.f32 %v586_v50, %v1182_v42 }
 0x107   : > { %694 = vst [vmem:[%s1190_s7 + $0xe0] sm:$0xff] %v662_v51  ;;  %v647_v53 = vpack.c.bf16 %v587_v52, %v498_v49 }
 0x109   : > { %679 = vst [vmem:[%s1190_s7 + $0x68] sm:$0xff] %v647_v53  ;;  %v537_v54 = vpop.f32.mrf.mxu2 }
 0x10a   : > { %v538_v55 = vadd.f32 %v537_v54, %v1180_v41  ;;  %v626_v56 = vpop.f32.mrf.mxu3 }
 0x10b   : > { %v627_v57 = vadd.f32 %v626_v56, %v1182_v42  ;;  %v500_v58 = vpop.f32.mrf.mxu0 }
 0x10c   : > { %v501_v59 = vadd.f32 %v500_v58, %v1180_v41  ;;  %v589_v60 = vpop.f32.mrf.mxu1 }
 0x10d   : > { %v663_v61 = vpack.c.bf16 %v627_v57, %v538_v55  ;;  %v590_v62 = vadd.f32 %v589_v60, %v1182_v42 }
 0x10f   : > { %695 = vst [vmem:[%s1190_s7 + $0xe8] sm:$0xff] %v663_v61  ;;  %v648_v63 = vpack.c.bf16 %v590_v62, %v501_v59 }
 0x111   : > { %680 = vst [vmem:[%s1190_s7 + $0x70] sm:$0xff] %v648_v63  ;;  %v540_v0 = vpop.f32.mrf.mxu2 }
 0x112   : > { %v541_v1 = vadd.f32 %v540_v0, %v1180_v41  ;;  %v629_v2 = vpop.f32.mrf.mxu3 }
 0x113   : > { %v630_v3 = vadd.f32 %v629_v2, %v1182_v42  ;;  %v502_v4 = vpop.f32.mrf.mxu0 }
 0x114   : > { %v503_v5 = vadd.f32 %v502_v4, %v1180_v41  ;;  %v591_v6 = vpop.f32.mrf.mxu1 }
 0x115   : > { %v664_v7 = vpack.c.bf16 %v630_v3, %v541_v1  ;;  %v592_v8 = vadd.f32 %v591_v6, %v1182_v42 }
 0x117   : > { %696 = vst [vmem:[%s1190_s7 + $0xf0] sm:$0xff] %v664_v7  ;;  %v649_v9 = vpack.c.bf16 %v592_v8, %v503_v5 }
 0x119   : > { %681 = vst [vmem:[%s1190_s7 + $0x78] sm:$0xff] %v649_v9  ;;  %v542_v10 = vpop.f32.mrf.mxu2 }
 0x11a   : > { %v543_v11 = vadd.f32 %v542_v10, %v1180_v41  ;;  %v631_v12 = vpop.f32.mrf.mxu3 }
 0x11b   : > { %v632_v13 = vadd.f32 %v631_v12, %v1182_v42 }
 0x11d   : > { %v665_v14 = vpack.c.bf16 %v632_v13, %v543_v11 }
 0x11f   : > { %697 = vst [vmem:[%s1190_s7 + $0xf8] sm:$0xff] %v665_v14 }
 0x120 PF: > { %s13_s14 = sadd.s32 1, %s1030_s14   ;;  %s1299_s12 = smov %s1026_s13 }
 0x121   : > { %p10_p5 = scmp.ge.s32.totalorder %s13_s14, 4   ;;  %s1300_s13 = smov %s1302_s15 }
 0x123   :  { %12 = sbr.rel (!%p10_p5) target bundleno = 2 (0x2), region = 68 }

// kernel: resnet_unet_forward.9
= control target key start
LH: loop header
LB: loop body
LE: loop exit
PB: predicated region body
PF: predicated region fallthrough
CT: control target
= control target key end

     0   :  { %s1324_s12 = smov 0   ;;  %s1326_s13 = smov 0   ;;  %s1534_s0 = inlined_call_operand.vmem [shape: bf16[512,152], index: 0, kind: input, shape index: {}]   ;;  %s1535_s1 = inlined_call_operand.vmem [shape: bf16[152,128], index: 1, kind: input, shape index: {}]   ;;  %s1536_s2 = inlined_call_operand.vmem [shape: f32[1,128], index: 2, kind: input, shape index: {}]   ;;  %s1537_s3 = inlined_call_operand.vmem [shape: bf16[512,128], index: 3, kind: output, shape index: {}]  }
   0x1   :  { %s1328_s14 = smov 0  }
   0x2 LB: > { %s25_s15 = sadd.s32 1, %s1298_s13  ;;  %p920_p0 = scmp.ge.s32.totalorder %s1302_s14, 1  ;;  %s1302_s14 = sphi %s1328_s14, %s13_s14   ;;  %s1298_s13 = sphi %s1326_s13, %s1539_s13   ;;  %s1294_s12 = sphi %s1324_s12, %s1538_s12  }
   0x3   : > { %p27_p1 = scmp.ge.s32.totalorder %s25_s15, 2  ;;  %p170_p2 = scmp.lt.s32.totalorder %s1302_s14, 3 }
   0x5   : > { %s1541_s15 = smov (%p27_p1, %s25_s15), 0  ;;  %p171_p3 = pnand %p920_p0, %p170_p2 }
   0x6   : > { %s921_s20 = sshll.u32 (!%p171_p3), %s1294_s12, 5 }
   0x7   : > { %174 = sbr.rel (%p171_p3) target bundleno = 306 (0x132), region = 32  ;;  %p206_p4 = scmp.lt.s32.totalorder (!%p171_p3), %s921_s20, 63 }
   0xc   : > { %v1148_v0 = vld [vmem:[%s1535_s1 + $0x38] sm:$0xff]  ;;  %v279_v1 = vld [vmem:[%s1535_s1 + $0x48] sm:$0xf]  ;;  %vm534_vm0 = vcmask 1043456   ;;  %v1147_v3 = vld [vmem:[%s1535_s1 + $0x30] sm:$0xff]  ;;  %s1543_s20 = smov (!%p206_p4, %s921_s20), 63 }
   0xd   : > { %v465_v2 = vunpack.c.l.b16 %v279_v1  ;;  %538 = vmatpush.bf16.msra.mxu0 %v1148_v0  ;;  %1245 = vmatpush.bf16.msra.mxu2 %v1148_v0  ;;  %s1108_s23 = sshll.u32 %s1543_s20, 3  ;;  %v1149_v6 = vld [vmem:[%s1535_s1 + $0x40] sm:$0xff]  ;;  %v1146_v7 = vld [vmem:[%s1535_s1 + $0x28] sm:$0xff]  ;;  %vm485_vm1 = vcmask 195584   ;;  %v1144_v15 = vld [vmem:[%s1535_s1 + $0x18] sm:$0xff]  ;;  %s925_s19 = sshll.u32 %s1543_s20, 2 }
   0xe   : > { %s1363_s30 = scalar_lea.vmem %s1534_s0, %s1108_s23  ;;  %v1145_v12 = vld [vmem:[%s1535_s1 + $0x20] sm:$0xff]  ;;  %v1143_v16 = vld [vmem:[%s1535_s1 + $0x10] sm:$0xff]  ;;  %v1142_v17 = vld [vmem:[%s1535_s1 + $0x8] sm:$0xff]  ;;  %s1473_s23 = scalar_lea.vmem %s1537_s3, %s925_s19 }
   0xf   : > { %v475_v4 = vpack.c.b16 %v465_v2, %v465_v2  ;;  %v1109_v8 = vld [vmem:[%s1363_s30 + $0x4] sm:$0xf]  ;;  %v930_v9 = vld [vmem:[%s1363_s30 + $0x8] sm:$0xf0]  ;;  %v1127_v11 = vld [vmem:[%s1363_s30 + $0x94] sm:$0xf] }
  0x10   : > { %v933_v10 = vor.u32 %v1109_v8, %v930_v9  ;;  %v1002_v13 = vld [vmem:[%s1363_s30 + $0x98] sm:$0xf0]  ;;  %v1111_v18 = vld [vmem:[%s1363_s30 + $0x14] sm:$0xf]  ;;  %v1129_v20 = vld [vmem:[%s1363_s30 + $0xa4] sm:$0xf] }
  0x11   : > { %v536_v5 = vsel %vm534_vm0, %v475_v4, 0  ;;  %539 = vmatpush.bf16.msra.mxu0 %v1147_v3  ;;  %1246 = vmatpush.bf16.msra.mxu2 %v1147_v3  ;;  %v1005_v14 = vor.u32 %v1127_v11, %v1002_v13  ;;  %v938_v19 = vld [vmem:[%s1363_s30 + $0x18] sm:$0xf0]  ;;  %v1010_v21 = vld [vmem:[%s1363_s30 + $0xa8] sm:$0xf0]  ;;  %v1141_v23 = vld [vmem:[%s1535_s1] sm:$0xff] }
  0x12   : > { %633 = vmatpush.bf16.msra.mxu1 %v536_v5  ;;  %1253 = vmatpush.bf16.msra.mxu3 %v536_v5  ;;  %v941_v22 = vor.u32 %v1111_v18, %v938_v19  ;;  %v928_v24 = vld [vmem:[%s1363_s30] sm:$0xf]  ;;  %v1110_v25 = vld [vmem:[%s1363_s30 + $0x4] sm:$0xf0]  ;;  %v1013_v26 = vor.u32 %v1129_v20, %v1010_v21  ;;  %v1113_v31 = vld [vmem:[%s1363_s30 + $0x24] sm:$0xf] }
  0x13   : > { %v992_v27 = vld [vmem:[%s1363_s30 + $0x80] sm:$0xf]  ;;  %v1126_v28 = vld [vmem:[%s1363_s30 + $0x84] sm:$0xf0]  ;;  %v929_v29 = vor.u32 %v1110_v25, %v928_v24  ;;  %v946_v32 = vld [vmem:[%s1363_s30 + $0x28] sm:$0xf0] }
  0x14   : > { %v993_v30 = vor.u32 %v1126_v28, %v992_v27  ;;  %v1131_v33 = vld [vmem:[%s1363_s30 + $0xb4] sm:$0xf]  ;;  %v1018_v34 = vld [vmem:[%s1363_s30 + $0xb8] sm:$0xf0]  ;;  %v949_v35 = vor.u32 %v1113_v31, %v946_v32  ;;  %v936_v36 = vld [vmem:[%s1363_s30 + $0x10] sm:$0xf] }
  0x15   : > { %540 = vmatpush.bf16.msra.mxu0 %v1146_v7  ;;  %1247 = vmatpush.bf16.msra.mxu2 %v1146_v7  ;;  %v1112_v37 = vld [vmem:[%s1363_s30 + $0x14] sm:$0xf0]  ;;  %v1021_v38 = vor.u32 %v1131_v33, %v1018_v34  ;;  %v1000_v39 = vld [vmem:[%s1363_s30 + $0x90] sm:$0xf]  ;;  %v1115_v43 = vld [vmem:[%s1363_s30 + $0x34] sm:$0xf] }
  0x16   : > { %634 = vmatpush.bf16.msra.mxu1 %v1149_v6  ;;  %1254 = vmatpush.bf16.msra.mxu3 %v1149_v6  ;;  %v1128_v40 = vld [vmem:[%s1363_s30 + $0x94] sm:$0xf0]  ;;  %v937_v41 = vor.u32 %v1112_v37, %v936_v36  ;;  %v954_v44 = vld [vmem:[%s1363_s30 + $0x38] sm:$0xf0]  ;;  %v1133_v45 = vld [vmem:[%s1363_s30 + $0xc4] sm:$0xf] }
  0x17   : > { %v1001_v42 = vor.u32 %v1128_v40, %v1000_v39  ;;  %v1026_v46 = vld [vmem:[%s1363_s30 + $0xc8] sm:$0xf0]  ;;  %v957_v47 = vor.u32 %v1115_v43, %v954_v44  ;;  %v944_v48 = vld [vmem:[%s1363_s30 + $0x20] sm:$0xf]  ;;  %v1114_v49 = vld [vmem:[%s1363_s30 + $0x24] sm:$0xf0] }
  0x18   : > { %v1029_v50 = vor.u32 %v1133_v45, %v1026_v46  ;;  %v1008_v51 = vld [vmem:[%s1363_s30 + $0xa0] sm:$0xf]  ;;  %v1130_v52 = vld [vmem:[%s1363_s30 + $0xa4] sm:$0xf0]  ;;  %v945_v53 = vor.u32 %v1114_v49, %v944_v48  ;;  %v1117_v55 = vld [vmem:[%s1363_s30 + $0x44] sm:$0xf] }
  0x19   : > { %1090 = vmatmul.msk.bf16.vlgmr.msra.gmra.mxu1 %vm485_vm1, %v933_v10  ;;  %541 = vmatpush.bf16.msra.mxu0 %v1145_v12  ;;  %v1009_v54 = vor.u32 %v1130_v52, %v1008_v51  ;;  %v962_v56 = vld [vmem:[%s1363_s30 + $0x48] sm:$0xf0]  ;;  %v1135_v57 = vld [vmem:[%s1363_s30 + $0xd4] sm:$0xf]  ;;  %v1034_v58 = vld [vmem:[%s1363_s30 + $0xd8] sm:$0xf0] }
  0x1a   : > { %1099 = vmatmul.msk.bf16.vlgmr.msra.gmra.mxu3 %vm485_vm1, %v1005_v14  ;;  %1248 = vmatpush.bf16.msra.mxu2 %v1145_v12  ;;  %v965_v59 = vor.u32 %v1117_v55, %v962_v56  ;;  %v952_v60 = vld [vmem:[%s1363_s30 + $0x30] sm:$0xf]  ;;  %v1116_v61 = vld [vmem:[%s1363_s30 + $0x34] sm:$0xf0]  ;;  %v1037_v62 = vor.u32 %v1135_v57, %v1034_v58  ;;  %v1119_v3 = vld [vmem:[%s1363_s30 + $0x54] sm:$0xf] }
  0x1b   : > { %v1016_v63 = vld [vmem:[%s1363_s30 + $0xb0] sm:$0xf]  ;;  %v1132_v0 = vld [vmem:[%s1363_s30 + $0xb4] sm:$0xf0]  ;;  %v953_v1 = vor.u32 %v1116_v61, %v952_v60  ;;  %v970_v4 = vld [vmem:[%s1363_s30 + $0x58] sm:$0xf0] }
  0x1c   : > { %v1017_v2 = vor.u32 %v1132_v0, %v1016_v63  ;;  %v1137_v5 = vld [vmem:[%s1363_s30 + $0xe4] sm:$0xf]  ;;  %v1042_v6 = vld [vmem:[%s1363_s30 + $0xe8] sm:$0xf0]  ;;  %v973_v7 = vor.u32 %v1119_v3, %v970_v4  ;;  %v960_v8 = vld [vmem:[%s1363_s30 + $0x40] sm:$0xf] }
  0x1d   : > { %542 = vmatpush.bf16.msra.mxu0 %v1144_v15  ;;  %v1118_v9 = vld [vmem:[%s1363_s30 + $0x44] sm:$0xf0]  ;;  %v1045_v10 = vor.u32 %v1137_v5, %v1042_v6  ;;  %v1024_v11 = vld [vmem:[%s1363_s30 + $0xc0] sm:$0xf]  ;;  %v1139_v18 = vld [vmem:[%s1363_s30 + $0xf4] sm:$0xf] }
  0x1e   : > { %1249 = vmatpush.bf16.msra.mxu2 %v1144_v15  ;;  %v1134_v12 = vld [vmem:[%s1363_s30 + $0xc4] sm:$0xf0]  ;;  %v961_v13 = vor.u32 %v1118_v9, %v960_v8  ;;  %v1121_v15 = vld [vmem:[%s1363_s30 + $0x64] sm:$0xf]  ;;  %v1050_v19 = vld [vmem:[%s1363_s30 + $0xf8] sm:$0xf0] }
  0x1f   : > { %v1025_v14 = vor.u32 %v1134_v12, %v1024_v11  ;;  %v968_v20 = vld [vmem:[%s1363_s30 + $0x50] sm:$0xf]  ;;  %v1120_v21 = vld [vmem:[%s1363_s30 + $0x54] sm:$0xf0]  ;;  %v1123_v27 = vld [vmem:[%s1363_s30 + $0x74] sm:$0xf] }
  0x20   : > { %v1136_v24 = vld [vmem:[%s1363_s30 + $0xd4] sm:$0xf0]  ;;  %v969_v25 = vor.u32 %v1120_v21, %v968_v20  ;;  %v986_v28 = vld [vmem:[%s1363_s30 + $0x78] sm:$0xf0]  ;;  %v1122_v31 = vld [vmem:[%s1363_s30 + $0x64] sm:$0xf0] }
  0x21   : > { %543 = vmatpush.bf16.msra.mxu0 %v1143_v16  ;;  %v1040_v32 = vld [vmem:[%s1363_s30 + $0xe0] sm:$0xf]  ;;  %v1138_v33 = vld [vmem:[%s1363_s30 + $0xe4] sm:$0xf0]  ;;  %v1125_v36 = vld [vmem:[%s1363_s30 + $0x84] sm:$0xf] }
  0x22   : > { %1250 = vmatpush.bf16.msra.mxu2 %v1143_v16  ;;  %v978_v16 = vld [vmem:[%s1363_s30 + $0x68] sm:$0xf0]  ;;  %v984_v40 = vld [vmem:[%s1363_s30 + $0x70] sm:$0xf]  ;;  %v1140_v43 = vld [vmem:[%s1363_s30 + $0xf4] sm:$0xf0] }
  0x23   : > { %v994_v37 = vld [vmem:[%s1363_s30 + $0x88] sm:$0xf0] }
  0x25   : > { %544 = vmatpush.bf16.msra.mxu0 %v1142_v17 }
  0x26   : > { %1251 = vmatpush.bf16.msra.mxu2 %v1142_v17  ;;  %v981_v17 = vor.u32 %v1121_v15, %v978_v16 }
  0x29   : > { %1091 = vmatmul.msk.bf16.gmra.mxu1 %vm485_vm1, %v941_v22  ;;  %545 = vmatpush.bf16.msra.mxu0 %v1141_v23  ;;  %v1053_v22 = vor.u32 %v1139_v18, %v1050_v19 }
  0x2a   : > { %1100 = vmatmul.msk.bf16.gmra.mxu3 %vm485_vm1, %v1013_v26  ;;  %1252 = vmatpush.bf16.msra.mxu2 %v1141_v23  ;;  %v1032_v23 = vld [vmem:[%s1363_s30 + $0xd0] sm:$0xf] }
  0x2b   : > { %v1033_v26 = vor.u32 %v1136_v24, %v1032_v23 }
  0x2c   : > { %546 = vmatmul.bf16.vlgmr.msra.gmra.mxu0 %v929_v29  ;;  %v989_v29 = vor.u32 %v1123_v27, %v986_v28 }
  0x2d   : > { %586 = vmatmul.bf16.vlgmr.msra.gmra.mxu2 %v993_v30  ;;  %v976_v30 = vld [vmem:[%s1363_s30 + $0x60] sm:$0xf] }
  0x2e   : > { %v977_v34 = vor.u32 %v1122_v31, %v976_v30 }
  0x39   : > { %1092 = vmatmul.msk.bf16.gmra.mxu1 %vm485_vm1, %v949_v35  ;;  %v1041_v35 = vor.u32 %v1138_v33, %v1040_v32 }
  0x3a   : > { %1101 = vmatmul.msk.bf16.gmra.mxu3 %vm485_vm1, %v1021_v38  ;;  %v997_v38 = vor.u32 %v1125_v36, %v994_v37 }
  0x3c   : > { %551 = vmatmul.bf16.gmra.mxu0 %v937_v41  ;;  %v1124_v41 = vld [vmem:[%s1363_s30 + $0x74] sm:$0xf0] }
  0x3d   : > { %591 = vmatmul.bf16.gmra.mxu2 %v1001_v42  ;;  %v1048_v42 = vld [vmem:[%s1363_s30 + $0xf0] sm:$0xf]  ;;  %v985_v44 = vor.u32 %v1124_v41, %v984_v40 }
  0x3e   : > { %v1049_v45 = vor.u32 %v1140_v43, %v1048_v42 }
  0x49   : > { %1093 = vmatmul.msk.bf16.gmra.mxu1 %vm485_vm1, %v957_v47 }
  0x4a   : > { %1102 = vmatmul.msk.bf16.gmra.mxu3 %vm485_vm1, %v1029_v50  ;;  %v1463_v50 = vld [vmem:[%s1536_s2] ss:$0 sm:$0xff] }
  0x4c   : > { %556 = vmatmul.bf16.gmra.mxu0 %v945_v53 }
  0x4d   : > { %596 = vmatmul.bf16.gmra.mxu2 %v1009_v54 }
  0x59   : > { %1094 = vmatmul.msk.bf16.gmra.mxu1 %vm485_vm1, %v965_v59 }
  0x5a   : > { %1103 = vmatmul.msk.bf16.gmra.mxu3 %vm485_vm1, %v1037_v62 }
  0x5c   : > { %561 = vmatmul.bf16.gmra.mxu0 %v953_v1 }
  0x5d   : > { %601 = vmatmul.bf16.gmra.mxu2 %v1017_v2 }
  0x69   : > { %1095 = vmatmul.msk.bf16.gmra.mxu1 %vm485_vm1, %v973_v7 }
  0x6a   : > { %1104 = vmatmul.msk.bf16.gmra.mxu3 %vm485_vm1, %v1045_v10 }
  0x6c   : > { %566 = vmatmul.bf16.gmra.mxu0 %v961_v13 }
  0x6d   : > { %606 = vmatmul.bf16.gmra.mxu2 %v1025_v14 }
  0x79   : > { %1096 = vmatmul.msk.bf16.gmra.mxu1 %vm485_vm1, %v981_v17 }
  0x7a   : > { %1105 = vmatmul.msk.bf16.gmra.mxu3 %vm485_vm1, %v1053_v22 }
  0x7c   : > { %571 = vmatmul.bf16.gmra.mxu0 %v969_v25 }
  0x7d   : > { %611 = vmatmul.bf16.gmra.mxu2 %v1033_v26 }
  0x89   : > { %1097 = vmatmul.msk.bf16.gmra.mxu1 %vm485_vm1, %v989_v29 }
  0x8c   : > { %576 = vmatmul.bf16.gmra.mxu0 %v977_v34 }
  0x8d   : > { %616 = vmatmul.bf16.gmra.mxu2 %v1041_v35 }
  0x96   : > { %v636_v39 = vpop.f32.mrf.mxu1 }
  0x99   : > { %1098 = vmatmul.msk.bf16.gmra.mxu1 %vm485_vm1, %v997_v38 }
  0x9c   : > { %581 = vmatmul.bf16.gmra.mxu0 %v985_v44 }
  0x9d   : > { %621 = vmatmul.bf16.gmra.mxu2 %v1049_v45  ;;  %v681_v48 = vpop.f32.mrf.mxu3 }
  0x9e   : > { %v638_v46 = vpop.f32.mrf.mxu1 }
  0xa5   : > { %v683_v57 = vpop.f32.mrf.mxu3 }
  0xa6   : > { %v641_v47 = vpop.f32.mrf.mxu1 }
  0xa9   : > { %v547_v49 = vpop.f32.mrf.mxu0 }
  0xaa   : > { %v548_v52 = vadd.f32 %v1463_v50, %v547_v49 }
  0xac   : > { %v637_v55 = vadd.f32 %v636_v39, %v548_v52 }
  0xad   : > { %v686_v1 = vpop.f32.mrf.mxu3 }
  0xae   : > { %v643_v51 = vpop.f32.mrf.mxu1  ;;  %v716_v60 = vmax.f32 %v637_v55, 0.0 }
  0xb0   : > { %v1466_v53 = vpop.f32.mrf.mxu2 }
  0xb1   : > { %v549_v54 = vpop.f32.mrf.mxu0 }
  0xb2   : > { %v550_v56 = vadd.f32 %v1463_v50, %v549_v54 }
  0xb4   : > { %v639_v58 = vadd.f32 %v638_v46, %v550_v56 }
  0xb5   : > { %v688_v13 = vpop.f32.mrf.mxu3 }
  0xb6   : > { %v646_v59 = vpop.f32.mrf.mxu1  ;;  %v717_v61 = vmax.f32 %v639_v58, 0.0 }
  0xb8   : > { %v1153_v62 = vpack.c.bf16 %v717_v61, %v716_v60  ;;  %v1475_v63 = vpop.f32.mrf.mxu2 }
  0xb9   : > { %v552_v0 = vpop.f32.mrf.mxu0 }
  0xba   : > { %1154 = vst [vmem:[%s1473_s23] sm:$0xff] %v1153_v62   ;;  %v553_v3 = vadd.f32 %v1463_v50, %v552_v0 }
  0xbc   : > { %v642_v6 = vadd.f32 %v641_v47, %v553_v3 }
  0xbd   : > { %v691_v26 = vpop.f32.mrf.mxu3 }
  0xbe   : > { %v648_v2 = vpop.f32.mrf.mxu1  ;;  %v718_v11 = vmax.f32 %v642_v6, 0.0 }
  0xc0   : > { %v592_v4 = vpop.f32.mrf.mxu2 }
  0xc1   : > { %v554_v5 = vpop.f32.mrf.mxu0  ;;  %v593_v9 = vadd.f32 %v1463_v50, %v592_v4 }
  0xc2   : > { %v555_v7 = vadd.f32 %v1463_v50, %v554_v5 }
  0xc3   : > { %v682_v16 = vadd.f32 %v681_v48, %v593_v9 }
  0xc4   : > { %v644_v8 = vadd.f32 %v643_v51, %v555_v7 }
  0xc5   : > { %v734_v20 = vmax.f32 %v682_v16, 0.0  ;;  %v693_v40 = vpop.f32.mrf.mxu3 }
  0xc6   : > { %v651_v10 = vpop.f32.mrf.mxu1  ;;  %v719_v12 = vmax.f32 %v644_v8, 0.0 }
  0xc8   : > { %v1158_v14 = vpack.c.bf16 %v719_v12, %v718_v11  ;;  %v594_v15 = vpop.f32.mrf.mxu2 }
  0xc9   : > { %v595_v17 = vadd.f32 %v1463_v50, %v594_v15  ;;  %v557_v18 = vpop.f32.mrf.mxu0 }
  0xca   : > { %1230 = vst [vmem:[%s1473_s23 + $0x8] sm:$0xff] %v1158_v14   ;;  %v558_v23 = vadd.f32 %v1463_v50, %v557_v18 }
  0xcb   : > { %v684_v19 = vadd.f32 %v683_v57, %v595_v17 }
  0xcc   : > { %v647_v28 = vadd.f32 %v646_v59, %v558_v23 }
  0xcd   : > { %v735_v21 = vmax.f32 %v684_v19, 0.0  ;;  %v696_v54 = vpop.f32.mrf.mxu3 }
  0xce   : > { %v653_v22 = vpop.f32.mrf.mxu1  ;;  %v720_v33 = vmax.f32 %v647_v28, 0.0 }
  0xcf   : > { %v1198_v24 = vpack.c.bf16 %v735_v21, %v734_v20 }
  0xd0   : > { %v597_v25 = vpop.f32.mrf.mxu2 }
  0xd1   : > { %1238 = vst [vmem:[%s1473_s23 + $0x48] sm:$0xff] %v1198_v24   ;;  %v559_v27 = vpop.f32.mrf.mxu0  ;;  %v598_v31 = vadd.f32 %v1463_v50, %v597_v25 }
  0xd2   : > { %v560_v29 = vadd.f32 %v1463_v50, %v559_v27 }
  0xd3   : > { %v687_v37 = vadd.f32 %v686_v1, %v598_v31 }
  0xd4   : > { %v649_v30 = vadd.f32 %v648_v2, %v560_v29 }
  0xd5   : > { %v736_v42 = vmax.f32 %v687_v37, 0.0  ;;  %v698_v6 = vpop.f32.mrf.mxu3 }
  0xd6   : > { %v656_v32 = vpop.f32.mrf.mxu1  ;;  %v721_v34 = vmax.f32 %v649_v30, 0.0 }
  0xd8   : > { %v1163_v35 = vpack.c.bf16 %v721_v34, %v720_v33  ;;  %v599_v36 = vpop.f32.mrf.mxu2 }
  0xd9   : > { %v600_v38 = vadd.f32 %v1463_v50, %v599_v36  ;;  %v562_v39 = vpop.f32.mrf.mxu0 }
  0xda   : > { %1231 = vst [vmem:[%s1473_s23 + $0x10] sm:$0xff] %v1163_v35   ;;  %v563_v45 = vadd.f32 %v1463_v50, %v562_v39 }
  0xdb   : > { %v689_v41 = vadd.f32 %v688_v13, %v600_v38 }
  0xdc   : > { %v652_v49 = vadd.f32 %v651_v10, %v563_v45 }
  0xdd   : > { %v737_v43 = vmax.f32 %v689_v41, 0.0  ;;  %v701_v19 = vpop.f32.mrf.mxu3 }
  0xde   : > { %v658_v44 = vpop.f32.mrf.mxu1  ;;  %v722_v57 = vmax.f32 %v652_v49, 0.0 }
  0xdf   : > { %v1203_v46 = vpack.c.bf16 %v737_v43, %v736_v42 }
  0xe0   : > { %v602_v47 = vpop.f32.mrf.mxu2 }
  0xe1   : > { %1239 = vst [vmem:[%s1473_s23 + $0x50] sm:$0xff] %v1203_v46   ;;  %v564_v48 = vpop.f32.mrf.mxu0  ;;  %v603_v55 = vadd.f32 %v1463_v50, %v602_v47 }
  0xe2   : > { %v565_v51 = vadd.f32 %v1463_v50, %v564_v48 }
  0xe3   : > { %v692_v61 = vadd.f32 %v691_v26, %v603_v55 }
  0xe4   : > { %v654_v52 = vadd.f32 %v653_v22, %v565_v51 }
  0xe5   : > { %v738_v2 = vmax.f32 %v692_v61, 0.0  ;;  %v703_v33 = vpop.f32.mrf.mxu3 }
  0xe6   : > { %v661_v56 = vpop.f32.mrf.mxu1  ;;  %v723_v58 = vmax.f32 %v654_v52, 0.0 }
  0xe8   : > { %v1168_v59 = vpack.c.bf16 %v723_v58, %v722_v57  ;;  %v604_v60 = vpop.f32.mrf.mxu2 }
  0xe9   : > { %v605_v62 = vadd.f32 %v1463_v50, %v604_v60  ;;  %v567_v0 = vpop.f32.mrf.mxu0 }
  0xea   : > { %1232 = vst [vmem:[%s1473_s23 + $0x18] sm:$0xff] %v1168_v59   ;;  %v568_v5 = vadd.f32 %v1463_v50, %v567_v0 }
  0xeb   : > { %v694_v1 = vadd.f32 %v693_v40, %v605_v62 }
  0xec   : > { %v657_v10 = vadd.f32 %v656_v32, %v568_v5  ;;  %v588_v5 = vadd.f32 %v1463_v50, %v1466_v53 }
  0xed   : > { %v739_v3 = vmax.f32 %v694_v1, 0.0  ;;  %v706_v45 = vpop.f32.mrf.mxu3 }
  0xee   : > { %v663_v4 = vpop.f32.mrf.mxu1  ;;  %v724_v15 = vmax.f32 %v657_v10, 0.0 }
  0xef   : > { %v1208_v7 = vpack.c.bf16 %v739_v3, %v738_v2 }
  0xf0   : > { %v607_v8 = vpop.f32.mrf.mxu2 }
  0xf1   : > { %1240 = vst [vmem:[%s1473_s23 + $0x58] sm:$0xff] %v1208_v7   ;;  %v569_v9 = vpop.f32.mrf.mxu0  ;;  %v608_v13 = vadd.f32 %v1463_v50, %v607_v8  ;;  %v590_v7 = vadd.f32 %v1463_v50, %v1475_v63 }
  0xf2   : > { %v570_v11 = vadd.f32 %v1463_v50, %v569_v9 }
  0xf3   : > { %v697_v20 = vadd.f32 %v696_v54, %v608_v13 }
  0xf4   : > { %v659_v12 = vadd.f32 %v658_v44, %v570_v11 }
  0xf5   : > { %v740_v24 = vmax.f32 %v697_v20, 0.0  ;;  %v708_v62 = vpop.f32.mrf.mxu3 }
  0xf6   : > { %v666_v14 = vpop.f32.mrf.mxu1  ;;  %v725_v16 = vmax.f32 %v659_v12, 0.0 }
  0xf8   : > { %v1173_v17 = vpack.c.bf16 %v725_v16, %v724_v15  ;;  %v609_v18 = vpop.f32.mrf.mxu2 }
  0xf9   : > { %v610_v21 = vadd.f32 %v1463_v50, %v609_v18  ;;  %v572_v22 = vpop.f32.mrf.mxu0 }
  0xfa   : > { %1233 = vst [vmem:[%s1473_s23 + $0x20] sm:$0xff] %v1173_v17   ;;  %v573_v27 = vadd.f32 %v1463_v50, %v572_v22 }
  0xfb   : > { %v699_v23 = vadd.f32 %v698_v6, %v610_v21 }
  0xfc   : > { %v662_v31 = vadd.f32 %v661_v56, %v573_v27 }
  0xfd   : > { %v741_v25 = vmax.f32 %v699_v23, 0.0  ;;  %v711_v16 = vpop.f32.mrf.mxu3 }
  0xfe   : > { %v668_v26 = vpop.f32.mrf.mxu1  ;;  %v726_v37 = vmax.f32 %v662_v31, 0.0 }
  0xff   : > { %v1213_v28 = vpack.c.bf16 %v741_v25, %v740_v24 }
 0x100   : > { %v612_v29 = vpop.f32.mrf.mxu2 }
 0x101   : > { %1241 = vst [vmem:[%s1473_s23 + $0x60] sm:$0xff] %v1213_v28   ;;  %v574_v30 = vpop.f32.mrf.mxu0  ;;  %v613_v35 = vadd.f32 %v1463_v50, %v612_v29 }
 0x102   : > { %v575_v32 = vadd.f32 %v1463_v50, %v574_v30 }
 0x103   : > { %v702_v41 = vadd.f32 %v701_v19, %v613_v35 }
 0x104   : > { %v664_v34 = vadd.f32 %v663_v4, %v575_v32 }
 0x105   : > { %v742_v46 = vmax.f32 %v702_v41, 0.0  ;;  %v713_v29 = vpop.f32.mrf.mxu3 }
 0x106   : > { %v671_v36 = vpop.f32.mrf.mxu1  ;;  %v727_v38 = vmax.f32 %v664_v34, 0.0 }
 0x108   : > { %v1178_v39 = vpack.c.bf16 %v727_v38, %v726_v37  ;;  %v614_v40 = vpop.f32.mrf.mxu2 }
 0x109   : > { %v615_v42 = vadd.f32 %v1463_v50, %v614_v40  ;;  %v577_v43 = vpop.f32.mrf.mxu0 }
 0x10a   : > { %1234 = vst [vmem:[%s1473_s23 + $0x28] sm:$0xff] %v1178_v39   ;;  %v578_v49 = vadd.f32 %v1463_v50, %v577_v43 }
 0x10b   : > { %v704_v44 = vadd.f32 %v703_v33, %v615_v42 }
 0x10c   : > { %v667_v55 = vadd.f32 %v666_v14, %v578_v49 }
 0x10d   : > { %v743_v47 = vmax.f32 %v704_v44, 0.0 }
 0x10e   : > { %v673_v48 = vpop.f32.mrf.mxu1  ;;  %v728_v60 = vmax.f32 %v667_v55, 0.0 }
 0x10f   : > { %v1218_v51 = vpack.c.bf16 %v743_v47, %v742_v46 }
 0x110   : > { %v617_v52 = vpop.f32.mrf.mxu2 }
 0x111   : > { %1242 = vst [vmem:[%s1473_s23 + $0x68] sm:$0xff] %v1218_v51   ;;  %v579_v54 = vpop.f32.mrf.mxu0  ;;  %v618_v58 = vadd.f32 %v1463_v50, %v617_v52 }
 0x112   : > { %v580_v56 = vadd.f32 %v1463_v50, %v579_v54 }
 0x113   : > { %v707_v2 = vadd.f32 %v706_v45, %v618_v58 }
 0x114   : > { %v669_v57 = vadd.f32 %v668_v26, %v580_v56 }
 0x115   : > { %v744_v9 = vmax.f32 %v707_v2, 0.0 }
 0x116   : > { %v676_v59 = vpop.f32.mrf.mxu1  ;;  %v729_v61 = vmax.f32 %v669_v57, 0.0 }
 0x117   : > { %v677_v8 = vadd.f32 %v676_v59, %v588_v5 }
 0x118   : > { %v1183_v0 = vpack.c.bf16 %v729_v61, %v728_v60  ;;  %v619_v1 = vpop.f32.mrf.mxu2 }
 0x119   : > { %v620_v3 = vadd.f32 %v1463_v50, %v619_v1  ;;  %v582_v4 = vpop.f32.mrf.mxu0  ;;  %v732_v15 = vmax.f32 %v677_v8, 0.0 }
 0x11a   : > { %1235 = vst [vmem:[%s1473_s23 + $0x30] sm:$0xff] %v1183_v0   ;;  %v583_v12 = vadd.f32 %v1463_v50, %v582_v4 }
 0x11b   : > { %v709_v6 = vadd.f32 %v708_v62, %v620_v3 }
 0x11c   : > { %v672_v19 = vadd.f32 %v671_v36, %v583_v12 }
 0x11d   : > { %v745_v10 = vmax.f32 %v709_v6, 0.0 }
 0x11e   : > { %v678_v11 = vpop.f32.mrf.mxu1  ;;  %v730_v23 = vmax.f32 %v672_v19, 0.0 }
 0x11f   : > { %v679_v13 = vadd.f32 %v678_v11, %v590_v7  ;;  %v1223_v14 = vpack.c.bf16 %v745_v10, %v744_v9 }
 0x120   : > { %v622_v18 = vpop.f32.mrf.mxu2 }
 0x121   : > { %v733_v17 = vmax.f32 %v679_v13, 0.0  ;;  %1243 = vst [vmem:[%s1473_s23 + $0x70] sm:$0xff] %v1223_v14   ;;  %v584_v53 = vpop.f32.mrf.mxu0  ;;  %v623_v22 = vadd.f32 %v1463_v50, %v622_v18 }
 0x122   : > { %v585_v63 = vadd.f32 %v1463_v50, %v584_v53 }
 0x123   : > { %v1193_v20 = vpack.c.bf16 %v733_v17, %v732_v15  ;;  %v712_v27 = vadd.f32 %v711_v16, %v623_v22 }
 0x124   : > { %v674_v21 = vadd.f32 %v673_v48, %v585_v63 }
 0x125   : > { %1237 = vst [vmem:[%s1473_s23 + $0x40] sm:$0xff] %v1193_v20   ;;  %v746_v31 = vmax.f32 %v712_v27, 0.0 }
 0x126   : > { %v731_v24 = vmax.f32 %v674_v21, 0.0 }
 0x128   : > { %v1188_v25 = vpack.c.bf16 %v731_v24, %v730_v23  ;;  %v624_v26 = vpop.f32.mrf.mxu2 }
 0x129   : > { %v625_v28 = vadd.f32 %v1463_v50, %v624_v26 }
 0x12a   : > { %1236 = vst [vmem:[%s1473_s23 + $0x38] sm:$0xff] %v1188_v25  }
 0x12b   : > { %v714_v30 = vadd.f32 %v713_v29, %v625_v28 }
 0x12d   : > { %v747_v32 = vmax.f32 %v714_v30, 0.0 }
 0x12f   : > { %v1228_v33 = vpack.c.bf16 %v747_v32, %v746_v31 }
 0x131   : > { %1244 = vst [vmem:[%s1473_s23 + $0x78] sm:$0xff] %v1228_v33  }
 0x132 PF: > { %s13_s14 = sadd.s32 1, %s1302_s14   ;;  %s1538_s12 = smov %s1298_s13 }
 0x133   : > { %p10_p5 = scmp.ge.s32.totalorder %s13_s14, 4   ;;  %s1539_s13 = smov %s1541_s15 }
 0x135   :  { %12 = sbr.rel (!%p10_p5) target bundleno = 2 (0x2), region = 68 }

// kernel: resnet_unet_forward.13
= control target key start
LH: loop header
LB: loop body
LE: loop exit
PB: predicated region body
PF: predicated region fallthrough
CT: control target
= control target key end

     0   :  { %s856_s12 = smov 0   ;;  %s858_s13 = smov 0   ;;  %s1010_s0 = inlined_call_operand.vmem [shape: bf16[2048,64], index: 0, kind: input, shape index: {}]   ;;  %s1011_s1 = inlined_call_operand.vmem [shape: bf16[64,128], index: 1, kind: input, shape index: {}]   ;;  %s1012_s2 = inlined_call_operand.vmem [shape: f32[1,128], index: 2, kind: input, shape index: {}]   ;;  %s1013_s3 = inlined_call_operand.vmem [shape: f32[2048,128], index: 3, kind: output, shape index: {}]  }
   0x1   :  { %s860_s14 = smov 0  }
   0x2 LB: > { %s25_s15 = sadd.s32 1, %s830_s13  ;;  %p652_p0 = scmp.ge.s32.totalorder %s834_s14, 1  ;;  %s834_s14 = sphi %s860_s14, %s13_s14   ;;  %s830_s13 = sphi %s858_s13, %s1015_s13   ;;  %s826_s12 = sphi %s856_s12, %s1014_s12  }
   0x3   : > { %p27_p1 = scmp.ge.s32.totalorder %s25_s15, 8  ;;  %p169_p2 = scmp.lt.s32.totalorder %s834_s14, 9 }
   0x5   : > { %s1017_s15 = smov (%p27_p1, %s25_s15), 0  ;;  %p170_p3 = pnand %p652_p0, %p169_p2 }
   0x6   : > { %s653_s18 = sshll.u32 (!%p170_p3), %s826_s12, 5 }
   0x7   : > { %173 = sbr.rel (%p170_p3) target bundleno = 221 (0xdd), region = 32  ;;  %p204_p4 = scmp.lt.s32.totalorder (!%p170_p3), %s653_s18, 255 }
   0xc   : > { %v774_v0 = vld [vmem:[%s1011_s1 + $0x18] sm:$0xff]  ;;  %v773_v1 = vld [vmem:[%s1011_s1 + $0x10] sm:$0xff]  ;;  %s1019_s18 = smov (!%p204_p4, %s653_s18), 255  ;;  %v772_v2 = vld [vmem:[%s1011_s1 + $0x8] sm:$0xff]  ;;  %vm374_vm0 = vcmask 523264  }
   0xd   : > { %427 = vmatpush.bf16.msra.mxu0 %v774_v0  ;;  %775 = vmatpush.bf16.msra.mxu1 %v774_v0  ;;  %s654_s23 = sshll.u32 %s1019_s18, 2  ;;  %v771_v3 = vld [vmem:[%s1011_s1] sm:$0xff]  ;;  %s656_s29 = sshll.u32 %s1019_s18, 3 }
   0xe   : > { %776 = vmatpush.bf16.msra.mxu2 %v774_v0  ;;  %777 = vmatpush.bf16.msra.mxu3 %v774_v0  ;;  %s892_s28 = scalar_lea.vmem %s1010_s0, %s654_s23  ;;  %v930_v20 = vld [vmem:[%s1012_s2] ss:$0 sm:$0xff]  ;;  %s935_s7 = scalar_lea.vmem %s1013_s3, %s656_s29 }
   0xf   : > { %v755_v4 = vld [vmem:[%s892_s28] sm:$0xff]  ;;  %v756_v8 = vld [vmem:[%s892_s28 + $0x8] sm:$0xff]  ;;  %v757_v12 = vld [vmem:[%s892_s28 + $0x10] sm:$0xff] }
  0x10   : > { %v759_v5 = vld [vmem:[%s892_s28 + $0x20] sm:$0xff]  ;;  %v760_v9 = vld [vmem:[%s892_s28 + $0x28] sm:$0xff]  ;;  %v761_v13 = vld [vmem:[%s892_s28 + $0x30] sm:$0xff] }
  0x11   : > { %428 = vmatpush.bf16.msra.mxu0 %v773_v1  ;;  %778 = vmatpush.bf16.msra.mxu1 %v773_v1  ;;  %v763_v6 = vld [vmem:[%s892_s28 + $0x40] sm:$0xff]  ;;  %v764_v10 = vld [vmem:[%s892_s28 + $0x48] sm:$0xff]  ;;  %v765_v14 = vld [vmem:[%s892_s28 + $0x50] sm:$0xff] }
  0x12   : > { %779 = vmatpush.bf16.msra.mxu2 %v773_v1  ;;  %780 = vmatpush.bf16.msra.mxu3 %v773_v1  ;;  %v767_v7 = vld [vmem:[%s892_s28 + $0x60] sm:$0xff]  ;;  %v768_v11 = vld [vmem:[%s892_s28 + $0x68] sm:$0xff]  ;;  %v769_v15 = vld [vmem:[%s892_s28 + $0x70] sm:$0xff] }
  0x13   : > { %v758_v16 = vld [vmem:[%s892_s28 + $0x18] sm:$0xff] }
  0x14   : > { %v762_v17 = vld [vmem:[%s892_s28 + $0x38] sm:$0xff] }
  0x15   : > { %429 = vmatpush.bf16.msra.mxu0 %v772_v2  ;;  %781 = vmatpush.bf16.msra.mxu1 %v772_v2  ;;  %v766_v18 = vld [vmem:[%s892_s28 + $0x58] sm:$0xff] }
  0x16   : > { %782 = vmatpush.bf16.msra.mxu2 %v772_v2  ;;  %783 = vmatpush.bf16.msra.mxu3 %v772_v2  ;;  %v770_v19 = vld [vmem:[%s892_s28 + $0x78] sm:$0xff] }
  0x19   : > { %430 = vmatpush.bf16.msra.mxu0 %v771_v3  ;;  %784 = vmatpush.bf16.msra.mxu1 %v771_v3 }
  0x1a   : > { %785 = vmatpush.bf16.msra.mxu2 %v771_v3  ;;  %786 = vmatpush.bf16.msra.mxu3 %v771_v3 }
  0x1c   : > { %737 = vmatmul.msk.bf16.vlgmr.msra.gmra.mxu0 %vm374_vm0, %v755_v4  ;;  %741 = vmatmul.msk.bf16.vlgmr.msra.gmra.mxu1 %vm374_vm0, %v759_v5 }
  0x1d   : > { %745 = vmatmul.msk.bf16.vlgmr.msra.gmra.mxu2 %vm374_vm0, %v763_v6  ;;  %749 = vmatmul.msk.bf16.vlgmr.msra.gmra.mxu3 %vm374_vm0, %v767_v7 }
  0x2c   : > { %738 = vmatmul.msk.bf16.gmra.mxu0 %vm374_vm0, %v756_v8  ;;  %742 = vmatmul.msk.bf16.gmra.mxu1 %vm374_vm0, %v760_v9 }
  0x2d   : > { %746 = vmatmul.msk.bf16.gmra.mxu2 %vm374_vm0, %v764_v10  ;;  %750 = vmatmul.msk.bf16.gmra.mxu3 %vm374_vm0, %v768_v11 }
  0x3c   : > { %739 = vmatmul.msk.bf16.gmra.mxu0 %vm374_vm0, %v757_v12  ;;  %743 = vmatmul.msk.bf16.gmra.mxu1 %vm374_vm0, %v761_v13 }
  0x3d   : > { %747 = vmatmul.msk.bf16.gmra.mxu2 %vm374_vm0, %v765_v14  ;;  %751 = vmatmul.msk.bf16.gmra.mxu3 %vm374_vm0, %v769_v15 }
  0x4c   : > { %740 = vmatmul.msk.bf16.gmra.mxu0 %vm374_vm0, %v758_v16  ;;  %744 = vmatmul.msk.bf16.gmra.mxu1 %vm374_vm0, %v762_v17 }
  0x4d   : > { %748 = vmatmul.msk.bf16.gmra.mxu2 %vm374_vm0, %v766_v18  ;;  %752 = vmatmul.msk.bf16.gmra.mxu3 %vm374_vm0, %v770_v19 }
  0x99   : > { %v432_v21 = vpop.f32.mrf.mxu0  ;;  %v452_v22 = vpop.f32.mrf.mxu1 }
  0x9a   : > { %v433_v23 = vadd.f32 %v930_v20, %v432_v21  ;;  %v453_v24 = vadd.f32 %v930_v20, %v452_v22 }
  0x9c   : > { %512 = vst [vmem:[%s935_s7] sm:$0xff] %v433_v23 }
  0x9d   : > { %520 = vst [vmem:[%s935_s7 + $0x40] sm:$0xff] %v453_v24 }
  0xa0   : > { %v472_v25 = vpop.f32.mrf.mxu2  ;;  %v492_v26 = vpop.f32.mrf.mxu3 }
  0xa1   : > { %v473_v27 = vadd.f32 %v930_v20, %v472_v25  ;;  %v493_v28 = vadd.f32 %v930_v20, %v492_v26  ;;  %v434_v29 = vpop.f32.mrf.mxu0  ;;  %v454_v30 = vpop.f32.mrf.mxu1 }
  0xa2   : > { %v435_v31 = vadd.f32 %v930_v20, %v434_v29  ;;  %v455_v32 = vadd.f32 %v930_v20, %v454_v30 }
  0xa3   : > { %528 = vst [vmem:[%s935_s7 + $0x80] sm:$0xff] %v473_v27 }
  0xa4   : > { %536 = vst [vmem:[%s935_s7 + $0xc0] sm:$0xff] %v493_v28 }
  0xa5   : > { %513 = vst [vmem:[%s935_s7 + $0x8] sm:$0xff] %v435_v31 }
  0xa6   : > { %521 = vst [vmem:[%s935_s7 + $0x48] sm:$0xff] %v455_v32 }
  0xa8   : > { %v474_v33 = vpop.f32.mrf.mxu2  ;;  %v494_v34 = vpop.f32.mrf.mxu3 }
  0xa9   : > { %v475_v35 = vadd.f32 %v930_v20, %v474_v33  ;;  %v495_v36 = vadd.f32 %v930_v20, %v494_v34  ;;  %v437_v37 = vpop.f32.mrf.mxu0  ;;  %v457_v38 = vpop.f32.mrf.mxu1 }
  0xaa   : > { %v438_v39 = vadd.f32 %v930_v20, %v437_v37  ;;  %v458_v40 = vadd.f32 %v930_v20, %v457_v38 }
  0xab   : > { %529 = vst [vmem:[%s935_s7 + $0x88] sm:$0xff] %v475_v35 }
  0xac   : > { %537 = vst [vmem:[%s935_s7 + $0xc8] sm:$0xff] %v495_v36 }
  0xad   : > { %514 = vst [vmem:[%s935_s7 + $0x10] sm:$0xff] %v438_v39 }
  0xae   : > { %522 = vst [vmem:[%s935_s7 + $0x50] sm:$0xff] %v458_v40 }
  0xb0   : > { %v477_v41 = vpop.f32.mrf.mxu2  ;;  %v497_v42 = vpop.f32.mrf.mxu3 }
  0xb1   : > { %v478_v43 = vadd.f32 %v930_v20, %v477_v41  ;;  %v498_v44 = vadd.f32 %v930_v20, %v497_v42  ;;  %v439_v45 = vpop.f32.mrf.mxu0  ;;  %v459_v46 = vpop.f32.mrf.mxu1 }
  0xb2   : > { %v440_v47 = vadd.f32 %v930_v20, %v439_v45  ;;  %v460_v48 = vadd.f32 %v930_v20, %v459_v46 }
  0xb3   : > { %530 = vst [vmem:[%s935_s7 + $0x90] sm:$0xff] %v478_v43 }
  0xb4   : > { %538 = vst [vmem:[%s935_s7 + $0xd0] sm:$0xff] %v498_v44 }
  0xb5   : > { %515 = vst [vmem:[%s935_s7 + $0x18] sm:$0xff] %v440_v47 }
  0xb6   : > { %523 = vst [vmem:[%s935_s7 + $0x58] sm:$0xff] %v460_v48 }
  0xb8   : > { %v479_v49 = vpop.f32.mrf.mxu2  ;;  %v499_v50 = vpop.f32.mrf.mxu3 }
  0xb9   : > { %v480_v51 = vadd.f32 %v930_v20, %v479_v49  ;;  %v500_v52 = vadd.f32 %v930_v20, %v499_v50  ;;  %v442_v53 = vpop.f32.mrf.mxu0  ;;  %v462_v54 = vpop.f32.mrf.mxu1 }
  0xba   : > { %v443_v55 = vadd.f32 %v930_v20, %v442_v53  ;;  %v463_v56 = vadd.f32 %v930_v20, %v462_v54 }
  0xbb   : > { %531 = vst [vmem:[%s935_s7 + $0x98] sm:$0xff] %v480_v51 }
  0xbc   : > { %539 = vst [vmem:[%s935_s7 + $0xd8] sm:$0xff] %v500_v52 }
  0xbd   : > { %516 = vst [vmem:[%s935_s7 + $0x20] sm:$0xff] %v443_v55 }
  0xbe   : > { %524 = vst [vmem:[%s935_s7 + $0x60] sm:$0xff] %v463_v56 }
  0xc0   : > { %v482_v57 = vpop.f32.mrf.mxu2  ;;  %v502_v58 = vpop.f32.mrf.mxu3 }
  0xc1   : > { %v483_v59 = vadd.f32 %v930_v20, %v482_v57  ;;  %v503_v60 = vadd.f32 %v930_v20, %v502_v58  ;;  %v444_v61 = vpop.f32.mrf.mxu0  ;;  %v464_v62 = vpop.f32.mrf.mxu1 }
  0xc2   : > { %v445_v63 = vadd.f32 %v930_v20, %v444_v61  ;;  %v465_v0 = vadd.f32 %v930_v20, %v464_v62 }
  0xc3   : > { %532 = vst [vmem:[%s935_s7 + $0xa0] sm:$0xff] %v483_v59 }
  0xc4   : > { %540 = vst [vmem:[%s935_s7 + $0xe0] sm:$0xff] %v503_v60 }
  0xc5   : > { %517 = vst [vmem:[%s935_s7 + $0x28] sm:$0xff] %v445_v63 }
  0xc6   : > { %525 = vst [vmem:[%s935_s7 + $0x68] sm:$0xff] %v465_v0 }
  0xc8   : > { %v484_v1 = vpop.f32.mrf.mxu2  ;;  %v504_v2 = vpop.f32.mrf.mxu3 }
  0xc9   : > { %v485_v3 = vadd.f32 %v930_v20, %v484_v1  ;;  %v505_v4 = vadd.f32 %v930_v20, %v504_v2  ;;  %v447_v5 = vpop.f32.mrf.mxu0  ;;  %v467_v6 = vpop.f32.mrf.mxu1 }
  0xca   : > { %v448_v7 = vadd.f32 %v930_v20, %v447_v5  ;;  %v468_v8 = vadd.f32 %v930_v20, %v467_v6 }
  0xcb   : > { %533 = vst [vmem:[%s935_s7 + $0xa8] sm:$0xff] %v485_v3 }
  0xcc   : > { %541 = vst [vmem:[%s935_s7 + $0xe8] sm:$0xff] %v505_v4 }
  0xcd   : > { %518 = vst [vmem:[%s935_s7 + $0x30] sm:$0xff] %v448_v7 }
  0xce   : > { %526 = vst [vmem:[%s935_s7 + $0x70] sm:$0xff] %v468_v8 }
  0xd0   : > { %v487_v9 = vpop.f32.mrf.mxu2  ;;  %v507_v10 = vpop.f32.mrf.mxu3 }
  0xd1   : > { %v488_v11 = vadd.f32 %v930_v20, %v487_v9  ;;  %v508_v12 = vadd.f32 %v930_v20, %v507_v10  ;;  %v449_v13 = vpop.f32.mrf.mxu0  ;;  %v469_v14 = vpop.f32.mrf.mxu1 }
  0xd2   : > { %v450_v15 = vadd.f32 %v930_v20, %v449_v13  ;;  %v470_v16 = vadd.f32 %v930_v20, %v469_v14 }
  0xd3   : > { %534 = vst [vmem:[%s935_s7 + $0xb0] sm:$0xff] %v488_v11 }
  0xd4   : > { %542 = vst [vmem:[%s935_s7 + $0xf0] sm:$0xff] %v508_v12 }
  0xd5   : > { %519 = vst [vmem:[%s935_s7 + $0x38] sm:$0xff] %v450_v15 }
  0xd6   : > { %527 = vst [vmem:[%s935_s7 + $0x78] sm:$0xff] %v470_v16 }
  0xd8   : > { %v489_v17 = vpop.f32.mrf.mxu2  ;;  %v509_v18 = vpop.f32.mrf.mxu3 }
  0xd9   : > { %v490_v19 = vadd.f32 %v930_v20, %v489_v17  ;;  %v510_v21 = vadd.f32 %v930_v20, %v509_v18 }
  0xdb   : > { %535 = vst [vmem:[%s935_s7 + $0xb8] sm:$0xff] %v490_v19 }
  0xdc   : > { %543 = vst [vmem:[%s935_s7 + $0xf8] sm:$0xff] %v510_v21 }
  0xdd PF: > { %s13_s14 = sadd.s32 1, %s834_s14   ;;  %s1014_s12 = smov %s830_s13 }
  0xde   : > { %p10_p5 = scmp.ge.s32.totalorder %s13_s14, 10   ;;  %s1015_s13 = smov %s1017_s15 }
  0xe0   :  { %12 = sbr.rel (!%p10_p5) target bundleno = 2 (0x2), region = 68 }

// kernel: resnet_unet_forward.11
= control target key start
LH: loop header
LB: loop body
LE: loop exit
PB: predicated region body
PF: predicated region fallthrough
CT: control target
= control target key end

     0   :  { %s3985_s12 = smov 0   ;;  %s3987_s13 = smov 0   ;;  %s4778_s0 = inlined_call_operand.vmem [shape: bf16[2048,1152], index: 0, kind: input, shape index: {}]   ;;  %s4779_s1 = inlined_call_operand.vmem [shape: bf16[1152,128], index: 1, kind: input, shape index: {}]   ;;  %s4780_s2 = inlined_call_operand.vmem [shape: f32[1,128], index: 2, kind: input, shape index: {}]   ;;  %s4781_s3 = inlined_call_operand.vmem [shape: bf16[2048,128], index: 3, kind: output, shape index: {}]  }
   0x1   :  { %s3989_s14 = smov 0  }
   0x2 LB: > { %s25_s15 = sadd.s32 1, %s3959_s13  ;;  %p2709_p0 = scmp.ge.s32.totalorder %s3963_s14, 1  ;;  %s3963_s14 = sphi %s3989_s14, %s13_s14   ;;  %s3959_s13 = sphi %s3987_s13, %s4783_s13   ;;  %s3955_s12 = sphi %s3985_s12, %s4782_s12  }
   0x3   : > { %p27_p1 = scmp.ge.s32.totalorder %s25_s15, 8  ;;  %p170_p2 = scmp.lt.s32.totalorder %s3963_s14, 9 }
   0x5   : > { %s4785_s15 = smov (%p27_p1, %s25_s15), 0  ;;  %p171_p3 = pnand %p2709_p0, %p170_p2 }
   0x6   : > { %s2710_s22 = sshll.u32 (!%p171_p3), %s3955_s12, 5 }
   0x7   : > { %174 = sbr.rel (%p171_p3) target bundleno = 755 (0x2f3), region = 32  ;;  %p206_p4 = scmp.lt.s32.totalorder (!%p171_p3), %s2710_s22, 255 }
   0xc   : > { %v3731_v0 = vld [vmem:[%s4779_s1 + $0x38] sm:$0xff]  ;;  %v3730_v1 = vld [vmem:[%s4779_s1 + $0x30] sm:$0xff]  ;;  %v3729_v2 = vld [vmem:[%s4779_s1 + $0x28] sm:$0xff]  ;;  %s4787_s22 = smov (!%p206_p4, %s2710_s22), 255 }
   0xd   : > { %3891 = vmatpush.bf16.msra.mxu1 %v3731_v0  ;;  %3892 = vmatpush.bf16.msra.mxu2 %v3731_v0  ;;  %v3728_v3 = vld [vmem:[%s4779_s1 + $0x20] sm:$0xff]  ;;  %v3727_v4 = vld [vmem:[%s4779_s1 + $0x18] sm:$0xff]  ;;  %v3726_v5 = vld [vmem:[%s4779_s1 + $0x10] sm:$0xff]  ;;  %s3915_s29 = smul.u32 36, %s4787_s22  ;;  %s2713_s8 = sshll.u32 %s4787_s22, 2 }
   0xe   : > { %3893 = vmatpush.bf16.msra.mxu3 %v3731_v0  ;;  %1704 = vmatpush.bf16.msra.mxu0 %v3731_v0  ;;  %v3725_v6 = vld [vmem:[%s4779_s1 + $0x8] sm:$0xff]  ;;  %v3724_v7 = vld [vmem:[%s4779_s1] sm:$0xff]  ;;  %v3747_v16 = vld [vmem:[%s4779_s1 + $0xb8] sm:$0xff]  ;;  %s4673_s11 = scalar_lea.vmem %s4781_s3, %s2713_s8 }
   0xf   : > { %s4033_s7 = scalar_lea.vmem %s4778_s0, %s3915_s29  ;;  %v3755_v17 = vld [vmem:[%s4779_s1 + $0xf8] sm:$0xff]  ;;  %v3746_v24 = vld [vmem:[%s4779_s1 + $0xb0] sm:$0xff]  ;;  %v3745_v28 = vld [vmem:[%s4779_s1 + $0xa8] sm:$0xff] }
  0x10   : > { %v2860_v8 = vld [vmem:[%s4033_s7 + $0x120] sm:$0xf]  ;;  %v3620_v9 = vld [vmem:[%s4033_s7 + $0x140] sm:$0xf0]  ;;  %v3739_v22 = vld [vmem:[%s4779_s1 + $0x78] sm:$0xff] }
  0x11   : > { %3894 = vmatpush.bf16.msra.mxu1 %v3730_v1  ;;  %3895 = vmatpush.bf16.msra.mxu2 %v3730_v1  ;;  %v3004_v10 = vld [vmem:[%s4033_s7 + $0x240] sm:$0xf]  ;;  %v3656_v11 = vld [vmem:[%s4033_s7 + $0x260] sm:$0xf0]  ;;  %v2861_v18 = vor.u32 %v3620_v9, %v2860_v8  ;;  %v3763_v23 = vld [vmem:[%s4779_s1 + $0x138] sm:$0xff] }
  0x12   : > { %3896 = vmatpush.bf16.msra.mxu3 %v3730_v1  ;;  %1705 = vmatpush.bf16.msra.mxu0 %v3730_v1  ;;  %v3148_v12 = vld [vmem:[%s4033_s7 + $0x360] sm:$0xf]  ;;  %v3692_v13 = vld [vmem:[%s4033_s7 + $0x380] sm:$0xf0]  ;;  %v3005_v19 = vor.u32 %v3656_v11, %v3004_v10  ;;  %v3754_v25 = vld [vmem:[%s4779_s1 + $0xf0] sm:$0xff] }
  0x13   : > { %v2716_v14 = vld [vmem:[%s4033_s7] sm:$0xf]  ;;  %v3584_v15 = vld [vmem:[%s4033_s7 + $0x20] sm:$0xf0]  ;;  %v3149_v20 = vor.u32 %v3692_v13, %v3148_v12  ;;  %v3738_v26 = vld [vmem:[%s4779_s1 + $0x70] sm:$0xff] }
  0x14   : > { %v2717_v21 = vor.u32 %v3584_v15, %v2716_v14  ;;  %v3762_v27 = vld [vmem:[%s4779_s1 + $0x130] sm:$0xff]  ;;  %v3753_v29 = vld [vmem:[%s4779_s1 + $0xe8] sm:$0xff]  ;;  %v3744_v33 = vld [vmem:[%s4779_s1 + $0xa0] sm:$0xff] }
  0x15   : > { %3897 = vmatpush.bf16.msra.mxu1 %v3729_v2  ;;  %3898 = vmatpush.bf16.msra.mxu2 %v3729_v2  ;;  %v3737_v30 = vld [vmem:[%s4779_s1 + $0x68] sm:$0xff]  ;;  %v3752_v34 = vld [vmem:[%s4779_s1 + $0xe0] sm:$0xff]  ;;  %v3743_v44 = vld [vmem:[%s4779_s1 + $0x98] sm:$0xff] }
  0x16   : > { %3899 = vmatpush.bf16.msra.mxu3 %v3729_v2  ;;  %1706 = vmatpush.bf16.msra.mxu0 %v3729_v2  ;;  %v3761_v31 = vld [vmem:[%s4779_s1 + $0x128] sm:$0xff]  ;;  %v3736_v42 = vld [vmem:[%s4779_s1 + $0x60] sm:$0xff]  ;;  %v3751_v45 = vld [vmem:[%s4779_s1 + $0xd8] sm:$0xff] }
  0x17   : > { %v2896_v32 = vld [vmem:[%s4033_s7 + $0x168] sm:$0xf]  ;;  %v3629_v35 = vld [vmem:[%s4033_s7 + $0x188] sm:$0xf0]  ;;  %v3760_v43 = vld [vmem:[%s4779_s1 + $0x120] sm:$0xff] }
  0x18   : > { %v3040_v36 = vld [vmem:[%s4033_s7 + $0x288] sm:$0xf]  ;;  %v3665_v37 = vld [vmem:[%s4033_s7 + $0x2a8] sm:$0xf0]  ;;  %v2897_v46 = vor.u32 %v3629_v35, %v2896_v32  ;;  %v3735_v50 = vld [vmem:[%s4779_s1 + $0x58] sm:$0xff] }
  0x19   : > { %3900 = vmatpush.bf16.msra.mxu1 %v3728_v3  ;;  %3901 = vmatpush.bf16.msra.mxu2 %v3728_v3  ;;  %v3184_v38 = vld [vmem:[%s4033_s7 + $0x3a8] sm:$0xf]  ;;  %v3701_v39 = vld [vmem:[%s4033_s7 + $0x3c8] sm:$0xf0]  ;;  %v3041_v47 = vor.u32 %v3665_v37, %v3040_v36  ;;  %v3759_v51 = vld [vmem:[%s4779_s1 + $0x118] sm:$0xff] }
  0x1a   : > { %3902 = vmatpush.bf16.msra.mxu3 %v3728_v3  ;;  %1707 = vmatpush.bf16.msra.mxu0 %v3728_v3  ;;  %v2752_v40 = vld [vmem:[%s4033_s7 + $0x48] sm:$0xf]  ;;  %v3593_v41 = vld [vmem:[%s4033_s7 + $0x68] sm:$0xf0]  ;;  %v3185_v48 = vor.u32 %v3701_v39, %v3184_v38  ;;  %v3742_v52 = vld [vmem:[%s4779_s1 + $0x90] sm:$0xff] }
  0x1b   : > { %v2753_v49 = vor.u32 %v3593_v41, %v2752_v40  ;;  %v3750_v53 = vld [vmem:[%s4779_s1 + $0xd0] sm:$0xff]  ;;  %v3741_v56 = vld [vmem:[%s4779_s1 + $0x88] sm:$0xff]  ;;  %v3740_v61 = vld [vmem:[%s4779_s1 + $0x80] sm:$0xff] }
  0x1c   : > { %v3734_v54 = vld [vmem:[%s4779_s1 + $0x50] sm:$0xff]  ;;  %v3749_v57 = vld [vmem:[%s4779_s1 + $0xc8] sm:$0xff]  ;;  %v3748_v62 = vld [vmem:[%s4779_s1 + $0xc0] sm:$0xff] }
  0x1d   : > { %3903 = vmatpush.bf16.msra.mxu1 %v3727_v4  ;;  %3904 = vmatpush.bf16.msra.mxu2 %v3727_v4  ;;  %v3758_v55 = vld [vmem:[%s4779_s1 + $0x110] sm:$0xff]  ;;  %v3733_v58 = vld [vmem:[%s4779_s1 + $0x48] sm:$0xff]  ;;  %v3779_v12 = vld [vmem:[%s4779_s1 + $0x1b8] sm:$0xff] }
  0x1e   : > { %3905 = vmatpush.bf16.msra.mxu3 %v3727_v4  ;;  %1708 = vmatpush.bf16.msra.mxu0 %v3727_v4  ;;  %v3757_v59 = vld [vmem:[%s4779_s1 + $0x108] sm:$0xff]  ;;  %v2932_v60 = vld [vmem:[%s4033_s7 + $0x1b0] sm:$0xf]  ;;  %v3638_v63 = vld [vmem:[%s4033_s7 + $0x1d0] sm:$0xf0] }
  0x1f   : > { %v3076_v0 = vld [vmem:[%s4033_s7 + $0x2d0] sm:$0xf]  ;;  %v3674_v1 = vld [vmem:[%s4033_s7 + $0x2f0] sm:$0xf0]  ;;  %v2933_v8 = vor.u32 %v3638_v63, %v2932_v60  ;;  %v3787_v13 = vld [vmem:[%s4779_s1 + $0x1f8] sm:$0xff] }
  0x20   : > { %v3220_v2 = vld [vmem:[%s4033_s7 + $0x3f0] sm:$0xf]  ;;  %v3710_v3 = vld [vmem:[%s4033_s7 + $0x410] sm:$0xf0]  ;;  %v3077_v9 = vor.u32 %v3674_v1, %v3076_v0  ;;  %v3771_v14 = vld [vmem:[%s4779_s1 + $0x178] sm:$0xff] }
  0x21   : > { %3906 = vmatpush.bf16.msra.mxu1 %v3726_v5  ;;  %3907 = vmatpush.bf16.msra.mxu2 %v3726_v5  ;;  %v2788_v4 = vld [vmem:[%s4033_s7 + $0x90] sm:$0xf]  ;;  %v3221_v10 = vor.u32 %v3710_v3, %v3220_v2  ;;  %v3795_v15 = vld [vmem:[%s4779_s1 + $0x238] sm:$0xff]  ;;  %v3581_v32 = vld [vmem:[%s4033_s7 + $0xc] sm:$0xf] }
  0x22   : > { %3908 = vmatpush.bf16.msra.mxu3 %v3726_v5  ;;  %1709 = vmatpush.bf16.msra.mxu0 %v3726_v5  ;;  %v3602_v5 = vld [vmem:[%s4033_s7 + $0xb0] sm:$0xf0]  ;;  %v3599_v60 = vld [vmem:[%s4033_s7 + $0x9c] sm:$0xf]  ;;  %v3604_v63 = vld [vmem:[%s4033_s7 + $0xc0] sm:$0xf0] }
  0x23   : > { %v2789_v11 = vor.u32 %v3602_v5, %v2788_v4  ;;  %v3586_v35 = vld [vmem:[%s4033_s7 + $0x30] sm:$0xf0]  ;;  %v3777_v4 = vld [vmem:[%s4779_s1 + $0x1a8] sm:$0xff] }
  0x24   : > { %v3778_v40 = vld [vmem:[%s4779_s1 + $0x1b0] sm:$0xff]  ;;  %v3785_v5 = vld [vmem:[%s4779_s1 + $0x1e8] sm:$0xff] }
  0x25   : > { %3909 = vmatpush.bf16.msra.mxu1 %v3725_v6  ;;  %3910 = vmatpush.bf16.msra.mxu2 %v3725_v6  ;;  %v3786_v41 = vld [vmem:[%s4779_s1 + $0x1f0] sm:$0xff] }
  0x26   : > { %3911 = vmatpush.bf16.msra.mxu3 %v3725_v6  ;;  %1710 = vmatpush.bf16.msra.mxu0 %v3725_v6  ;;  %v3732_v6 = vld [vmem:[%s4779_s1 + $0x40] sm:$0xff] }
  0x29   : > { %3912 = vmatpush.bf16.msra.mxu1 %v3724_v7  ;;  %3913 = vmatpush.bf16.msra.mxu2 %v3724_v7 }
  0x2a   : > { %3914 = vmatpush.bf16.msra.mxu3 %v3724_v7  ;;  %1711 = vmatpush.bf16.msra.mxu0 %v3724_v7  ;;  %v3756_v7 = vld [vmem:[%s4779_s1 + $0x100] sm:$0xff] }
  0x2c   : > { %1732 = vmatmul.bf16.vlgmr.msra.gmra.mxu1 %v2861_v18  ;;  %1752 = vmatmul.bf16.vlgmr.msra.gmra.mxu2 %v3005_v19  ;;  %v3112_v18 = vld [vmem:[%s4033_s7 + $0x318] sm:$0xf]  ;;  %v3683_v19 = vld [vmem:[%s4033_s7 + $0x338] sm:$0xf0] }
  0x2d   : > { %1882 = vmatpush.bf16.msrb.mxu2 %v3747_v16  ;;  %1772 = vmatmul.bf16.vlgmr.msra.gmra.mxu3 %v3149_v20  ;;  %v2968_v16 = vld [vmem:[%s4033_s7 + $0x1f8] sm:$0xf] }
  0x2e   : > { %1971 = vmatpush.bf16.msrb.mxu3 %v3755_v17  ;;  %1712 = vmatmul.bf16.vlgmr.msra.gmra.mxu0 %v2717_v21  ;;  %v3647_v17 = vld [vmem:[%s4033_s7 + $0x218] sm:$0xf0]  ;;  %v3256_v20 = vld [vmem:[%s4033_s7 + $0x438] sm:$0xf] }
  0x2f   : > { %1793 = vmatpush.bf16.msrb.mxu1 %v3739_v22  ;;  %2060 = vmatpush.bf16.msrb.mxu0 %v3763_v23  ;;  %v3719_v21 = vld [vmem:[%s4033_s7 + $0x458] sm:$0xf0]  ;;  %v2824_v22 = vld [vmem:[%s4033_s7 + $0xd8] sm:$0xf] }
  0x30   : > { %v3611_v23 = vld [vmem:[%s4033_s7 + $0xf8] sm:$0xf0] }
  0x31   : > { %1883 = vmatpush.bf16.msrb.mxu2 %v3746_v24  ;;  %v2969_v24 = vor.u32 %v3647_v17, %v2968_v16 }
  0x32   : > { %1972 = vmatpush.bf16.msrb.mxu3 %v3754_v25  ;;  %v3113_v25 = vor.u32 %v3683_v19, %v3112_v18 }
  0x33   : > { %1794 = vmatpush.bf16.msrb.mxu1 %v3738_v26  ;;  %2061 = vmatpush.bf16.msrb.mxu0 %v3762_v27  ;;  %v3257_v26 = vor.u32 %v3719_v21, %v3256_v20  ;;  %v2825_v27 = vor.u32 %v3611_v23, %v2824_v22  ;;  %v4237_v20 = vld [vmem:[%s4780_s2] ss:$0 sm:$0xff]  ;;  %v3616_v21 = vld [vmem:[%s4033_s7 + $0x124] sm:$0xf]  ;;  %v2862_v22 = vld [vmem:[%s4033_s7 + $0x144] sm:$0xf0] }
  0x34   : > { %v2868_v23 = vld [vmem:[%s4033_s7 + $0x128] sm:$0xf] }
  0x35   : > { %1884 = vmatpush.bf16.msrb.mxu2 %v3745_v28  ;;  %v3580_v28 = vld [vmem:[%s4033_s7 + $0x4] sm:$0xf] }
  0x36   : > { %1973 = vmatpush.bf16.msrb.mxu3 %v3753_v29  ;;  %v2718_v29 = vld [vmem:[%s4033_s7 + $0x24] sm:$0xf0] }
  0x37   : > { %1795 = vmatpush.bf16.msrb.mxu1 %v3737_v30  ;;  %2062 = vmatpush.bf16.msrb.mxu0 %v3761_v31  ;;  %v2724_v30 = vld [vmem:[%s4033_s7 + $0x8] sm:$0xf]  ;;  %v3585_v31 = vld [vmem:[%s4033_s7 + $0x28] sm:$0xf0]  ;;  %v2721_v36 = vor.u32 %v3580_v28, %v2718_v29  ;;  %v3622_v28 = vld [vmem:[%s4033_s7 + $0x150] sm:$0xf0]  ;;  %v2865_v29 = vor.u32 %v3616_v21, %v2862_v22 }
  0x38   : > { %v2725_v37 = vor.u32 %v3585_v31, %v2724_v30 }
  0x39   : > { %1885 = vmatpush.bf16.msrb.mxu2 %v3744_v33  ;;  %v2726_v33 = vld [vmem:[%s4033_s7 + $0x2c] sm:$0xf0] }
  0x3a   : > { %1974 = vmatpush.bf16.msrb.mxu3 %v3752_v34  ;;  %v2732_v34 = vld [vmem:[%s4033_s7 + $0x10] sm:$0xf]  ;;  %v2729_v38 = vor.u32 %v3581_v32, %v2726_v33 }
  0x3b   : > { %1796 = vmatpush.bf16.msrb.mxu1 %v3736_v42  ;;  %2063 = vmatpush.bf16.msrb.mxu0 %v3760_v43  ;;  %v2733_v39 = vor.u32 %v3586_v35, %v2732_v34  ;;  %v3770_v42 = vld [vmem:[%s4779_s1 + $0x170] sm:$0xff] }
  0x3c   : > { %1737 = vmatmul.bf16.gmra.mxu1 %v2897_v46  ;;  %1757 = vmatmul.bf16.gmra.mxu2 %v3041_v47  ;;  %v3794_v43 = vld [vmem:[%s4779_s1 + $0x230] sm:$0xff] }
  0x3d   : > { %1886 = vmatpush.bf16.msrb.mxu2 %v3743_v44  ;;  %1777 = vmatmul.bf16.gmra.mxu3 %v3185_v48  ;;  %v3589_v44 = vld [vmem:[%s4033_s7 + $0x4c] sm:$0xf]  ;;  %v2760_v46 = vld [vmem:[%s4033_s7 + $0x50] sm:$0xf]  ;;  %v3594_v47 = vld [vmem:[%s4033_s7 + $0x70] sm:$0xf0] }
  0x3e   : > { %1975 = vmatpush.bf16.msrb.mxu3 %v3751_v45  ;;  %1717 = vmatmul.bf16.gmra.mxu0 %v2753_v49  ;;  %v2754_v45 = vld [vmem:[%s4033_s7 + $0x6c] sm:$0xf0]  ;;  %v3590_v48 = vld [vmem:[%s4033_s7 + $0x54] sm:$0xf]  ;;  %v2762_v49 = vld [vmem:[%s4033_s7 + $0x74] sm:$0xf0] }
  0x3f   : > { %1797 = vmatpush.bf16.msrb.mxu1 %v3735_v50  ;;  %2064 = vmatpush.bf16.msrb.mxu0 %v3759_v51  ;;  %v2768_v50 = vld [vmem:[%s4033_s7 + $0x58] sm:$0xf]  ;;  %v3595_v51 = vld [vmem:[%s4033_s7 + $0x78] sm:$0xf0] }
  0x41   : > { %1887 = vmatpush.bf16.msrb.mxu2 %v3742_v52  ;;  %v2757_v52 = vor.u32 %v3589_v44, %v2754_v45 }
  0x42   : > { %1976 = vmatpush.bf16.msrb.mxu3 %v3750_v53  ;;  %v2761_v53 = vor.u32 %v3594_v47, %v2760_v46  ;;  %v3792_v46 = vld [vmem:[%s4779_s1 + $0x220] sm:$0xff]  ;;  %v3625_v47 = vld [vmem:[%s4033_s7 + $0x16c] sm:$0xf] }
  0x43   : > { %1798 = vmatpush.bf16.msrb.mxu1 %v3734_v54  ;;  %2065 = vmatpush.bf16.msrb.mxu0 %v3758_v55  ;;  %v2765_v54 = vor.u32 %v3590_v48, %v2762_v49  ;;  %v2769_v55 = vor.u32 %v3595_v51, %v2768_v50  ;;  %v2898_v48 = vld [vmem:[%s4033_s7 + $0x18c] sm:$0xf0]  ;;  %v3630_v50 = vld [vmem:[%s4033_s7 + $0x190] sm:$0xf0] }
  0x44   : > { %v2904_v49 = vld [vmem:[%s4033_s7 + $0x170] sm:$0xf]  ;;  %v3626_v51 = vld [vmem:[%s4033_s7 + $0x174] sm:$0xf] }
  0x45   : > { %1888 = vmatpush.bf16.msrb.mxu2 %v3741_v56  ;;  %v3598_v56 = vld [vmem:[%s4033_s7 + $0x94] sm:$0xf] }
  0x46   : > { %1977 = vmatpush.bf16.msrb.mxu3 %v3749_v57  ;;  %v2790_v57 = vld [vmem:[%s4033_s7 + $0xb4] sm:$0xf0] }
  0x47   : > { %1799 = vmatpush.bf16.msrb.mxu1 %v3733_v58  ;;  %2066 = vmatpush.bf16.msrb.mxu0 %v3757_v59  ;;  %v2796_v58 = vld [vmem:[%s4033_s7 + $0x98] sm:$0xf]  ;;  %v3603_v59 = vld [vmem:[%s4033_s7 + $0xb8] sm:$0xf0]  ;;  %v2793_v0 = vor.u32 %v3598_v56, %v2790_v57 }
  0x48   : > { %v2797_v1 = vor.u32 %v3603_v59, %v2796_v58  ;;  %v2901_v58 = vor.u32 %v3625_v47, %v2898_v48  ;;  %v2905_v59 = vor.u32 %v3630_v50, %v2904_v49  ;;  %v2970_v47 = vld [vmem:[%s4033_s7 + $0x21c] sm:$0xf0]  ;;  %v3648_v49 = vld [vmem:[%s4033_s7 + $0x220] sm:$0xf0] }
  0x49   : > { %1889 = vmatpush.bf16.msrb.mxu2 %v3740_v61  ;;  %v2798_v61 = vld [vmem:[%s4033_s7 + $0xbc] sm:$0xf0]  ;;  %v3644_v50 = vld [vmem:[%s4033_s7 + $0x204] sm:$0xf] }
  0x4a   : > { %1978 = vmatpush.bf16.msrb.mxu3 %v3748_v62  ;;  %v2804_v62 = vld [vmem:[%s4033_s7 + $0xa0] sm:$0xf]  ;;  %v2801_v2 = vor.u32 %v3599_v60, %v2798_v61 }
  0x4b   : > { %1800 = vmatpush.bf16.msrb.mxu1 %v3732_v6  ;;  %2067 = vmatpush.bf16.msrb.mxu0 %v3756_v7  ;;  %v2805_v3 = vor.u32 %v3604_v63, %v2804_v62  ;;  %v3769_v6 = vld [vmem:[%s4779_s1 + $0x168] sm:$0xff]  ;;  %v2976_v48 = vld [vmem:[%s4033_s7 + $0x200] sm:$0xf] }
  0x4c   : > { %1742 = vmatmul.bf16.gmra.mxu1 %v2933_v8  ;;  %1762 = vmatmul.bf16.gmra.mxu2 %v3077_v9  ;;  %v3793_v7 = vld [vmem:[%s4779_s1 + $0x228] sm:$0xff]  ;;  %v3607_v8 = vld [vmem:[%s4033_s7 + $0xdc] sm:$0xf]  ;;  %v2826_v9 = vld [vmem:[%s4033_s7 + $0xfc] sm:$0xf0] }
  0x4d   : > { %1782 = vmatmul.bf16.gmra.mxu3 %v3221_v10  ;;  %2238 = vmatpush.bf16.msra.mxu2 %v3779_v12  ;;  %v2832_v10 = vld [vmem:[%s4033_s7 + $0xe0] sm:$0xf]  ;;  %v3608_v12 = vld [vmem:[%s4033_s7 + $0xe4] sm:$0xf]  ;;  %v2829_v16 = vor.u32 %v3607_v8, %v2826_v9  ;;  %v3634_v9 = vld [vmem:[%s4033_s7 + $0x1b4] sm:$0xf] }
  0x4e   : > { %1722 = vmatmul.bf16.gmra.mxu0 %v2789_v11  ;;  %2327 = vmatpush.bf16.msra.mxu3 %v3787_v13  ;;  %v3612_v11 = vld [vmem:[%s4033_s7 + $0x100] sm:$0xf0]  ;;  %v2834_v13 = vld [vmem:[%s4033_s7 + $0x104] sm:$0xf0] }
  0x4f   : > { %2149 = vmatpush.bf16.msra.mxu1 %v3771_v14  ;;  %2416 = vmatpush.bf16.msra.mxu0 %v3795_v15  ;;  %v2840_v14 = vld [vmem:[%s4033_s7 + $0xe8] sm:$0xf]  ;;  %v3613_v15 = vld [vmem:[%s4033_s7 + $0x108] sm:$0xf0]  ;;  %v2833_v17 = vor.u32 %v3612_v11, %v2832_v10  ;;  %v2837_v18 = vor.u32 %v3608_v12, %v2834_v13  ;;  %v2934_v10 = vld [vmem:[%s4033_s7 + $0x1d4] sm:$0xf0] }
  0x50   : > { %v2841_v19 = vor.u32 %v3613_v15, %v2840_v14  ;;  %v2940_v11 = vld [vmem:[%s4033_s7 + $0x1b8] sm:$0xf]  ;;  %v3639_v12 = vld [vmem:[%s4033_s7 + $0x1d8] sm:$0xf0]  ;;  %v2942_v14 = vld [vmem:[%s4033_s7 + $0x1dc] sm:$0xf0]  ;;  %v2937_v21 = vor.u32 %v3634_v9, %v2934_v10 }
  0x51   : > { %2239 = vmatpush.bf16.msra.mxu2 %v3778_v40  ;;  %v3635_v13 = vld [vmem:[%s4033_s7 + $0x1bc] sm:$0xf]  ;;  %v2948_v15 = vld [vmem:[%s4033_s7 + $0x1c0] sm:$0xf]  ;;  %v2941_v22 = vor.u32 %v3639_v12, %v2940_v11 }
  0x52   : > { %2328 = vmatpush.bf16.msra.mxu3 %v3786_v41 }
  0x53   : > { %2150 = vmatpush.bf16.msra.mxu1 %v3770_v42  ;;  %2417 = vmatpush.bf16.msra.mxu0 %v3794_v43  ;;  %v3768_v43 = vld [vmem:[%s4779_s1 + $0x160] sm:$0xff] }
  0x55   : > { %2240 = vmatpush.bf16.msra.mxu2 %v3777_v4 }
  0x56   : > { %2329 = vmatpush.bf16.msra.mxu3 %v3785_v5 }
  0x57   : > { %2151 = vmatpush.bf16.msra.mxu1 %v3769_v6  ;;  %2418 = vmatpush.bf16.msra.mxu0 %v3793_v7 }
  0x5b   : > { %2152 = vmatpush.bf16.msra.mxu1 %v3768_v43  ;;  %2419 = vmatpush.bf16.msra.mxu0 %v3792_v46  ;;  %v3791_v43 = vld [vmem:[%s4779_s1 + $0x218] sm:$0xff] }
  0x5c   : > { %1747 = vmatmul.bf16.gmra.mxu1 %v2969_v24  ;;  %1767 = vmatmul.bf16.gmra.mxu2 %v3113_v25  ;;  %v3621_v24 = vld [vmem:[%s4033_s7 + $0x148] sm:$0xf0]  ;;  %v3643_v46 = vld [vmem:[%s4033_s7 + $0x1fc] sm:$0xf] }
  0x5d   : > { %1787 = vmatmul.bf16.gmra.mxu3 %v3257_v26  ;;  %v3617_v25 = vld [vmem:[%s4033_s7 + $0x12c] sm:$0xf]  ;;  %v2870_v26 = vld [vmem:[%s4033_s7 + $0x14c] sm:$0xf0]  ;;  %v2869_v30 = vor.u32 %v3621_v24, %v2868_v23 }
  0x5e   : > { %1727 = vmatmul.bf16.gmra.mxu0 %v2825_v27  ;;  %v2876_v27 = vld [vmem:[%s4033_s7 + $0x130] sm:$0xf]  ;;  %v2873_v32 = vor.u32 %v3617_v25, %v2870_v26  ;;  %v2945_v25 = vor.u32 %v3635_v13, %v2942_v14 }
  0x5f   : > { %v2877_v33 = vor.u32 %v3622_v28, %v2876_v27  ;;  %2420 = vmatpush.bf16.msra.mxu0 %v3791_v43 }
  0x6c   : > { %1801 = vmatmul.bf16.vlgmr.msrb.gmra.mxu1 %v2721_v36  ;;  %1890 = vmatmul.bf16.vlgmr.msrb.gmra.mxu2 %v2725_v37  ;;  %v3776_v36 = vld [vmem:[%s4779_s1 + $0x1a0] sm:$0xff] }
  0x6d   : > { %1979 = vmatmul.bf16.vlgmr.msrb.gmra.mxu3 %v2729_v38  ;;  %v3784_v37 = vld [vmem:[%s4779_s1 + $0x1e0] sm:$0xff]  ;;  %2241 = vmatpush.bf16.msra.mxu2 %v3776_v36 }
  0x6e   : > { %2068 = vmatmul.bf16.vlgmr.msrb.gmra.mxu0 %v2733_v39  ;;  %2330 = vmatpush.bf16.msra.mxu3 %v3784_v37 }
  0x7c   : > { %1806 = vmatmul.bf16.gmra.mxu1 %v2757_v52  ;;  %1895 = vmatmul.bf16.gmra.mxu2 %v2761_v53  ;;  %v2906_v52 = vld [vmem:[%s4033_s7 + $0x194] sm:$0xf0] }
  0x7d   : > { %1984 = vmatmul.bf16.gmra.mxu3 %v2765_v54  ;;  %v2912_v53 = vld [vmem:[%s4033_s7 + $0x178] sm:$0xf]  ;;  %v3631_v54 = vld [vmem:[%s4033_s7 + $0x198] sm:$0xf0]  ;;  %v2909_v62 = vor.u32 %v3626_v51, %v2906_v52  ;;  %v2978_v51 = vld [vmem:[%s4033_s7 + $0x224] sm:$0xf0] }
  0x7e   : > { %2073 = vmatmul.bf16.gmra.mxu0 %v2769_v55  ;;  %v2913_v63 = vor.u32 %v3631_v54, %v2912_v53  ;;  %v2984_v52 = vld [vmem:[%s4033_s7 + $0x208] sm:$0xf]  ;;  %v3649_v53 = vld [vmem:[%s4033_s7 + $0x228] sm:$0xf0] }
  0x8c   : > { %1811 = vmatmul.bf16.gmra.mxu1 %v2793_v0  ;;  %1900 = vmatmul.bf16.gmra.mxu2 %v2797_v1 }
  0x8d   : > { %1989 = vmatmul.bf16.gmra.mxu3 %v2801_v2 }
  0x8e   : > { %2078 = vmatmul.bf16.gmra.mxu0 %v2805_v3 }
  0x9c   : > { %1816 = vmatmul.bf16.gmra.mxu1 %v2829_v16  ;;  %1905 = vmatmul.bf16.gmra.mxu2 %v2833_v17  ;;  %v3640_v16 = vld [vmem:[%s4033_s7 + $0x1e0] sm:$0xf0] }
  0x9d   : > { %1994 = vmatmul.bf16.gmra.mxu3 %v2837_v18  ;;  %v2949_v26 = vor.u32 %v3640_v16, %v2948_v15  ;;  %v3652_v16 = vld [vmem:[%s4033_s7 + $0x244] sm:$0xf] }
  0x9e   : > { %2083 = vmatmul.bf16.gmra.mxu0 %v2841_v19 }
  0xa9   : > { %v1733_v31 = vpop.f32.mrf.mxu1 }
  0xaa   : > { %v4248_v34 = vadd.f32 %v4237_v20, %v1733_v31 }
  0xab   : > { %v4250_v35 = vpop.f32.mrf.mxu0 }
  0xac   : > { %1821 = vmatmul.bf16.gmra.mxu1 %v2865_v29  ;;  %1910 = vmatmul.bf16.gmra.mxu2 %v2869_v30  ;;  %v3775_v29 = vld [vmem:[%s4779_s1 + $0x198] sm:$0xff] }
  0xad   : > { %1999 = vmatmul.bf16.gmra.mxu3 %v2873_v32  ;;  %v3783_v30 = vld [vmem:[%s4779_s1 + $0x1d8] sm:$0xff]  ;;  %2242 = vmatpush.bf16.msra.mxu2 %v3775_v29 }
  0xae   : > { %2088 = vmatmul.bf16.gmra.mxu0 %v2877_v33  ;;  %2331 = vmatpush.bf16.msra.mxu3 %v3783_v30  ;;  %v1714_v30 = vadd.f32 %v4237_v20, %v4250_v35  ;;  %v3774_v35 = vld [vmem:[%s4779_s1 + $0x190] sm:$0xff] }
  0xaf   : > { %v1753_v38 = vpop.f32.mrf.mxu2 }
  0xb0   : > { %v4259_v39 = vadd.f32 %v4237_v20, %v1753_v38  ;;  %v1773_v40 = vpop.f32.mrf.mxu3 }
  0xb1   : > { %v4262_v41 = vadd.f32 %v4237_v20, %v1773_v40  ;;  %v1735_v42 = vpop.f32.mrf.mxu1  ;;  %2243 = vmatpush.bf16.msra.mxu2 %v3774_v35 }
  0xb2   : > { %v4268_v44 = vadd.f32 %v4237_v20, %v1735_v42  ;;  %v3767_v42 = vld [vmem:[%s4779_s1 + $0x158] sm:$0xff] }
  0xb3   : > { %v4270_v45 = vpop.f32.mrf.mxu0  ;;  %2153 = vmatpush.bf16.msra.mxu1 %v3767_v42 }
  0xb7   : > { %v1755_v55 = vpop.f32.mrf.mxu2 }
  0xb8   : > { %v4284_v56 = vadd.f32 %v4237_v20, %v1755_v55  ;;  %v1775_v57 = vpop.f32.mrf.mxu3 }
  0xb9   : > { %v4287_v60 = vadd.f32 %v4237_v20, %v1775_v57  ;;  %v1738_v61 = vpop.f32.mrf.mxu1 }
  0xba   : > { %v4290_v0 = vadd.f32 %v4237_v20, %v1738_v61 }
  0xbb   : > { %v4292_v1 = vpop.f32.mrf.mxu0 }
  0xbc   : > { %1826 = vmatmul.bf16.gmra.mxu1 %v2901_v58  ;;  %1915 = vmatmul.bf16.gmra.mxu2 %v2905_v59  ;;  %v2973_v58 = vor.u32 %v3643_v46, %v2970_v47  ;;  %v2977_v59 = vor.u32 %v3648_v49, %v2976_v48 }
  0xbd   : > { %2004 = vmatmul.bf16.gmra.mxu3 %v2909_v62 }
  0xbe   : > { %2093 = vmatmul.bf16.gmra.mxu0 %v2913_v63  ;;  %v2981_v63 = vor.u32 %v3644_v50, %v2978_v51  ;;  %v3782_v51 = vld [vmem:[%s4779_s1 + $0x1d0] sm:$0xff] }
  0xbf   : > { %v1758_v2 = vpop.f32.mrf.mxu2  ;;  %2332 = vmatpush.bf16.msra.mxu3 %v3782_v51 }
  0xc0   : > { %v4295_v3 = vadd.f32 %v4237_v20, %v1758_v2  ;;  %v1778_v4 = vpop.f32.mrf.mxu3  ;;  %v2985_v2 = vor.u32 %v3649_v53, %v2984_v52  ;;  %v1716_v53 = vadd.f32 %v4237_v20, %v4270_v45  ;;  %v3042_v45 = vld [vmem:[%s4033_s7 + $0x2ac] sm:$0xf0] }
  0xc1   : > { %v4298_v5 = vadd.f32 %v4237_v20, %v1778_v4  ;;  %v1740_v6 = vpop.f32.mrf.mxu1 }
  0xc2   : > { %v4301_v7 = vadd.f32 %v4237_v20, %v1740_v6 }
  0xc3   : > { %v4303_v8 = vpop.f32.mrf.mxu0 }
  0xc4   : > { %v1721_v51 = vadd.f32 %v4237_v20, %v4303_v8 }
  0xc7   : > { %v1760_v17 = vpop.f32.mrf.mxu2 }
  0xc8   : > { %v4314_v18 = vadd.f32 %v4237_v20, %v1760_v17  ;;  %v1780_v19 = vpop.f32.mrf.mxu3  ;;  %v3006_v17 = vld [vmem:[%s4033_s7 + $0x264] sm:$0xf0] }
  0xc9   : > { %v4317_v23 = vadd.f32 %v4237_v20, %v1780_v19  ;;  %v1743_v24 = vpop.f32.mrf.mxu1  ;;  %v3012_v19 = vld [vmem:[%s4033_s7 + $0x248] sm:$0xf] }
  0xca   : > { %v4320_v27 = vadd.f32 %v4237_v20, %v1743_v24  ;;  %v3014_v24 = vld [vmem:[%s4033_s7 + $0x26c] sm:$0xf0] }
  0xcb   : > { %v4322_v28 = vpop.f32.mrf.mxu0 }
  0xcc   : > { %1831 = vmatmul.bf16.gmra.mxu1 %v2937_v21  ;;  %1920 = vmatmul.bf16.gmra.mxu2 %v2941_v22  ;;  %v3657_v21 = vld [vmem:[%s4033_s7 + $0x268] sm:$0xf0]  ;;  %v1724_v8 = vadd.f32 %v4237_v20, %v4322_v28 }
  0xcd   : > { %2009 = vmatmul.bf16.gmra.mxu3 %v2945_v25  ;;  %v3653_v22 = vld [vmem:[%s4033_s7 + $0x24c] sm:$0xf]  ;;  %v3020_v25 = vld [vmem:[%s4033_s7 + $0x250] sm:$0xf]  ;;  %v3013_v42 = vor.u32 %v3657_v21, %v3012_v19  ;;  %v3662_v19 = vld [vmem:[%s4033_s7 + $0x294] sm:$0xf] }
  0xce   : > { %2098 = vmatmul.bf16.gmra.mxu0 %v2949_v26  ;;  %v3658_v26 = vld [vmem:[%s4033_s7 + $0x270] sm:$0xf0]  ;;  %v3017_v47 = vor.u32 %v3653_v22, %v3014_v24  ;;  %v3050_v21 = vld [vmem:[%s4033_s7 + $0x2b4] sm:$0xf0]  ;;  %v3667_v24 = vld [vmem:[%s4033_s7 + $0x2b8] sm:$0xf0] }
  0xcf   : > { %v1763_v31 = vpop.f32.mrf.mxu2  ;;  %v3021_v48 = vor.u32 %v3658_v26, %v3020_v25  ;;  %v3056_v22 = vld [vmem:[%s4033_s7 + $0x298] sm:$0xf]  ;;  %v1719_v26 = vadd.f32 %v4237_v20, %v4292_v1  ;;  %v3773_v28 = vld [vmem:[%s4779_s1 + $0x188] sm:$0xff] }
  0xd0   : > { %v4331_v32 = vadd.f32 %v4237_v20, %v1763_v31  ;;  %v1783_v33 = vpop.f32.mrf.mxu3  ;;  %2244 = vmatpush.bf16.msra.mxu2 %v3773_v28 }
  0xd1   : > { %v4334_v36 = vadd.f32 %v4237_v20, %v1783_v33  ;;  %v1745_v37 = vpop.f32.mrf.mxu1 }
  0xd2   : > { %v4337_v38 = vadd.f32 %v4237_v20, %v1745_v37  ;;  %v3009_v37 = vor.u32 %v3652_v16, %v3006_v17  ;;  %v3048_v16 = vld [vmem:[%s4033_s7 + $0x290] sm:$0xf]  ;;  %v3666_v17 = vld [vmem:[%s4033_s7 + $0x2b0] sm:$0xf0] }
  0xd3   : > { %v4339_v40 = vpop.f32.mrf.mxu0 }
  0xd7   : > { %v1765_v54 = vpop.f32.mrf.mxu2 }
  0xd8   : > { %v4356_v55 = vadd.f32 %v4237_v20, %v1765_v54  ;;  %v1785_v57 = vpop.f32.mrf.mxu3 }
  0xd9   : > { %v4359_v61 = vadd.f32 %v4237_v20, %v1785_v57  ;;  %v1748_v62 = vpop.f32.mrf.mxu1 }
  0xda   : > { %v4362_v4 = vadd.f32 %v4237_v20, %v1748_v62 }
  0xdb   : > { %v4364_v6 = vpop.f32.mrf.mxu0 }
  0xdc   : > { %1836 = vmatmul.bf16.gmra.mxu1 %v2973_v58  ;;  %1925 = vmatmul.bf16.gmra.mxu2 %v2977_v59 }
  0xdd   : > { %2014 = vmatmul.bf16.gmra.mxu3 %v2981_v63 }
  0xde   : > { %2103 = vmatmul.bf16.gmra.mxu0 %v2985_v2  ;;  %v3766_v2 = vld [vmem:[%s4779_s1 + $0x150] sm:$0xff] }
  0xdf   : > { %v1768_v9 = vpop.f32.mrf.mxu2  ;;  %2154 = vmatpush.bf16.msra.mxu1 %v3766_v2  ;;  %v3078_v2 = vld [vmem:[%s4033_s7 + $0x2f4] sm:$0xf0] }
  0xe0   : > { %v4367_v10 = vadd.f32 %v4237_v20, %v1768_v9  ;;  %v1788_v11 = vpop.f32.mrf.mxu3  ;;  %v3790_v9 = vld [vmem:[%s4779_s1 + $0x210] sm:$0xff] }
  0xe1   : > { %v4370_v12 = vadd.f32 %v4237_v20, %v1788_v11  ;;  %v1750_v13 = vpop.f32.mrf.mxu1  ;;  %v3661_v11 = vld [vmem:[%s4033_s7 + $0x28c] sm:$0xf]  ;;  %2421 = vmatpush.bf16.msra.mxu0 %v3790_v9  ;;  %v3084_v9 = vld [vmem:[%s4033_s7 + $0x2d8] sm:$0xf] }
  0xe2   : > { %v4373_v14 = vadd.f32 %v4237_v20, %v1750_v13 }
  0xe3   : > { %v4375_v15 = vpop.f32.mrf.mxu0 }
  0xe7   : > { %v1770_v29 = vpop.f32.mrf.mxu2 }
  0xe8   : > { %v4388_v31 = vadd.f32 %v4237_v20, %v1770_v29  ;;  %v1790_v33 = vpop.f32.mrf.mxu3 }
  0xe9   : > { %v4391_v43 = vadd.f32 %v4237_v20, %v1790_v33  ;;  %v1802_v46 = vpop.f32.mrf.mxu1  ;;  %v3045_v33 = vor.u32 %v3661_v11, %v3042_v45  ;;  %v3675_v11 = vld [vmem:[%s4033_s7 + $0x2f8] sm:$0xf0] }
  0xea   : > { %v1803_v49 = vadd.f32 %v1802_v46, %v1714_v30  ;;  %v3053_v46 = vor.u32 %v3662_v19, %v3050_v21  ;;  %v3671_v45 = vld [vmem:[%s4033_s7 + $0x2dc] sm:$0xf]  ;;  %v3676_v19 = vld [vmem:[%s4033_s7 + $0x300] sm:$0xf0] }
  0xeb   : > { %v2069_v50 = vpop.f32.mrf.mxu0 }
  0xec   : > { %1841 = vmatmul.bf16.gmra.mxu1 %v3009_v37  ;;  %1930 = vmatmul.bf16.gmra.mxu2 %v3013_v42  ;;  %v3049_v37 = vor.u32 %v3666_v17, %v3048_v16  ;;  %v3086_v16 = vld [vmem:[%s4033_s7 + $0x2fc] sm:$0xf0] }
  0xed   : > { %2019 = vmatmul.bf16.gmra.mxu3 %v3017_v47  ;;  %v3057_v47 = vor.u32 %v3667_v24, %v3056_v22  ;;  %v3092_v17 = vld [vmem:[%s4033_s7 + $0x2e0] sm:$0xf] }
  0xee   : > { %2108 = vmatmul.bf16.gmra.mxu0 %v3021_v48 }
  0xef   : > { %v1891_v52 = vpop.f32.mrf.mxu2 }
  0xf0   : > { %v1892_v54 = vadd.f32 %v1891_v52, %v1803_v49  ;;  %v1980_v57 = vpop.f32.mrf.mxu3 }
  0xf1   : > { %v1804_v58 = vpop.f32.mrf.mxu1 }
  0xf2   : > { %v1981_v59 = vadd.f32 %v1980_v57, %v1892_v54  ;;  %v1805_v62 = vadd.f32 %v1804_v58, %v1716_v53 }
  0xf3   : > { %v2071_v63 = vpop.f32.mrf.mxu0 }
  0xf4   : > { %v4409_v13 = vadd.f32 %v2069_v50, %v1981_v59 }
  0xf7   : > { %v1893_v25 = vpop.f32.mrf.mxu2 }
  0xf8   : > { %v1894_v29 = vadd.f32 %v1893_v25, %v1805_v62  ;;  %v1982_v30 = vpop.f32.mrf.mxu3  ;;  %v3670_v62 = vld [vmem:[%s4033_s7 + $0x2d4] sm:$0xf] }
  0xf9   : > { %v1807_v42 = vpop.f32.mrf.mxu1  ;;  %v3081_v25 = vor.u32 %v3670_v62, %v3078_v2  ;;  %v3679_v62 = vld [vmem:[%s4033_s7 + $0x31c] sm:$0xf] }
  0xfa   : > { %v1983_v48 = vadd.f32 %v1982_v30, %v1894_v29  ;;  %v1808_v49 = vadd.f32 %v1807_v42, %v1719_v26  ;;  %v3085_v26 = vor.u32 %v3675_v11, %v3084_v9  ;;  %v3089_v30 = vor.u32 %v3671_v45, %v3086_v16  ;;  %v3120_v9 = vld [vmem:[%s4033_s7 + $0x320] sm:$0xf]  ;;  %v3684_v11 = vld [vmem:[%s4033_s7 + $0x340] sm:$0xf0]  ;;  %v3122_v16 = vld [vmem:[%s4033_s7 + $0x344] sm:$0xf0] }
  0xfb   : > { %v2074_v50 = vpop.f32.mrf.mxu0  ;;  %v3680_v45 = vld [vmem:[%s4033_s7 + $0x324] sm:$0xf] }
  0xfc   : > { %1846 = vmatmul.bf16.gmra.mxu1 %v3045_v33  ;;  %1935 = vmatmul.bf16.gmra.mxu2 %v3049_v37  ;;  %v4419_v35 = vadd.f32 %v2071_v63, %v1983_v48  ;;  %v3093_v33 = vor.u32 %v3676_v19, %v3092_v17  ;;  %v3781_v48 = vld [vmem:[%s4779_s1 + $0x1c8] sm:$0xff] }
  0xfd   : > { %2024 = vmatmul.bf16.gmra.mxu3 %v3053_v46  ;;  %v3128_v17 = vld [vmem:[%s4033_s7 + $0x328] sm:$0xf]  ;;  %v3685_v19 = vld [vmem:[%s4033_s7 + $0x348] sm:$0xf0] }
  0xfe   : > { %2113 = vmatmul.bf16.gmra.mxu0 %v3057_v47  ;;  %2333 = vmatpush.bf16.msra.mxu3 %v3781_v48  ;;  %v1731_v48 = vadd.f32 %v4237_v20, %v4375_v15 }
  0xff   : > { %v1896_v1 = vpop.f32.mrf.mxu2 }
 0x100   : > { %v1897_v52 = vadd.f32 %v1896_v1, %v1808_v49  ;;  %v1985_v53 = vpop.f32.mrf.mxu3 }
 0x101   : > { %v1809_v54 = vpop.f32.mrf.mxu1 }
 0x102   : > { %v1986_v57 = vadd.f32 %v1985_v53, %v1897_v52  ;;  %v1810_v58 = vadd.f32 %v1809_v54, %v1721_v51 }
 0x103   : > { %v2076_v59 = vpop.f32.mrf.mxu0 }
 0x104   : > { %v4425_v63 = vadd.f32 %v2074_v50, %v1986_v57  ;;  %v1726_v50 = vadd.f32 %v4237_v20, %v4339_v40  ;;  %v3114_v40 = vld [vmem:[%s4033_s7 + $0x33c] sm:$0xf0] }
 0x107   : > { %v1898_v21 = vpop.f32.mrf.mxu2 }
 0x108   : > { %v1899_v22 = vadd.f32 %v1898_v21, %v1810_v58  ;;  %v1987_v24 = vpop.f32.mrf.mxu3  ;;  %v3765_v58 = vld [vmem:[%s4779_s1 + $0x148] sm:$0xff] }
 0x109   : > { %v1812_v29 = vpop.f32.mrf.mxu1  ;;  %2155 = vmatpush.bf16.msra.mxu1 %v3765_v58  ;;  %v3150_v58 = vld [vmem:[%s4033_s7 + $0x384] sm:$0xf0] }
 0x10a   : > { %v1988_v37 = vadd.f32 %v1987_v24, %v1899_v22  ;;  %v1813_v42 = vadd.f32 %v1812_v29, %v1724_v8  ;;  %v1729_v8 = vadd.f32 %v4237_v20, %v4364_v6 }
 0x10b   : > { %v2079_v46 = vpop.f32.mrf.mxu0 }
 0x10c   : > { %1851 = vmatmul.bf16.gmra.mxu1 %v3081_v25  ;;  %1940 = vmatmul.bf16.gmra.mxu2 %v3085_v26  ;;  %v4435_v47 = vadd.f32 %v2076_v59, %v1988_v37  ;;  %v3789_v59 = vld [vmem:[%s4779_s1 + $0x208] sm:$0xff]  ;;  %v3117_v25 = vor.u32 %v3679_v62, %v3114_v40  ;;  %v3121_v26 = vor.u32 %v3684_v11, %v3120_v9  ;;  %v3158_v9 = vld [vmem:[%s4033_s7 + $0x38c] sm:$0xf0] }
 0x10d   : > { %2029 = vmatmul.bf16.gmra.mxu3 %v3089_v30  ;;  %2422 = vmatpush.bf16.msra.mxu0 %v3789_v59  ;;  %v3125_v30 = vor.u32 %v3680_v45, %v3122_v16  ;;  %v3156_v59 = vld [vmem:[%s4033_s7 + $0x368] sm:$0xf]  ;;  %v3693_v62 = vld [vmem:[%s4033_s7 + $0x388] sm:$0xf0]  ;;  %v3164_v11 = vld [vmem:[%s4033_s7 + $0x370] sm:$0xf] }
 0x10e   : > { %2118 = vmatmul.bf16.gmra.mxu0 %v3093_v33  ;;  %v3129_v33 = vor.u32 %v3685_v19, %v3128_v17  ;;  %v3689_v40 = vld [vmem:[%s4033_s7 + $0x36c] sm:$0xf]  ;;  %v3694_v45 = vld [vmem:[%s4033_s7 + $0x390] sm:$0xf0]  ;;  %v3157_v15 = vor.u32 %v3693_v62, %v3156_v59  ;;  %v3194_v62 = vld [vmem:[%s4033_s7 + $0x3d4] sm:$0xf0] }
 0x10f   : > { %v1901_v49 = vpop.f32.mrf.mxu2  ;;  %v3698_v59 = vld [vmem:[%s4033_s7 + $0x3b4] sm:$0xf] }
 0x110   : > { %v1902_v1 = vadd.f32 %v1901_v49, %v1813_v42  ;;  %v1990_v51 = vpop.f32.mrf.mxu3 }
 0x111   : > { %v1814_v52 = vpop.f32.mrf.mxu1 }
 0x112   : > { %v1991_v53 = vadd.f32 %v1990_v51, %v1902_v1  ;;  %v1815_v54 = vadd.f32 %v1814_v52, %v1726_v50 }
 0x113   : > { %v2081_v57 = vpop.f32.mrf.mxu0 }
 0x114   : > { %v4453_v2 = vadd.f32 %v2079_v46, %v1991_v53 }
 0x117   : > { %v1903_v21 = vpop.f32.mrf.mxu2 }
 0x118   : > { %v1904_v22 = vadd.f32 %v1903_v21, %v1815_v54  ;;  %v1992_v24 = vpop.f32.mrf.mxu3  ;;  %v3688_v54 = vld [vmem:[%s4033_s7 + $0x364] sm:$0xf] }
 0x119   : > { %v1817_v29 = vpop.f32.mrf.mxu1  ;;  %v3153_v20 = vor.u32 %v3688_v54, %v3150_v58  ;;  %v3192_v54 = vld [vmem:[%s4033_s7 + $0x3b0] sm:$0xf]  ;;  %v3702_v58 = vld [vmem:[%s4033_s7 + $0x3d0] sm:$0xf0] }
 0x11a   : > { %v1993_v37 = vadd.f32 %v1992_v24, %v1904_v22  ;;  %v1818_v42 = vadd.f32 %v1817_v29, %v1729_v8  ;;  %v3161_v8 = vor.u32 %v3689_v40, %v3158_v9  ;;  %v3165_v22 = vor.u32 %v3694_v45, %v3164_v11  ;;  %v3703_v40 = vld [vmem:[%s4033_s7 + $0x3d8] sm:$0xf0] }
 0x11b   : > { %v2084_v46 = vpop.f32.mrf.mxu0 }
 0x11c   : > { %1856 = vmatmul.bf16.gmra.mxu1 %v3117_v25  ;;  %1945 = vmatmul.bf16.gmra.mxu2 %v3121_v26  ;;  %v4463_v28 = vadd.f32 %v2081_v57, %v1993_v37 }
 0x11d   : > { %2034 = vmatmul.bf16.gmra.mxu3 %v3125_v30  ;;  %v3772_v30 = vld [vmem:[%s4779_s1 + $0x180] sm:$0xff] }
 0x11e   : > { %2123 = vmatmul.bf16.gmra.mxu0 %v3129_v33  ;;  %v3780_v33 = vld [vmem:[%s4779_s1 + $0x1c0] sm:$0xff]  ;;  %2245 = vmatpush.bf16.msra.mxu2 %v3772_v30 }
 0x11f   : > { %v1906_v6 = vpop.f32.mrf.mxu2  ;;  %2334 = vmatpush.bf16.msra.mxu3 %v3780_v33 }
 0x120   : > { %v1907_v49 = vadd.f32 %v1906_v6, %v1818_v42  ;;  %v1995_v50 = vpop.f32.mrf.mxu3 }
 0x121   : > { %v1819_v1 = vpop.f32.mrf.mxu1 }
 0x122   : > { %v1996_v51 = vadd.f32 %v1995_v50, %v1907_v49  ;;  %v1820_v52 = vadd.f32 %v1819_v1, %v1731_v48  ;;  %v3764_v50 = vld [vmem:[%s4779_s1 + $0x140] sm:$0xff] }
 0x123   : > { %v2086_v53 = vpop.f32.mrf.mxu0  ;;  %v3788_v1 = vld [vmem:[%s4779_s1 + $0x200] sm:$0xff]  ;;  %2156 = vmatpush.bf16.msra.mxu1 %v3764_v50  ;;  %v3707_v50 = vld [vmem:[%s4033_s7 + $0x3fc] sm:$0xf] }
 0x124   : > { %v4469_v57 = vadd.f32 %v2084_v46, %v1996_v51  ;;  %v3697_v51 = vld [vmem:[%s4033_s7 + $0x3ac] sm:$0xf]  ;;  %2423 = vmatpush.bf16.msra.mxu0 %v3788_v1  ;;  %v3230_v1 = vld [vmem:[%s4033_s7 + $0x41c] sm:$0xf0] }
 0x127   : > { %v1908_v16 = vpop.f32.mrf.mxu2 }
 0x128   : > { %v1909_v17 = vadd.f32 %v1908_v16, %v1820_v52  ;;  %v1997_v19 = vpop.f32.mrf.mxu3  ;;  %v3186_v52 = vld [vmem:[%s4033_s7 + $0x3cc] sm:$0xf0] }
 0x129   : > { %v1822_v21 = vpop.f32.mrf.mxu1  ;;  %v3189_v16 = vor.u32 %v3697_v51, %v3186_v52  ;;  %v3236_v51 = vld [vmem:[%s4033_s7 + $0x400] sm:$0xf]  ;;  %v3712_v52 = vld [vmem:[%s4033_s7 + $0x420] sm:$0xf0] }
 0x12a   : > { %v1998_v24 = vadd.f32 %v1997_v19, %v1909_v17  ;;  %v1823_v25 = vadd.f32 %v1822_v21, %v4248_v34  ;;  %v3193_v17 = vor.u32 %v3702_v58, %v3192_v54 }
 0x12b   : > { %v2089_v26 = vpop.f32.mrf.mxu0 }
 0x12c   : > { %1861 = vmatmul.bf16.gmra.mxu1 %v3153_v20  ;;  %1950 = vmatmul.bf16.gmra.mxu2 %v3157_v15  ;;  %v4478_v29 = vadd.f32 %v2086_v53, %v1998_v24  ;;  %v3197_v20 = vor.u32 %v3698_v59, %v3194_v62 }
 0x12d   : > { %2039 = vmatmul.bf16.gmra.mxu3 %v3161_v8 }
 0x12e   : > { %2128 = vmatmul.bf16.gmra.mxu0 %v3165_v22 }
 0x12f   : > { %v1911_v37 = vpop.f32.mrf.mxu2 }
 0x130   : > { %v1912_v34 = vadd.f32 %v1911_v37, %v1823_v25  ;;  %v2000_v42 = vpop.f32.mrf.mxu3 }
 0x131   : > { %v1824_v46 = vpop.f32.mrf.mxu1 }
 0x132   : > { %v2001_v6 = vadd.f32 %v2000_v42, %v1912_v34  ;;  %v1825_v48 = vadd.f32 %v1824_v46, %v4268_v44  ;;  %v3200_v44 = vld [vmem:[%s4033_s7 + $0x3b8] sm:$0xf]  ;;  %v3706_v42 = vld [vmem:[%s4033_s7 + $0x3f4] sm:$0xf] }
 0x133   : > { %v2091_v49 = vpop.f32.mrf.mxu0  ;;  %v3201_v15 = vor.u32 %v3703_v40, %v3200_v44  ;;  %v3222_v46 = vld [vmem:[%s4033_s7 + $0x414] sm:$0xf0] }
 0x134   : > { %v4495_v53 = vadd.f32 %v2089_v26, %v2001_v6  ;;  %v3225_v62 = vor.u32 %v3706_v42, %v3222_v46  ;;  %v3272_v42 = vld [vmem:[%s4033_s7 + $0x448] sm:$0xf]  ;;  %v3721_v46 = vld [vmem:[%s4033_s7 + $0x468] sm:$0xf0] }
 0x137   : > { %v1913_v9 = vpop.f32.mrf.mxu2 }
 0x138   : > { %v1914_v11 = vadd.f32 %v1913_v9, %v1825_v48  ;;  %v2002_v45 = vpop.f32.mrf.mxu3  ;;  %v3228_v48 = vld [vmem:[%s4033_s7 + $0x3f8] sm:$0xf]  ;;  %v3233_v9 = vor.u32 %v3707_v50, %v3230_v1 }
 0x139   : > { %v1827_v19 = vpop.f32.mrf.mxu1 }
 0x13a   : > { %v2003_v21 = vadd.f32 %v2002_v45, %v1914_v11  ;;  %v1828_v8 = vadd.f32 %v1827_v19, %v4290_v0  ;;  %v3237_v11 = vor.u32 %v3712_v52, %v3236_v51 }
 0x13b   : > { %v2094_v22 = vpop.f32.mrf.mxu0 }
 0x13c   : > { %1866 = vmatmul.bf16.gmra.mxu1 %v3189_v16  ;;  %1955 = vmatmul.bf16.gmra.mxu2 %v3193_v17  ;;  %v4504_v24 = vadd.f32 %v2091_v49, %v2003_v21  ;;  %v3711_v49 = vld [vmem:[%s4033_s7 + $0x418] sm:$0xf0] }
 0x13d   : > { %2044 = vmatmul.bf16.gmra.mxu3 %v3197_v20  ;;  %v3229_v44 = vor.u32 %v3711_v49, %v3228_v48 }
 0x13e   : > { %2133 = vmatmul.bf16.gmra.mxu0 %v3201_v15 }
 0x13f   : > { %v1916_v25 = vpop.f32.mrf.mxu2 }
 0x140   : > { %v1917_v26 = vadd.f32 %v1916_v25, %v1828_v8  ;;  %v2005_v30 = vpop.f32.mrf.mxu3  ;;  %v3715_v25 = vld [vmem:[%s4033_s7 + $0x43c] sm:$0xf] }
 0x141   : > { %v1829_v33 = vpop.f32.mrf.mxu1 }
 0x142   : > { %v2006_v37 = vadd.f32 %v2005_v30, %v1917_v26  ;;  %v1830_v0 = vadd.f32 %v1829_v33, %v4301_v7  ;;  %v3258_v26 = vld [vmem:[%s4033_s7 + $0x45c] sm:$0xf0] }
 0x143   : > { %v2096_v34 = vpop.f32.mrf.mxu0  ;;  %v3264_v33 = vld [vmem:[%s4033_s7 + $0x440] sm:$0xf]  ;;  %v3261_v1 = vor.u32 %v3715_v25, %v3258_v26  ;;  %v3588_v26 = vld [vmem:[%s4033_s7 + $0x40] sm:$0xf0] }
 0x144   : > { %v4509_v6 = vadd.f32 %v2094_v22, %v2006_v37  ;;  %v3720_v37 = vld [vmem:[%s4033_s7 + $0x460] sm:$0xf0]  ;;  %v2748_v25 = vld [vmem:[%s4033_s7 + $0x20] sm:$0xf] }
 0x145   : > { %v3265_v51 = vor.u32 %v3720_v37, %v3264_v33 }
 0x147   : > { %v1918_v54 = vpop.f32.mrf.mxu2 }
 0x148   : > { %v1919_v58 = vadd.f32 %v1918_v54, %v1830_v0  ;;  %v2007_v59 = vpop.f32.mrf.mxu3  ;;  %v3716_v0 = vld [vmem:[%s4033_s7 + $0x444] sm:$0xf] }
 0x149   : > { %v1832_v40 = vpop.f32.mrf.mxu1 }
 0x14a   : > { %v2008_v7 = vadd.f32 %v2007_v59, %v1919_v58  ;;  %v1833_v45 = vadd.f32 %v1832_v40, %v4320_v27  ;;  %v3273_v58 = vor.u32 %v3721_v46, %v3272_v42 }
 0x14b   : > { %v2099_v16 = vpop.f32.mrf.mxu0 }
 0x14c   : > { %1871 = vmatmul.bf16.gmra.mxu1 %v3225_v62  ;;  %1960 = vmatmul.bf16.gmra.mxu2 %v3229_v44  ;;  %v4518_v17 = vadd.f32 %v2096_v34, %v2008_v7  ;;  %v3266_v34 = vld [vmem:[%s4033_s7 + $0x464] sm:$0xf0] }
 0x14d   : > { %2049 = vmatmul.bf16.gmra.mxu3 %v3233_v9  ;;  %v3269_v54 = vor.u32 %v3716_v0, %v3266_v34 }
 0x14e   : > { %2138 = vmatmul.bf16.gmra.mxu0 %v3237_v11 }
 0x14f   : > { %v1921_v19 = vpop.f32.mrf.mxu2 }
 0x150   : > { %v1922_v20 = vadd.f32 %v1921_v19, %v1833_v45  ;;  %v2010_v15 = vpop.f32.mrf.mxu3  ;;  %v3582_v19 = vld [vmem:[%s4033_s7 + $0x14] sm:$0xf] }
 0x151   : > { %v1834_v21 = vpop.f32.mrf.mxu1 }
 0x152   : > { %v2011_v8 = vadd.f32 %v2010_v15, %v1922_v20  ;;  %v1835_v27 = vadd.f32 %v1834_v21, %v4337_v38  ;;  %v2734_v20 = vld [vmem:[%s4033_s7 + $0x34] sm:$0xf0] }
 0x153   : > { %v2101_v22 = vpop.f32.mrf.mxu0  ;;  %v2740_v21 = vld [vmem:[%s4033_s7 + $0x18] sm:$0xf]  ;;  %v2737_v34 = vor.u32 %v3582_v19, %v2734_v20  ;;  %v2784_v19 = vld [vmem:[%s4033_s7 + $0x68] sm:$0xf]  ;;  %v3597_v20 = vld [vmem:[%s4033_s7 + $0x88] sm:$0xf0] }
 0x154   : > { %v4523_v30 = vadd.f32 %v2099_v16, %v2011_v8  ;;  %v3587_v8 = vld [vmem:[%s4033_s7 + $0x38] sm:$0xf0] }
 0x155   : > { %v2741_v42 = vor.u32 %v3587_v8, %v2740_v21 }
 0x157   : > { %v1923_v48 = vpop.f32.mrf.mxu2 }
 0x158   : > { %v1924_v49 = vadd.f32 %v1923_v48, %v1835_v27  ;;  %v2012_v50 = vpop.f32.mrf.mxu3  ;;  %v3583_v27 = vld [vmem:[%s4033_s7 + $0x1c] sm:$0xf] }
 0x159   : > { %v1837_v52 = vpop.f32.mrf.mxu1 }
 0x15a   : > { %v2013_v38 = vadd.f32 %v2012_v50, %v1924_v49  ;;  %v1838_v59 = vadd.f32 %v1837_v52, %v4362_v4  ;;  %v2749_v49 = vor.u32 %v3588_v26, %v2748_v25 }
 0x15b   : > { %v2104_v62 = vpop.f32.mrf.mxu0 }
 0x15c   : > { %1876 = vmatmul.bf16.gmra.mxu1 %v3261_v1  ;;  %1965 = vmatmul.bf16.gmra.mxu2 %v3265_v51  ;;  %v4532_v44 = vadd.f32 %v2101_v22, %v2013_v38  ;;  %v2742_v22 = vld [vmem:[%s4033_s7 + $0x3c] sm:$0xf0] }
 0x15d   : > { %2054 = vmatmul.bf16.gmra.mxu3 %v3269_v54  ;;  %v2745_v48 = vor.u32 %v3583_v27, %v2742_v22 }
 0x15e   : > { %2143 = vmatmul.bf16.gmra.mxu0 %v3273_v58 }
 0x15f   : > { %v1926_v40 = vpop.f32.mrf.mxu2 }
 0x160   : > { %v1927_v9 = vadd.f32 %v1926_v40, %v1838_v59  ;;  %v2015_v11 = vpop.f32.mrf.mxu3  ;;  %v3591_v40 = vld [vmem:[%s4033_s7 + $0x5c] sm:$0xf] }
 0x161   : > { %v1839_v7 = vpop.f32.mrf.mxu1 }
 0x162   : > { %v2016_v45 = vadd.f32 %v2015_v11, %v1927_v9  ;;  %v1840_v4 = vadd.f32 %v1839_v7, %v4373_v14  ;;  %v2770_v9 = vld [vmem:[%s4033_s7 + $0x7c] sm:$0xf0] }
 0x163   : > { %v2106_v16 = vpop.f32.mrf.mxu0  ;;  %v2776_v7 = vld [vmem:[%s4033_s7 + $0x60] sm:$0xf]  ;;  %v2773_v22 = vor.u32 %v3591_v40, %v2770_v9  ;;  %v2820_v40 = vld [vmem:[%s4033_s7 + $0xb0] sm:$0xf]  ;;  %v3606_v9 = vld [vmem:[%s4033_s7 + $0xd0] sm:$0xf0] }
 0x164   : > { %v4537_v15 = vadd.f32 %v2104_v62, %v2016_v45  ;;  %v3596_v45 = vld [vmem:[%s4033_s7 + $0x80] sm:$0xf0] }
 0x165   : > { %v2777_v25 = vor.u32 %v3596_v45, %v2776_v7 }
 0x167   : > { %v1928_v33 = vpop.f32.mrf.mxu2 }
 0x168   : > { %v1929_v37 = vadd.f32 %v1928_v33, %v1840_v4  ;;  %v2017_v0 = vpop.f32.mrf.mxu3  ;;  %v3592_v4 = vld [vmem:[%s4033_s7 + $0x64] sm:$0xf] }
 0x169   : > { %v1842_v46 = vpop.f32.mrf.mxu1 }
 0x16a   : > { %v2018_v14 = vadd.f32 %v2017_v0, %v1929_v37  ;;  %v1843_v50 = vadd.f32 %v1842_v46, %v4259_v39  ;;  %v2785_v37 = vor.u32 %v3597_v20, %v2784_v19 }
 0x16b   : > { %v2109_v1 = vpop.f32.mrf.mxu0 }
 0x16c   : > { %2157 = vmatmul.bf16.vlgmr.msra.gmra.mxu1 %v2737_v34  ;;  %2246 = vmatmul.bf16.vlgmr.msra.gmra.mxu2 %v2741_v42  ;;  %v4546_v51 = vadd.f32 %v2106_v16, %v2018_v14  ;;  %v2778_v16 = vld [vmem:[%s4033_s7 + $0x84] sm:$0xf0] }
 0x16d   : > { %2335 = vmatmul.bf16.vlgmr.msra.gmra.mxu3 %v2745_v48  ;;  %v2781_v33 = vor.u32 %v3592_v4, %v2778_v16 }
 0x16e   : > { %2424 = vmatmul.bf16.vlgmr.msra.gmra.mxu0 %v2749_v49 }
 0x16f   : > { %v1931_v52 = vpop.f32.mrf.mxu2 }
 0x170   : > { %v1932_v54 = vadd.f32 %v1931_v52, %v1843_v50  ;;  %v2020_v58 = vpop.f32.mrf.mxu3  ;;  %v3600_v52 = vld [vmem:[%s4033_s7 + $0xa4] sm:$0xf] }
 0x171   : > { %v1844_v38 = vpop.f32.mrf.mxu1 }
 0x172   : > { %v2021_v59 = vadd.f32 %v2020_v58, %v1932_v54  ;;  %v1845_v39 = vadd.f32 %v1844_v38, %v4284_v56  ;;  %v2806_v54 = vld [vmem:[%s4033_s7 + $0xc4] sm:$0xf0] }
 0x173   : > { %v2111_v62 = vpop.f32.mrf.mxu0  ;;  %v2812_v38 = vld [vmem:[%s4033_s7 + $0xa8] sm:$0xf]  ;;  %v2809_v16 = vor.u32 %v3600_v52, %v2806_v54  ;;  %v2856_v52 = vld [vmem:[%s4033_s7 + $0xf8] sm:$0xf]  ;;  %v3615_v54 = vld [vmem:[%s4033_s7 + $0x118] sm:$0xf0] }
 0x174   : > { %v4551_v11 = vadd.f32 %v2109_v1, %v2021_v59  ;;  %v3605_v59 = vld [vmem:[%s4033_s7 + $0xc8] sm:$0xf0] }
 0x175   : > { %v2813_v19 = vor.u32 %v3605_v59, %v2812_v38 }
 0x177   : > { %v1933_v21 = vpop.f32.mrf.mxu2 }
 0x178   : > { %v1934_v8 = vadd.f32 %v1933_v21, %v1845_v39  ;;  %v2022_v27 = vpop.f32.mrf.mxu3  ;;  %v3601_v39 = vld [vmem:[%s4033_s7 + $0xac] sm:$0xf] }
 0x179   : > { %v1847_v26 = vpop.f32.mrf.mxu1 }
 0x17a   : > { %v2023_v56 = vadd.f32 %v2022_v27, %v1934_v8  ;;  %v1848_v0 = vadd.f32 %v1847_v26, %v4295_v3  ;;  %v2821_v8 = vor.u32 %v3606_v9, %v2820_v40 }
 0x17b   : > { %v2114_v34 = vpop.f32.mrf.mxu0 }
 0x17c   : > { %2162 = vmatmul.bf16.gmra.mxu1 %v2773_v22  ;;  %2251 = vmatmul.bf16.gmra.mxu2 %v2777_v25  ;;  %v4560_v42 = vadd.f32 %v2111_v62, %v2023_v56  ;;  %v2814_v62 = vld [vmem:[%s4033_s7 + $0xcc] sm:$0xf0] }
 0x17d   : > { %2340 = vmatmul.bf16.gmra.mxu3 %v2781_v33  ;;  %v2817_v21 = vor.u32 %v3601_v39, %v2814_v62 }
 0x17e   : > { %2429 = vmatmul.bf16.gmra.mxu0 %v2785_v37 }
 0x17f   : > { %v1936_v46 = vpop.f32.mrf.mxu2 }
 0x180   : > { %v1937_v48 = vadd.f32 %v1936_v46, %v1848_v0  ;;  %v2025_v49 = vpop.f32.mrf.mxu3  ;;  %v3609_v46 = vld [vmem:[%s4033_s7 + $0xec] sm:$0xf] }
 0x181   : > { %v1849_v14 = vpop.f32.mrf.mxu1 }
 0x182   : > { %v2026_v50 = vadd.f32 %v2025_v49, %v1937_v48  ;;  %v1850_v3 = vadd.f32 %v1849_v14, %v4314_v18  ;;  %v2842_v48 = vld [vmem:[%s4033_s7 + $0x10c] sm:$0xf0] }
 0x183   : > { %v2116_v1 = vpop.f32.mrf.mxu0  ;;  %v2848_v14 = vld [vmem:[%s4033_s7 + $0xf0] sm:$0xf]  ;;  %v2845_v62 = vor.u32 %v3609_v46, %v2842_v48  ;;  %v2892_v46 = vld [vmem:[%s4033_s7 + $0x140] sm:$0xf]  ;;  %v3624_v48 = vld [vmem:[%s4033_s7 + $0x160] sm:$0xf0] }
 0x184   : > { %v4565_v58 = vadd.f32 %v2114_v34, %v2026_v50  ;;  %v3614_v50 = vld [vmem:[%s4033_s7 + $0x110] sm:$0xf0] }
 0x185   : > { %v2849_v40 = vor.u32 %v3614_v50, %v2848_v14 }
 0x187   : > { %v1938_v7 = vpop.f32.mrf.mxu2 }
 0x188   : > { %v1939_v45 = vadd.f32 %v1938_v7, %v1850_v3  ;;  %v2027_v4 = vpop.f32.mrf.mxu3  ;;  %v3610_v3 = vld [vmem:[%s4033_s7 + $0xf4] sm:$0xf] }
 0x189   : > { %v1852_v20 = vpop.f32.mrf.mxu1 }
 0x18a   : > { %v2028_v18 = vadd.f32 %v2027_v4, %v1939_v45  ;;  %v1853_v27 = vadd.f32 %v1852_v20, %v4331_v32  ;;  %v2857_v45 = vor.u32 %v3615_v54, %v2856_v52 }
 0x18b   : > { %v2119_v22 = vpop.f32.mrf.mxu0 }
 0x18c   : > { %2167 = vmatmul.bf16.gmra.mxu1 %v2809_v16  ;;  %2256 = vmatmul.bf16.gmra.mxu2 %v2813_v19  ;;  %v4574_v25 = vadd.f32 %v2116_v1, %v2028_v18  ;;  %v2850_v1 = vld [vmem:[%s4033_s7 + $0x114] sm:$0xf0] }
 0x18d   : > { %2345 = vmatmul.bf16.gmra.mxu3 %v2817_v21  ;;  %v2853_v7 = vor.u32 %v3610_v3, %v2850_v1 }
 0x18e   : > { %2434 = vmatmul.bf16.gmra.mxu0 %v2821_v8 }
 0x18f   : > { %v1941_v26 = vpop.f32.mrf.mxu2 }
 0x190   : > { %v1942_v33 = vadd.f32 %v1941_v26, %v1853_v27  ;;  %v2030_v37 = vpop.f32.mrf.mxu3  ;;  %v3618_v26 = vld [vmem:[%s4033_s7 + $0x134] sm:$0xf] }
 0x191   : > { %v1854_v56 = vpop.f32.mrf.mxu1 }
 0x192   : > { %v2031_v0 = vadd.f32 %v2030_v37, %v1942_v33  ;;  %v1855_v32 = vadd.f32 %v1854_v56, %v4356_v55  ;;  %v2878_v33 = vld [vmem:[%s4033_s7 + $0x154] sm:$0xf0] }
 0x193   : > { %v2121_v34 = vpop.f32.mrf.mxu0  ;;  %v2884_v56 = vld [vmem:[%s4033_s7 + $0x138] sm:$0xf]  ;;  %v2881_v1 = vor.u32 %v3618_v26, %v2878_v33  ;;  %v2928_v26 = vld [vmem:[%s4033_s7 + $0x188] sm:$0xf]  ;;  %v3633_v33 = vld [vmem:[%s4033_s7 + $0x1a8] sm:$0xf0] }
 0x194   : > { %v4579_v49 = vadd.f32 %v2119_v22, %v2031_v0  ;;  %v3623_v0 = vld [vmem:[%s4033_s7 + $0x158] sm:$0xf0] }
 0x195   : > { %v2885_v52 = vor.u32 %v3623_v0, %v2884_v56 }
 0x197   : > { %v1943_v38 = vpop.f32.mrf.mxu2 }
 0x198   : > { %v1944_v59 = vadd.f32 %v1943_v38, %v1855_v32  ;;  %v2032_v39 = vpop.f32.mrf.mxu3  ;;  %v3619_v32 = vld [vmem:[%s4033_s7 + $0x13c] sm:$0xf] }
 0x199   : > { %v1857_v9 = vpop.f32.mrf.mxu1 }
 0x19a   : > { %v2033_v55 = vadd.f32 %v2032_v39, %v1944_v59  ;;  %v1858_v4 = vadd.f32 %v1857_v9, %v4367_v10  ;;  %v2893_v59 = vor.u32 %v3624_v48, %v2892_v46 }
 0x19b   : > { %v2124_v16 = vpop.f32.mrf.mxu0 }
 0x19c   : > { %2172 = vmatmul.bf16.gmra.mxu1 %v2845_v62  ;;  %2261 = vmatmul.bf16.gmra.mxu2 %v2849_v40  ;;  %v4588_v19 = vadd.f32 %v2121_v34, %v2033_v55  ;;  %v2886_v34 = vld [vmem:[%s4033_s7 + $0x15c] sm:$0xf0] }
 0x19d   : > { %2350 = vmatmul.bf16.gmra.mxu3 %v2853_v7  ;;  %v2889_v38 = vor.u32 %v3619_v32, %v2886_v34 }
 0x19e   : > { %2439 = vmatmul.bf16.gmra.mxu0 %v2857_v45 }
 0x19f   : > { %v1946_v20 = vpop.f32.mrf.mxu2 }
 0x1a0   : > { %v1947_v21 = vadd.f32 %v1946_v20, %v1858_v4  ;;  %v2035_v8 = vpop.f32.mrf.mxu3  ;;  %v3627_v20 = vld [vmem:[%s4033_s7 + $0x17c] sm:$0xf] }
 0x1a1   : > { %v1859_v18 = vpop.f32.mrf.mxu1 }
 0x1a2   : > { %v2036_v27 = vadd.f32 %v2035_v8, %v1947_v21  ;;  %v1860_v10 = vadd.f32 %v1859_v18, %v4388_v31  ;;  %v2914_v21 = vld [vmem:[%s4033_s7 + $0x19c] sm:$0xf0] }
 0x1a3   : > { %v2126_v22 = vpop.f32.mrf.mxu0  ;;  %v2920_v18 = vld [vmem:[%s4033_s7 + $0x180] sm:$0xf]  ;;  %v2917_v34 = vor.u32 %v3627_v20, %v2914_v21  ;;  %v2964_v20 = vld [vmem:[%s4033_s7 + $0x1d0] sm:$0xf]  ;;  %v3642_v21 = vld [vmem:[%s4033_s7 + $0x1f0] sm:$0xf0] }
 0x1a4   : > { %v4593_v37 = vadd.f32 %v2124_v16, %v2036_v27  ;;  %v3632_v27 = vld [vmem:[%s4033_s7 + $0x1a0] sm:$0xf0] }
 0x1a5   : > { %v2921_v46 = vor.u32 %v3632_v27, %v2920_v18 }
 0x1a7   : > { %v1948_v14 = vpop.f32.mrf.mxu2 }
 0x1a8   : > { %v1949_v50 = vadd.f32 %v1948_v14, %v1860_v10  ;;  %v2037_v3 = vpop.f32.mrf.mxu3  ;;  %v3628_v10 = vld [vmem:[%s4033_s7 + $0x184] sm:$0xf] }
 0x1a9   : > { %v1862_v54 = vpop.f32.mrf.mxu1 }
 0x1aa   : > { %v2038_v31 = vadd.f32 %v2037_v3, %v1949_v50  ;;  %v1863_v39 = vadd.f32 %v1862_v54, %v4262_v41  ;;  %v2929_v50 = vor.u32 %v3633_v33, %v2928_v26 }
 0x1ab   : > { %v2129_v62 = vpop.f32.mrf.mxu0 }
 0x1ac   : > { %2177 = vmatmul.bf16.gmra.mxu1 %v2881_v1  ;;  %2266 = vmatmul.bf16.gmra.mxu2 %v2885_v52  ;;  %v4602_v40 = vadd.f32 %v2126_v22, %v2038_v31  ;;  %v2922_v22 = vld [vmem:[%s4033_s7 + $0x1a4] sm:$0xf0] }
 0x1ad   : > { %2355 = vmatmul.bf16.gmra.mxu3 %v2889_v38  ;;  %v2925_v14 = vor.u32 %v3628_v10, %v2922_v22 }
 0x1ae   : > { %2444 = vmatmul.bf16.gmra.mxu0 %v2893_v59 }
 0x1af   : > { %v1951_v9 = vpop.f32.mrf.mxu2 }
 0x1b0   : > { %v1952_v7 = vadd.f32 %v1951_v9, %v1863_v39  ;;  %v2040_v45 = vpop.f32.mrf.mxu3  ;;  %v3636_v9 = vld [vmem:[%s4033_s7 + $0x1c4] sm:$0xf] }
 0x1b1   : > { %v1864_v55 = vpop.f32.mrf.mxu1 }
 0x1b2   : > { %v2041_v4 = vadd.f32 %v2040_v45, %v1952_v7  ;;  %v1865_v41 = vadd.f32 %v1864_v55, %v4287_v60  ;;  %v2950_v7 = vld [vmem:[%s4033_s7 + $0x1e4] sm:$0xf0] }
 0x1b3   : > { %v2131_v16 = vpop.f32.mrf.mxu0  ;;  %v2956_v55 = vld [vmem:[%s4033_s7 + $0x1c8] sm:$0xf]  ;;  %v2953_v22 = vor.u32 %v3636_v9, %v2950_v7  ;;  %v3000_v9 = vld [vmem:[%s4033_s7 + $0x218] sm:$0xf]  ;;  %v3651_v7 = vld [vmem:[%s4033_s7 + $0x238] sm:$0xf0] }
 0x1b4   : > { %v4607_v8 = vadd.f32 %v2129_v62, %v2041_v4  ;;  %v3641_v4 = vld [vmem:[%s4033_s7 + $0x1e8] sm:$0xf0] }
 0x1b5   : > { %v2957_v26 = vor.u32 %v3641_v4, %v2956_v55 }
 0x1b7   : > { %v1953_v56 = vpop.f32.mrf.mxu2 }
 0x1b8   : > { %v1954_v0 = vadd.f32 %v1953_v56, %v1865_v41  ;;  %v2042_v32 = vpop.f32.mrf.mxu3  ;;  %v3637_v41 = vld [vmem:[%s4033_s7 + $0x1cc] sm:$0xf] }
 0x1b9   : > { %v1867_v48 = vpop.f32.mrf.mxu1 }
 0x1ba   : > { %v2043_v60 = vadd.f32 %v2042_v32, %v1954_v0  ;;  %v1868_v3 = vadd.f32 %v1867_v48, %v4298_v5  ;;  %v2965_v0 = vor.u32 %v3642_v21, %v2964_v20 }
 0x1bb   : > { %v2134_v1 = vpop.f32.mrf.mxu0 }
 0x1bc   : > { %2182 = vmatmul.bf16.gmra.mxu1 %v2917_v34  ;;  %2271 = vmatmul.bf16.gmra.mxu2 %v2921_v46  ;;  %v4616_v52 = vadd.f32 %v2131_v16, %v2043_v60  ;;  %v2958_v16 = vld [vmem:[%s4033_s7 + $0x1ec] sm:$0xf0] }
 0x1bd   : > { %2360 = vmatmul.bf16.gmra.mxu3 %v2925_v14  ;;  %v2961_v56 = vor.u32 %v3637_v41, %v2958_v16 }
 0x1be   : > { %2449 = vmatmul.bf16.gmra.mxu0 %v2929_v50 }
 0x1bf   : > { %v1956_v54 = vpop.f32.mrf.mxu2 }
 0x1c0   : > { %v1957_v38 = vadd.f32 %v1956_v54, %v1868_v3  ;;  %v2045_v59 = vpop.f32.mrf.mxu3  ;;  %v3645_v54 = vld [vmem:[%s4033_s7 + $0x20c] sm:$0xf] }
 0x1c1   : > { %v1869_v31 = vpop.f32.mrf.mxu1 }
 0x1c2   : > { %v2046_v39 = vadd.f32 %v2045_v59, %v1957_v38  ;;  %v1870_v5 = vadd.f32 %v1869_v31, %v4317_v23  ;;  %v2986_v38 = vld [vmem:[%s4033_s7 + $0x22c] sm:$0xf0] }
 0x1c3   : > { %v2136_v62 = vpop.f32.mrf.mxu0  ;;  %v2992_v31 = vld [vmem:[%s4033_s7 + $0x210] sm:$0xf]  ;;  %v2989_v16 = vor.u32 %v3645_v54, %v2986_v38  ;;  %v3036_v54 = vld [vmem:[%s4033_s7 + $0x260] sm:$0xf]  ;;  %v3660_v38 = vld [vmem:[%s4033_s7 + $0x280] sm:$0xf0] }
 0x1c4   : > { %v4621_v45 = vadd.f32 %v2134_v1, %v2046_v39  ;;  %v3650_v39 = vld [vmem:[%s4033_s7 + $0x230] sm:$0xf0] }
 0x1c5   : > { %v2993_v20 = vor.u32 %v3650_v39, %v2992_v31 }
 0x1c7   : > { %v1958_v18 = vpop.f32.mrf.mxu2 }
 0x1c8   : > { %v1959_v27 = vadd.f32 %v1958_v18, %v1870_v5  ;;  %v2047_v10 = vpop.f32.mrf.mxu3  ;;  %v3646_v5 = vld [vmem:[%s4033_s7 + $0x214] sm:$0xf] }
 0x1c9   : > { %v1872_v33 = vpop.f32.mrf.mxu1 }
 0x1ca   : > { %v2048_v23 = vadd.f32 %v2047_v10, %v1959_v27  ;;  %v1873_v32 = vadd.f32 %v1872_v33, %v4334_v36  ;;  %v3001_v27 = vor.u32 %v3651_v7, %v3000_v9 }
 0x1cb   : > { %v2139_v34 = vpop.f32.mrf.mxu0 }
 0x1cc   : > { %2187 = vmatmul.bf16.gmra.mxu1 %v2953_v22  ;;  %2276 = vmatmul.bf16.gmra.mxu2 %v2957_v26  ;;  %v4630_v46 = vadd.f32 %v2136_v62, %v2048_v23  ;;  %v2994_v62 = vld [vmem:[%s4033_s7 + $0x234] sm:$0xf0] }
 0x1cd   : > { %2365 = vmatmul.bf16.gmra.mxu3 %v2961_v56  ;;  %v2997_v18 = vor.u32 %v3646_v5, %v2994_v62 }
 0x1ce   : > { %2454 = vmatmul.bf16.gmra.mxu0 %v2965_v0 }
 0x1cf   : > { %v1961_v48 = vpop.f32.mrf.mxu2 }
 0x1d0   : > { %v1962_v14 = vadd.f32 %v1961_v48, %v1873_v32  ;;  %v2050_v50 = vpop.f32.mrf.mxu3  ;;  %v3654_v48 = vld [vmem:[%s4033_s7 + $0x254] sm:$0xf] }
 0x1d1   : > { %v1874_v60 = vpop.f32.mrf.mxu1 }
 0x1d2   : > { %v2051_v3 = vadd.f32 %v2050_v50, %v1962_v14  ;;  %v1875_v36 = vadd.f32 %v1874_v60, %v4359_v61  ;;  %v3022_v14 = vld [vmem:[%s4033_s7 + $0x274] sm:$0xf0] }
 0x1d3   : > { %v2141_v1 = vpop.f32.mrf.mxu0  ;;  %v3028_v60 = vld [vmem:[%s4033_s7 + $0x258] sm:$0xf]  ;;  %v3025_v62 = vor.u32 %v3654_v48, %v3022_v14  ;;  %v3072_v48 = vld [vmem:[%s4033_s7 + $0x2a8] sm:$0xf]  ;;  %v3669_v14 = vld [vmem:[%s4033_s7 + $0x2c8] sm:$0xf0] }
 0x1d4   : > { %v4635_v59 = vadd.f32 %v2139_v34, %v2051_v3  ;;  %v3659_v3 = vld [vmem:[%s4033_s7 + $0x278] sm:$0xf0] }
 0x1d5   : > { %v3029_v9 = vor.u32 %v3659_v3, %v3028_v60 }
 0x1d7   : > { %v1963_v55 = vpop.f32.mrf.mxu2 }
 0x1d8   : > { %v1964_v4 = vadd.f32 %v1963_v55, %v1875_v36  ;;  %v2052_v41 = vpop.f32.mrf.mxu3  ;;  %v3655_v36 = vld [vmem:[%s4033_s7 + $0x25c] sm:$0xf] }
 0x1d9   : > { %v1877_v21 = vpop.f32.mrf.mxu1 }
 0x1da   : > { %v2053_v61 = vadd.f32 %v2052_v41, %v1964_v4  ;;  %v1878_v10 = vadd.f32 %v1877_v21, %v4370_v12 }
 0x1db   : > { %v2144_v22 = vpop.f32.mrf.mxu0 }
 0x1dc   : > { %2192 = vmatmul.bf16.gmra.mxu1 %v2989_v16  ;;  %2281 = vmatmul.bf16.gmra.mxu2 %v2993_v20  ;;  %v4644_v26 = vadd.f32 %v2141_v1, %v2053_v61  ;;  %v3030_v1 = vld [vmem:[%s4033_s7 + $0x27c] sm:$0xf0] }
 0x1dd   : > { %2370 = vmatmul.bf16.gmra.mxu3 %v2997_v18  ;;  %v3033_v55 = vor.u32 %v3655_v36, %v3030_v1 }
 0x1de   : > { %2459 = vmatmul.bf16.gmra.mxu0 %v3001_v27 }
 0x1df   : > { %v1966_v33 = vpop.f32.mrf.mxu2 }
 0x1e0   : > { %v1967_v56 = vadd.f32 %v1966_v33, %v1878_v10  ;;  %v2055_v0 = vpop.f32.mrf.mxu3  ;;  %v3058_v33 = vld [vmem:[%s4033_s7 + $0x2bc] sm:$0xf0] }
 0x1e1   : > { %v1879_v23 = vpop.f32.mrf.mxu1 }
 0x1e2   : > { %v2056_v32 = vadd.f32 %v2055_v0, %v1967_v56  ;;  %v1880_v12 = vadd.f32 %v1879_v23, %v4391_v43  ;;  %v3037_v43 = vor.u32 %v3660_v38, %v3036_v54  ;;  %v3064_v56 = vld [vmem:[%s4033_s7 + $0x2a0] sm:$0xf]  ;;  %v3668_v0 = vld [vmem:[%s4033_s7 + $0x2c0] sm:$0xf0] }
 0x1e3   : > { %v2146_v34 = vpop.f32.mrf.mxu0  ;;  %v3664_v23 = vld [vmem:[%s4033_s7 + $0x2a4] sm:$0xf]  ;;  %v3065_v1 = vor.u32 %v3668_v0, %v3064_v56 }
 0x1e4   : > { %v4649_v50 = vadd.f32 %v2144_v22, %v2056_v32  ;;  %v3663_v22 = vld [vmem:[%s4033_s7 + $0x29c] sm:$0xf] }
 0x1e7   : > { %v1968_v31 = vpop.f32.mrf.mxu2 }
 0x1e8   : > { %v1969_v39 = vadd.f32 %v1968_v31, %v1880_v12  ;;  %v2057_v5 = vpop.f32.mrf.mxu3  ;;  %v3073_v31 = vor.u32 %v3669_v14, %v3072_v48 }
 0x1e9   : > { %v2158_v7 = vpop.f32.mrf.mxu1 }
 0x1ea   : > { %v2058_v4 = vadd.f32 %v2057_v5, %v1969_v39  ;;  %v2159_v21 = vadd.f32 %v2158_v7, %v4409_v13  ;;  %v3061_v13 = vor.u32 %v3663_v22, %v3058_v33  ;;  %v3677_v22 = vld [vmem:[%s4033_s7 + $0x308] sm:$0xf0] }
 0x1eb   : > { %v2425_v41 = vpop.f32.mrf.mxu0  ;;  %v3673_v33 = vld [vmem:[%s4033_s7 + $0x2ec] sm:$0xf] }
 0x1ec   : > { %2197 = vmatmul.bf16.gmra.mxu1 %v3025_v62  ;;  %2286 = vmatmul.bf16.gmra.mxu2 %v3029_v9  ;;  %v4657_v16 = vadd.f32 %v2146_v34, %v2058_v4  ;;  %v3066_v34 = vld [vmem:[%s4033_s7 + $0x2c4] sm:$0xf0] }
 0x1ed   : > { %2375 = vmatmul.bf16.gmra.mxu3 %v3033_v55  ;;  %v3069_v38 = vor.u32 %v3664_v23, %v3066_v34  ;;  %v3102_v23 = vld [vmem:[%s4033_s7 + $0x30c] sm:$0xf0] }
 0x1ee   : > { %2464 = vmatmul.bf16.gmra.mxu0 %v3037_v43 }
 0x1ef   : > { %v2247_v20 = vpop.f32.mrf.mxu2 }
 0x1f0   : > { %v2336_v18 = vpop.f32.mrf.mxu3  ;;  %v2248_v61 = vadd.f32 %v2247_v20, %v2159_v21 }
 0x1f1   : > { %v2160_v27 = vpop.f32.mrf.mxu1 }
 0x1f2   : > { %v2337_v32 = vadd.f32 %v2336_v18, %v2248_v61  ;;  %v2161_v12 = vadd.f32 %v2160_v27, %v4419_v35  ;;  %v3672_v27 = vld [vmem:[%s4033_s7 + $0x2e4] sm:$0xf]  ;;  %v3094_v61 = vld [vmem:[%s4033_s7 + $0x304] sm:$0xf0] }
 0x1f3   : > { %v2427_v10 = vpop.f32.mrf.mxu0 }
 0x1f4   : > { %v2426_v39 = vadd.f32 %v2425_v41, %v2337_v32  ;;  %v3108_v32 = vld [vmem:[%s4033_s7 + $0x2f0] sm:$0xf] }
 0x1f6   : > { %v2505_v35 = vmax.f32 %v2426_v39, 0.0 }
 0x1f7   : > { %v2249_v60 = vpop.f32.mrf.mxu2 }
 0x1f8   : > { %v2250_v3 = vadd.f32 %v2249_v60, %v2161_v12  ;;  %v2338_v36 = vpop.f32.mrf.mxu3  ;;  %v3678_v12 = vld [vmem:[%s4033_s7 + $0x310] sm:$0xf0] }
 0x1f9   : > { %v2163_v54 = vpop.f32.mrf.mxu1 }
 0x1fa   : > { %v2339_v5 = vadd.f32 %v2338_v36, %v2250_v3  ;;  %v2164_v4 = vadd.f32 %v2163_v54, %v4425_v63  ;;  %v3097_v63 = vor.u32 %v3672_v27, %v3094_v61  ;;  %v3105_v36 = vor.u32 %v3673_v33, %v3102_v23  ;;  %v3687_v33 = vld [vmem:[%s4033_s7 + $0x358] sm:$0xf0] }
 0x1fb   : > { %v2430_v62 = vpop.f32.mrf.mxu0 }
 0x1fc   : > { %v2428_v9 = vadd.f32 %v2427_v10, %v2339_v5  ;;  %2202 = vmatmul.bf16.gmra.mxu1 %v3061_v13  ;;  %2291 = vmatmul.bf16.gmra.mxu2 %v3065_v1  ;;  %v3100_v10 = vld [vmem:[%s4033_s7 + $0x2e8] sm:$0xf]  ;;  %v3109_v13 = vor.u32 %v3678_v12, %v3108_v32 }
 0x1fd   : > { %2380 = vmatmul.bf16.gmra.mxu3 %v3069_v38  ;;  %v3101_v60 = vor.u32 %v3677_v22, %v3100_v10  ;;  %v3138_v10 = vld [vmem:[%s4033_s7 + $0x354] sm:$0xf0] }
 0x1fe   : > { %2469 = vmatmul.bf16.gmra.mxu0 %v3073_v31  ;;  %v2506_v7 = vmax.f32 %v2428_v9, 0.0  ;;  %v3144_v22 = vld [vmem:[%s4033_s7 + $0x338] sm:$0xf] }
 0x1ff   : > { %v2252_v55 = vpop.f32.mrf.mxu2 }
 0x200   : > { %v3799_v43 = vpack.c.bf16 %v2506_v7, %v2505_v35  ;;  %v2341_v41 = vpop.f32.mrf.mxu3  ;;  %v2253_v21 = vadd.f32 %v2252_v55, %v2164_v4  ;;  %v3681_v4 = vld [vmem:[%s4033_s7 + $0x32c] sm:$0xf] }
 0x201   : > { %v2165_v20 = vpop.f32.mrf.mxu1 }
 0x202   : > { %3800 = vst [vmem:[%s4673_s11] sm:$0xff] %v3799_v43   ;;  %v2342_v56 = vadd.f32 %v2341_v41, %v2253_v21  ;;  %v2166_v0 = vadd.f32 %v2165_v20, %v4435_v47  ;;  %v3130_v41 = vld [vmem:[%s4033_s7 + $0x34c] sm:$0xf0]  ;;  %v3686_v21 = vld [vmem:[%s4033_s7 + $0x350] sm:$0xf0] }
 0x203   : > { %v2432_v18 = vpop.f32.mrf.mxu0  ;;  %v3136_v20 = vld [vmem:[%s4033_s7 + $0x330] sm:$0xf] }
 0x204   : > { %v2431_v1 = vadd.f32 %v2430_v62, %v2342_v56  ;;  %v3137_v32 = vor.u32 %v3686_v21, %v3136_v20  ;;  %v3696_v20 = vld [vmem:[%s4033_s7 + $0x3a0] sm:$0xf0] }
 0x206   : > { %v2507_v47 = vmax.f32 %v2431_v1, 0.0 }
 0x207   : > { %v2254_v34 = vpop.f32.mrf.mxu2 }
 0x208   : > { %v2255_v48 = vadd.f32 %v2254_v34, %v2166_v0  ;;  %v2343_v14 = vpop.f32.mrf.mxu3 }
 0x209   : > { %v2168_v3 = vpop.f32.mrf.mxu1 }
 0x20a   : > { %v2344_v54 = vadd.f32 %v2343_v14, %v2255_v48  ;;  %v2169_v62 = vadd.f32 %v2168_v3, %v4453_v2  ;;  %v3133_v2 = vor.u32 %v3681_v4, %v3130_v41  ;;  %v3145_v48 = vor.u32 %v3687_v33, %v3144_v22  ;;  %v3174_v4 = vld [vmem:[%s4033_s7 + $0x39c] sm:$0xf0] }
 0x20b   : > { %v2435_v38 = vpop.f32.mrf.mxu0  ;;  %v3180_v41 = vld [vmem:[%s4033_s7 + $0x380] sm:$0xf] }
 0x20c   : > { %v2433_v31 = vadd.f32 %v2432_v18, %v2344_v54  ;;  %2207 = vmatmul.bf16.gmra.mxu1 %v3097_v63  ;;  %2296 = vmatmul.bf16.gmra.mxu2 %v3101_v60  ;;  %v3682_v18 = vld [vmem:[%s4033_s7 + $0x334] sm:$0xf]  ;;  %v3181_v33 = vor.u32 %v3696_v20, %v3180_v41 }
 0x20d   : > { %2385 = vmatmul.bf16.gmra.mxu3 %v3105_v36  ;;  %v3141_v34 = vor.u32 %v3682_v18, %v3138_v10 }
 0x20e   : > { %2474 = vmatmul.bf16.gmra.mxu0 %v3109_v13  ;;  %v2508_v39 = vmax.f32 %v2433_v31, 0.0 }
 0x20f   : > { %v2257_v5 = vpop.f32.mrf.mxu2 }
 0x210   : > { %v3804_v9 = vpack.c.bf16 %v2508_v39, %v2507_v47  ;;  %v2346_v35 = vpop.f32.mrf.mxu3  ;;  %v2258_v55 = vadd.f32 %v2257_v5, %v2169_v62  ;;  %v3690_v5 = vld [vmem:[%s4033_s7 + $0x374] sm:$0xf]  ;;  %v3172_v62 = vld [vmem:[%s4033_s7 + $0x378] sm:$0xf] }
 0x211   : > { %v2170_v7 = vpop.f32.mrf.mxu1 }
 0x212   : > { %3876 = vst [vmem:[%s4673_s11 + $0x8] sm:$0xff] %v3804_v9   ;;  %v2347_v27 = vadd.f32 %v2346_v35, %v2258_v55  ;;  %v2171_v61 = vadd.f32 %v2170_v7, %v4463_v28  ;;  %v3166_v9 = vld [vmem:[%s4033_s7 + $0x394] sm:$0xf0]  ;;  %v3695_v35 = vld [vmem:[%s4033_s7 + $0x398] sm:$0xf0] }
 0x213   : > { %v2437_v43 = vpop.f32.mrf.mxu0  ;;  %v3691_v7 = vld [vmem:[%s4033_s7 + $0x37c] sm:$0xf] }
 0x214   : > { %v2436_v14 = vadd.f32 %v2435_v38, %v2347_v27  ;;  %v3177_v22 = vor.u32 %v3691_v7, %v3174_v4 }
 0x216   : > { %v2509_v28 = vmax.f32 %v2436_v14, 0.0 }
 0x217   : > { %v2259_v56 = vpop.f32.mrf.mxu2 }
 0x218   : > { %v2260_v0 = vadd.f32 %v2259_v56, %v2171_v61  ;;  %v2348_v23 = vpop.f32.mrf.mxu3  ;;  %v3173_v61 = vor.u32 %v3695_v35, %v3172_v62 }
 0x219   : > { %v2173_v12 = vpop.f32.mrf.mxu1 }
 0x21a   : > { %v2349_v63 = vadd.f32 %v2348_v23, %v2260_v0  ;;  %v2174_v54 = vadd.f32 %v2173_v12, %v4469_v57  ;;  %v3169_v57 = vor.u32 %v3690_v5, %v3166_v9  ;;  %v3705_v5 = vld [vmem:[%s4033_s7 + $0x3e8] sm:$0xf0] }
 0x21b   : > { %v2440_v60 = vpop.f32.mrf.mxu0 }
 0x21c   : > { %v2438_v3 = vadd.f32 %v2437_v43, %v2349_v63  ;;  %2212 = vmatmul.bf16.gmra.mxu1 %v3133_v2  ;;  %2301 = vmatmul.bf16.gmra.mxu2 %v3137_v32 }
 0x21d   : > { %2390 = vmatmul.bf16.gmra.mxu3 %v3141_v34 }
 0x21e   : > { %2479 = vmatmul.bf16.gmra.mxu0 %v3145_v48  ;;  %v2510_v36 = vmax.f32 %v2438_v3, 0.0 }
 0x21f   : > { %v2262_v13 = vpop.f32.mrf.mxu2 }
 0x220   : > { %v3809_v1 = vpack.c.bf16 %v2510_v36, %v2509_v28  ;;  %v2351_v38 = vpop.f32.mrf.mxu3  ;;  %v2263_v47 = vadd.f32 %v2262_v13, %v2174_v54  ;;  %v3699_v28 = vld [vmem:[%s4033_s7 + $0x3bc] sm:$0xf]  ;;  %v3202_v36 = vld [vmem:[%s4033_s7 + $0x3dc] sm:$0xf0]  ;;  %v3700_v54 = vld [vmem:[%s4033_s7 + $0x3c4] sm:$0xf] }
 0x221   : > { %v2175_v31 = vpop.f32.mrf.mxu1  ;;  %v3208_v13 = vld [vmem:[%s4033_s7 + $0x3c0] sm:$0xf] }
 0x222   : > { %3877 = vst [vmem:[%s4673_s11 + $0x10] sm:$0xff] %v3809_v1   ;;  %v2352_v55 = vadd.f32 %v2351_v38, %v2263_v47  ;;  %v2176_v43 = vadd.f32 %v2175_v31, %v4478_v29  ;;  %v3704_v1 = vld [vmem:[%s4033_s7 + $0x3e0] sm:$0xf0]  ;;  %v3210_v47 = vld [vmem:[%s4033_s7 + $0x3e4] sm:$0xf0] }
 0x223   : > { %v2442_v39 = vpop.f32.mrf.mxu0  ;;  %v3209_v7 = vor.u32 %v3704_v1, %v3208_v13 }
 0x224   : > { %v2441_v56 = vadd.f32 %v2440_v60, %v2352_v55 }
 0x226   : > { %v2511_v29 = vmax.f32 %v2441_v56, 0.0 }
 0x227   : > { %v2264_v21 = vpop.f32.mrf.mxu2 }
 0x228   : > { %v2265_v18 = vadd.f32 %v2264_v21, %v2176_v43  ;;  %v2353_v27 = vpop.f32.mrf.mxu3  ;;  %v3213_v43 = vor.u32 %v3700_v54, %v3210_v47 }
 0x229   : > { %v2178_v10 = vpop.f32.mrf.mxu1 }
 0x22a   : > { %v2354_v0 = vadd.f32 %v2353_v27, %v2265_v18  ;;  %v2179_v48 = vadd.f32 %v2178_v10, %v4495_v53  ;;  %v3205_v53 = vor.u32 %v3699_v28, %v3202_v36 }
 0x22b   : > { %v2445_v23 = vpop.f32.mrf.mxu0 }
 0x22c   : > { %v2443_v2 = vadd.f32 %v2442_v39, %v2354_v0  ;;  %2217 = vmatmul.bf16.gmra.mxu1 %v3169_v57  ;;  %2306 = vmatmul.bf16.gmra.mxu2 %v3173_v61  ;;  %v3216_v39 = vld [vmem:[%s4033_s7 + $0x3c8] sm:$0xf] }
 0x22d   : > { %2395 = vmatmul.bf16.gmra.mxu3 %v3177_v22  ;;  %v3217_v4 = vor.u32 %v3705_v5, %v3216_v39 }
 0x22e   : > { %2484 = vmatmul.bf16.gmra.mxu0 %v3181_v33  ;;  %v2512_v32 = vmax.f32 %v2443_v2, 0.0  ;;  %v3238_v2 = vld [vmem:[%s4033_s7 + $0x424] sm:$0xf0] }
 0x22f   : > { %v2267_v12 = vpop.f32.mrf.mxu2 }
 0x230   : > { %v3814_v34 = vpack.c.bf16 %v2512_v32, %v2511_v29  ;;  %v2356_v14 = vpop.f32.mrf.mxu3  ;;  %v2268_v60 = vadd.f32 %v2267_v12, %v2179_v48  ;;  %v3244_v29 = vld [vmem:[%s4033_s7 + $0x408] sm:$0xf]  ;;  %v3713_v32 = vld [vmem:[%s4033_s7 + $0x428] sm:$0xf0] }
 0x231   : > { %v2180_v63 = vpop.f32.mrf.mxu1  ;;  %v3709_v12 = vld [vmem:[%s4033_s7 + $0x40c] sm:$0xf]  ;;  %v3245_v13 = vor.u32 %v3713_v32, %v3244_v29 }
 0x232   : > { %3878 = vst [vmem:[%s4673_s11 + $0x18] sm:$0xff] %v3814_v34   ;;  %v2357_v38 = vadd.f32 %v2356_v14, %v2268_v60  ;;  %v2181_v31 = vadd.f32 %v2180_v63, %v4504_v24  ;;  %v3246_v14 = vld [vmem:[%s4033_s7 + $0x42c] sm:$0xf0]  ;;  %v3714_v60 = vld [vmem:[%s4033_s7 + $0x430] sm:$0xf0] }
 0x233   : > { %v2447_v3 = vpop.f32.mrf.mxu0  ;;  %v3252_v63 = vld [vmem:[%s4033_s7 + $0x410] sm:$0xf]  ;;  %v3249_v54 = vor.u32 %v3709_v12, %v3246_v14 }
 0x234   : > { %v2446_v41 = vadd.f32 %v2445_v23, %v2357_v38  ;;  %v3708_v23 = vld [vmem:[%s4033_s7 + $0x404] sm:$0xf]  ;;  %v3253_v38 = vor.u32 %v3714_v60, %v3252_v63 }
 0x236   : > { %v2513_v24 = vmax.f32 %v2446_v41, 0.0  ;;  %v3717_v41 = vld [vmem:[%s4033_s7 + $0x44c] sm:$0xf] }
 0x237   : > { %v2269_v9 = vpop.f32.mrf.mxu2 }
 0x238   : > { %v2270_v62 = vadd.f32 %v2269_v9, %v2181_v31  ;;  %v2358_v35 = vpop.f32.mrf.mxu3 }
 0x239   : > { %v2183_v55 = vpop.f32.mrf.mxu1 }
 0x23a   : > { %v2359_v20 = vadd.f32 %v2358_v35, %v2270_v62  ;;  %v2184_v10 = vadd.f32 %v2183_v55, %v4509_v6  ;;  %v3241_v6 = vor.u32 %v3708_v23, %v3238_v2 }
 0x23b   : > { %v2450_v21 = vpop.f32.mrf.mxu0 }
 0x23c   : > { %v2448_v18 = vadd.f32 %v2447_v3, %v2359_v20  ;;  %2222 = vmatmul.bf16.gmra.mxu1 %v3205_v53  ;;  %2311 = vmatmul.bf16.gmra.mxu2 %v3209_v7  ;;  %v3274_v20 = vld [vmem:[%s4033_s7 + $0x46c] sm:$0xf0] }
 0x23d   : > { %2400 = vmatmul.bf16.gmra.mxu3 %v3213_v43 }
 0x23e   : > { %2489 = vmatmul.bf16.gmra.mxu0 %v3217_v4  ;;  %v2514_v27 = vmax.f32 %v2448_v18, 0.0  ;;  %v3722_v18 = vld [vmem:[%s4033_s7 + $0x470] sm:$0xf0] }
 0x23f   : > { %v2272_v57 = vpop.f32.mrf.mxu2 }
 0x240   : > { %v3819_v61 = vpack.c.bf16 %v2514_v27, %v2513_v24  ;;  %v2361_v22 = vpop.f32.mrf.mxu3  ;;  %v2273_v56 = vadd.f32 %v2272_v57, %v2184_v10  ;;  %v3718_v24 = vld [vmem:[%s4033_s7 + $0x454] sm:$0xf]  ;;  %v3288_v10 = vld [vmem:[%s4033_s7 + $0x458] sm:$0xf] }
 0x241   : > { %v2185_v33 = vpop.f32.mrf.mxu1 }
 0x242   : > { %3879 = vst [vmem:[%s4673_s11 + $0x20] sm:$0xff] %v3819_v61   ;;  %v2362_v34 = vadd.f32 %v2361_v22, %v2273_v56  ;;  %v2186_v48 = vadd.f32 %v2185_v33, %v4518_v17  ;;  %v3282_v61 = vld [vmem:[%s4033_s7 + $0x474] sm:$0xf0]  ;;  %v3723_v22 = vld [vmem:[%s4033_s7 + $0x478] sm:$0xf0] }
 0x243   : > { %v2452_v0 = vpop.f32.mrf.mxu0  ;;  %v3285_v29 = vor.u32 %v3718_v24, %v3282_v61  ;;  %v3289_v32 = vor.u32 %v3723_v22, %v3288_v10 }
 0x244   : > { %v2451_v31 = vadd.f32 %v2450_v21, %v2362_v34  ;;  %v3280_v21 = vld [vmem:[%s4033_s7 + $0x450] sm:$0xf] }
 0x245   : > { %v3281_v23 = vor.u32 %v3722_v18, %v3280_v21 }
 0x246   : > { %v2515_v17 = vmax.f32 %v2451_v31, 0.0 }
 0x247   : > { %v2274_v3 = vpop.f32.mrf.mxu2 }
 0x248   : > { %v2275_v28 = vadd.f32 %v2274_v3, %v2186_v48  ;;  %v2363_v36 = vpop.f32.mrf.mxu3 }
 0x249   : > { %v2188_v1 = vpop.f32.mrf.mxu1 }
 0x24a   : > { %v2364_v47 = vadd.f32 %v2363_v36, %v2275_v28  ;;  %v2189_v53 = vadd.f32 %v2188_v1, %v4523_v30  ;;  %v3277_v30 = vor.u32 %v3717_v41, %v3274_v20 }
 0x24b   : > { %v2455_v39 = vpop.f32.mrf.mxu0 }
 0x24c   : > { %v2453_v5 = vadd.f32 %v2452_v0, %v2364_v47  ;;  %2227 = vmatmul.bf16.gmra.mxu1 %v3241_v6  ;;  %2316 = vmatmul.bf16.gmra.mxu2 %v3245_v13 }
 0x24d   : > { %2405 = vmatmul.bf16.gmra.mxu3 %v3249_v54 }
 0x24e   : > { %2494 = vmatmul.bf16.gmra.mxu0 %v3253_v38  ;;  %v2516_v9 = vmax.f32 %v2453_v5, 0.0 }
 0x24f   : > { %v2277_v62 = vpop.f32.mrf.mxu2 }
 0x250   : > { %v3824_v35 = vpack.c.bf16 %v2516_v9, %v2515_v17  ;;  %v2366_v7 = vpop.f32.mrf.mxu3  ;;  %v2278_v43 = vadd.f32 %v2277_v62, %v2189_v53 }
 0x251   : > { %v2190_v55 = vpop.f32.mrf.mxu1 }
 0x252   : > { %3880 = vst [vmem:[%s4673_s11 + $0x28] sm:$0xff] %v3824_v35   ;;  %v2367_v27 = vadd.f32 %v2366_v7, %v2278_v43  ;;  %v2191_v57 = vadd.f32 %v2190_v55, %v4532_v44 }
 0x253   : > { %v2457_v4 = vpop.f32.mrf.mxu0 }
 0x254   : > { %v2456_v12 = vadd.f32 %v2455_v39, %v2367_v27 }
 0x256   : > { %v2517_v44 = vmax.f32 %v2456_v12, 0.0 }
 0x257   : > { %v2279_v33 = vpop.f32.mrf.mxu2 }
 0x258   : > { %v2280_v56 = vadd.f32 %v2279_v33, %v2191_v57  ;;  %v2368_v0 = vpop.f32.mrf.mxu3 }
 0x259   : > { %v2193_v2 = vpop.f32.mrf.mxu1 }
 0x25a   : > { %v2369_v34 = vadd.f32 %v2368_v0, %v2280_v56  ;;  %v2194_v28 = vadd.f32 %v2193_v2, %v4537_v15 }
 0x25b   : > { %v2460_v48 = vpop.f32.mrf.mxu0 }
 0x25c   : > { %v2458_v14 = vadd.f32 %v2457_v4, %v2369_v34  ;;  %2232 = vmatmul.bf16.gmra.mxu1 %v3277_v30  ;;  %2321 = vmatmul.bf16.gmra.mxu2 %v3281_v23 }
 0x25d   : > { %2410 = vmatmul.bf16.gmra.mxu3 %v3285_v29 }
 0x25e   : > { %2499 = vmatmul.bf16.gmra.mxu0 %v3289_v32  ;;  %v2518_v63 = vmax.f32 %v2458_v14, 0.0 }
 0x25f   : > { %v2282_v60 = vpop.f32.mrf.mxu2 }
 0x260   : > { %v3829_v3 = vpack.c.bf16 %v2518_v63, %v2517_v44  ;;  %v2371_v36 = vpop.f32.mrf.mxu3  ;;  %v2283_v13 = vadd.f32 %v2282_v60, %v2194_v28 }
 0x261   : > { %v2195_v6 = vpop.f32.mrf.mxu1 }
 0x262   : > { %3881 = vst [vmem:[%s4673_s11 + $0x30] sm:$0xff] %v3829_v3   ;;  %v2372_v54 = vadd.f32 %v2371_v36, %v2283_v13  ;;  %v2196_v38 = vadd.f32 %v2195_v6, %v4546_v51 }
 0x263   : > { %v2462_v1 = vpop.f32.mrf.mxu0 }
 0x264   : > { %v2461_v17 = vadd.f32 %v2460_v48, %v2372_v54 }
 0x266   : > { %v2519_v53 = vmax.f32 %v2461_v17, 0.0 }
 0x267   : > { %v2284_v31 = vpop.f32.mrf.mxu2 }
 0x268   : > { %v2285_v47 = vadd.f32 %v2284_v31, %v2196_v38  ;;  %v2373_v39 = vpop.f32.mrf.mxu3 }
 0x269   : > { %v2198_v5 = vpop.f32.mrf.mxu1 }
 0x26a   : > { %v2374_v9 = vadd.f32 %v2373_v39, %v2285_v47  ;;  %v2199_v43 = vadd.f32 %v2198_v5, %v4551_v11 }
 0x26b   : > { %v2465_v62 = vpop.f32.mrf.mxu0 }
 0x26c   : > { %v2463_v35 = vadd.f32 %v2462_v1, %v2374_v9 }
 0x26e   : > { %v2520_v7 = vmax.f32 %v2463_v35, 0.0 }
 0x26f   : > { %v2287_v15 = vpop.f32.mrf.mxu2 }
 0x270   : > { %v3834_v55 = vpack.c.bf16 %v2520_v7, %v2519_v53  ;;  %v2376_v4 = vpop.f32.mrf.mxu3  ;;  %v2288_v20 = vadd.f32 %v2287_v15, %v2199_v43 }
 0x271   : > { %v2200_v41 = vpop.f32.mrf.mxu1 }
 0x272   : > { %3882 = vst [vmem:[%s4673_s11 + $0x38] sm:$0xff] %v3834_v55   ;;  %v2377_v21 = vadd.f32 %v2376_v4, %v2288_v20  ;;  %v2201_v18 = vadd.f32 %v2200_v41, %v4560_v42 }
 0x273   : > { %v2467_v51 = vpop.f32.mrf.mxu0 }
 0x274   : > { %v2466_v10 = vadd.f32 %v2465_v62, %v2377_v21 }
 0x276   : > { %v2521_v0 = vmax.f32 %v2466_v10, 0.0 }
 0x277   : > { %v2289_v24 = vpop.f32.mrf.mxu2 }
 0x278   : > { %v2290_v27 = vadd.f32 %v2289_v24, %v2201_v18  ;;  %v2378_v57 = vpop.f32.mrf.mxu3 }
 0x279   : > { %v2203_v61 = vpop.f32.mrf.mxu1 }
 0x27a   : > { %v2379_v22 = vadd.f32 %v2378_v57, %v2290_v27  ;;  %v2204_v2 = vadd.f32 %v2203_v61, %v4565_v58 }
 0x27b   : > { %v2470_v33 = vpop.f32.mrf.mxu0 }
 0x27c   : > { %v2468_v56 = vadd.f32 %v2467_v51, %v2379_v22 }
 0x27e   : > { %v2522_v30 = vmax.f32 %v2468_v56, 0.0 }
 0x27f   : > { %v2292_v11 = vpop.f32.mrf.mxu2 }
 0x280   : > { %v3839_v23 = vpack.c.bf16 %v2522_v30, %v2521_v0  ;;  %v2381_v29 = vpop.f32.mrf.mxu3  ;;  %v2293_v12 = vadd.f32 %v2292_v11, %v2204_v2 }
 0x281   : > { %v2205_v32 = vpop.f32.mrf.mxu1 }
 0x282   : > { %3883 = vst [vmem:[%s4673_s11 + $0x40] sm:$0xff] %v3839_v23   ;;  %v2382_v34 = vadd.f32 %v2381_v29, %v2293_v12  ;;  %v2206_v48 = vadd.f32 %v2205_v32, %v4574_v25 }
 0x283   : > { %v2472_v42 = vpop.f32.mrf.mxu0 }
 0x284   : > { %v2471_v3 = vadd.f32 %v2470_v33, %v2382_v34 }
 0x286   : > { %v2523_v13 = vmax.f32 %v2471_v3, 0.0 }
 0x287   : > { %v2294_v14 = vpop.f32.mrf.mxu2 }
 0x288   : > { %v2295_v44 = vadd.f32 %v2294_v14, %v2206_v48  ;;  %v2383_v63 = vpop.f32.mrf.mxu3 }
 0x289   : > { %v2208_v60 = vpop.f32.mrf.mxu1 }
 0x28a   : > { %v2384_v28 = vadd.f32 %v2383_v63, %v2295_v44  ;;  %v2209_v38 = vadd.f32 %v2208_v60, %v4579_v49 }
 0x28b   : > { %v2475_v36 = vpop.f32.mrf.mxu0 }
 0x28c   : > { %v2473_v6 = vadd.f32 %v2472_v42, %v2384_v28 }
 0x28e   : > { %v2524_v1 = vmax.f32 %v2473_v6, 0.0 }
 0x28f   : > { %v2297_v58 = vpop.f32.mrf.mxu2 }
 0x290   : > { %v3844_v54 = vpack.c.bf16 %v2524_v1, %v2523_v13  ;;  %v2386_v31 = vpop.f32.mrf.mxu3  ;;  %v2298_v39 = vadd.f32 %v2297_v58, %v2209_v38 }
 0x291   : > { %v2210_v47 = vpop.f32.mrf.mxu1 }
 0x292   : > { %3884 = vst [vmem:[%s4673_s11 + $0x48] sm:$0xff] %v3844_v54   ;;  %v2387_v5 = vadd.f32 %v2386_v31, %v2298_v39  ;;  %v2211_v17 = vadd.f32 %v2210_v47, %v4588_v19 }
 0x293   : > { %v2477_v25 = vpop.f32.mrf.mxu0 }
 0x294   : > { %v2476_v7 = vadd.f32 %v2475_v36, %v2387_v5 }
 0x296   : > { %v2525_v4 = vmax.f32 %v2476_v7, 0.0 }
 0x297   : > { %v2299_v9 = vpop.f32.mrf.mxu2 }
 0x298   : > { %v2300_v62 = vadd.f32 %v2299_v9, %v2211_v17  ;;  %v2388_v35 = vpop.f32.mrf.mxu3 }
 0x299   : > { %v2213_v53 = vpop.f32.mrf.mxu1 }
 0x29a   : > { %v2389_v15 = vadd.f32 %v2388_v35, %v2300_v62  ;;  %v2214_v51 = vadd.f32 %v2213_v53, %v4593_v37 }
 0x29b   : > { %v2480_v55 = vpop.f32.mrf.mxu0 }
 0x29c   : > { %v2478_v43 = vadd.f32 %v2477_v25, %v2389_v15 }
 0x29e   : > { %v2526_v41 = vmax.f32 %v2478_v43, 0.0 }
 0x29f   : > { %v2302_v49 = vpop.f32.mrf.mxu2 }
 0x2a0   : > { %v3849_v20 = vpack.c.bf16 %v2526_v41, %v2525_v4  ;;  %v2391_v21 = vpop.f32.mrf.mxu3  ;;  %v2303_v24 = vadd.f32 %v2302_v49, %v2214_v51 }
 0x2a1   : > { %v2215_v18 = vpop.f32.mrf.mxu1 }
 0x2a2   : > { %3885 = vst [vmem:[%s4673_s11 + $0x50] sm:$0xff] %v3849_v20   ;;  %v2392_v27 = vadd.f32 %v2391_v21, %v2303_v24  ;;  %v2216_v57 = vadd.f32 %v2215_v18, %v4602_v40 }
 0x2a3   : > { %v2482_v19 = vpop.f32.mrf.mxu0 }
 0x2a4   : > { %v2481_v56 = vadd.f32 %v2480_v55, %v2392_v27 }
 0x2a6   : > { %v2527_v23 = vmax.f32 %v2481_v56, 0.0 }
 0x2a7   : > { %v2304_v61 = vpop.f32.mrf.mxu2 }
 0x2a8   : > { %v2305_v10 = vadd.f32 %v2304_v61, %v2216_v57  ;;  %v2393_v22 = vpop.f32.mrf.mxu3 }
 0x2a9   : > { %v2218_v33 = vpop.f32.mrf.mxu1 }
 0x2aa   : > { %v2394_v0 = vadd.f32 %v2393_v22, %v2305_v10  ;;  %v2219_v32 = vadd.f32 %v2218_v33, %v4607_v8 }
 0x2ab   : > { %v2485_v30 = vpop.f32.mrf.mxu0 }
 0x2ac   : > { %v2483_v11 = vadd.f32 %v2482_v19, %v2394_v0 }
 0x2ae   : > { %v2528_v2 = vmax.f32 %v2483_v11, 0.0 }
 0x2af   : > { %v2307_v37 = vpop.f32.mrf.mxu2 }
 0x2b0   : > { %v3854_v29 = vpack.c.bf16 %v2528_v2, %v2527_v23  ;;  %v2396_v12 = vpop.f32.mrf.mxu3  ;;  %v2308_v34 = vadd.f32 %v2307_v37, %v2219_v32 }
 0x2b1   : > { %v2220_v42 = vpop.f32.mrf.mxu1 }
 0x2b2   : > { %3886 = vst [vmem:[%s4673_s11 + $0x58] sm:$0xff] %v3854_v29   ;;  %v2397_v48 = vadd.f32 %v2396_v12, %v2308_v34  ;;  %v2221_v14 = vadd.f32 %v2220_v42, %v4616_v52 }
 0x2b3   : > { %v2487_v40 = vpop.f32.mrf.mxu0 }
 0x2b4   : > { %v2486_v28 = vadd.f32 %v2485_v30, %v2397_v48 }
 0x2b6   : > { %v2529_v1 = vmax.f32 %v2486_v28, 0.0 }
 0x2b7   : > { %v2309_v44 = vpop.f32.mrf.mxu2 }
 0x2b8   : > { %v2310_v63 = vadd.f32 %v2309_v44, %v2221_v14  ;;  %v2398_v60 = vpop.f32.mrf.mxu3 }
 0x2b9   : > { %v2223_v3 = vpop.f32.mrf.mxu1 }
 0x2ba   : > { %v2399_v36 = vadd.f32 %v2398_v60, %v2310_v63  ;;  %v2224_v38 = vadd.f32 %v2223_v3, %v4621_v45 }
 0x2bb   : > { %v2490_v6 = vpop.f32.mrf.mxu0 }
 0x2bc   : > { %v2488_v13 = vadd.f32 %v2487_v40, %v2399_v36 }
 0x2be   : > { %v2530_v58 = vmax.f32 %v2488_v13, 0.0 }
 0x2bf   : > { %v2312_v8 = vpop.f32.mrf.mxu2 }
 0x2c0   : > { %v3859_v54 = vpack.c.bf16 %v2530_v58, %v2529_v1  ;;  %v2401_v31 = vpop.f32.mrf.mxu3  ;;  %v2313_v39 = vadd.f32 %v2312_v8, %v2224_v38 }
 0x2c1   : > { %v2225_v47 = vpop.f32.mrf.mxu1 }
 0x2c2   : > { %3887 = vst [vmem:[%s4673_s11 + $0x60] sm:$0xff] %v3859_v54   ;;  %v2402_v25 = vadd.f32 %v2401_v31, %v2313_v39  ;;  %v2226_v5 = vadd.f32 %v2225_v47, %v4630_v46 }
 0x2c3   : > { %v2492_v52 = vpop.f32.mrf.mxu0 }
 0x2c4   : > { %v2491_v53 = vadd.f32 %v2490_v6, %v2402_v25 }
 0x2c6   : > { %v2531_v43 = vmax.f32 %v2491_v53, 0.0 }
 0x2c7   : > { %v2314_v17 = vpop.f32.mrf.mxu2 }
 0x2c8   : > { %v2315_v9 = vadd.f32 %v2314_v17, %v2226_v5  ;;  %v2403_v62 = vpop.f32.mrf.mxu3 }
 0x2c9   : > { %v2228_v35 = vpop.f32.mrf.mxu1 }
 0x2ca   : > { %v2404_v7 = vadd.f32 %v2403_v62, %v2315_v9  ;;  %v2229_v49 = vadd.f32 %v2228_v35, %v4635_v59 }
 0x2cb   : > { %v2495_v55 = vpop.f32.mrf.mxu0 }
 0x2cc   : > { %v2493_v15 = vadd.f32 %v2492_v52, %v2404_v7 }
 0x2ce   : > { %v2532_v4 = vmax.f32 %v2493_v15, 0.0 }
 0x2cf   : > { %v2317_v45 = vpop.f32.mrf.mxu2 }
 0x2d0   : > { %v3864_v41 = vpack.c.bf16 %v2532_v4, %v2531_v43  ;;  %v2406_v20 = vpop.f32.mrf.mxu3  ;;  %v2318_v21 = vadd.f32 %v2317_v45, %v2229_v49 }
 0x2d1   : > { %v2230_v51 = vpop.f32.mrf.mxu1 }
 0x2d2   : > { %3888 = vst [vmem:[%s4673_s11 + $0x68] sm:$0xff] %v3864_v41   ;;  %v2407_v46 = vadd.f32 %v2406_v20, %v2318_v21  ;;  %v2231_v18 = vadd.f32 %v2230_v51, %v4644_v26 }
 0x2d3   : > { %v2497_v24 = vpop.f32.mrf.mxu0 }
 0x2d4   : > { %v2496_v10 = vadd.f32 %v2495_v55, %v2407_v46 }
 0x2d6   : > { %v2533_v56 = vmax.f32 %v2496_v10, 0.0 }
 0x2d7   : > { %v2319_v19 = vpop.f32.mrf.mxu2 }
 0x2d8   : > { %v2320_v27 = vadd.f32 %v2319_v19, %v2231_v18  ;;  %v2408_v57 = vpop.f32.mrf.mxu3 }
 0x2d9   : > { %v2233_v61 = vpop.f32.mrf.mxu1 }
 0x2da   : > { %v2409_v22 = vadd.f32 %v2408_v57, %v2320_v27  ;;  %v2234_v11 = vadd.f32 %v2233_v61, %v4649_v50 }
 0x2db   : > { %v2500_v2 = vpop.f32.mrf.mxu0 }
 0x2dc   : > { %v2498_v33 = vadd.f32 %v2497_v24, %v2409_v22 }
 0x2de   : > { %v2534_v0 = vmax.f32 %v2498_v33, 0.0 }
 0x2df   : > { %v2322_v30 = vpop.f32.mrf.mxu2 }
 0x2e0   : > { %v3869_v59 = vpack.c.bf16 %v2534_v0, %v2533_v56  ;;  %v2411_v23 = vpop.f32.mrf.mxu3  ;;  %v2323_v26 = vadd.f32 %v2322_v30, %v2234_v11 }
 0x2e1   : > { %v2235_v37 = vpop.f32.mrf.mxu1 }
 0x2e2   : > { %3889 = vst [vmem:[%s4673_s11 + $0x70] sm:$0xff] %v3869_v59   ;;  %v2412_v29 = vadd.f32 %v2411_v23, %v2323_v26  ;;  %v2236_v32 = vadd.f32 %v2235_v37, %v4657_v16 }
 0x2e3   : > { %v2502_v14 = vpop.f32.mrf.mxu0 }
 0x2e4   : > { %v2501_v40 = vadd.f32 %v2500_v2, %v2412_v29 }
 0x2e6   : > { %v2535_v63 = vmax.f32 %v2501_v40, 0.0 }
 0x2e7   : > { %v2324_v12 = vpop.f32.mrf.mxu2 }
 0x2e8   : > { %v2325_v42 = vadd.f32 %v2324_v12, %v2236_v32  ;;  %v2413_v34 = vpop.f32.mrf.mxu3 }
 0x2ea   : > { %v2414_v48 = vadd.f32 %v2413_v34, %v2325_v42 }
 0x2ec   : > { %v2503_v44 = vadd.f32 %v2502_v14, %v2414_v48 }
 0x2ee   : > { %v2536_v60 = vmax.f32 %v2503_v44, 0.0 }
 0x2f0   : > { %v3874_v3 = vpack.c.bf16 %v2536_v60, %v2535_v63 }
 0x2f2   : > { %3890 = vst [vmem:[%s4673_s11 + $0x78] sm:$0xff] %v3874_v3  }
 0x2f3 PF: > { %s13_s14 = sadd.s32 1, %s3963_s14   ;;  %s4782_s12 = smov %s3959_s13 }
 0x2f4   : > { %p10_p5 = scmp.ge.s32.totalorder %s13_s14, 10   ;;  %s4783_s13 = smov %s4785_s15 }
 0x2f6   :  { %12 = sbr.rel (!%p10_p5) target bundleno = 2 (0x2), region = 68 }

</bundles_post_ra>
